<compile_context>
chip_gen: v7x
topology: tpu7x:2x2x1
jax: 0.10.0
libtpu: 0.0.40
codegen_flags: <defaults>
</compile_context>

<pallas_src>
import functools

import jax
import jax.numpy as jnp
from jax import lax
from jax.experimental import pallas as pl
from jax.experimental.pallas import tpu as pltpu


def attention_kernel(xf_ref, xq_ref, wq_ref, wkv_ref, wout_ref, bout_ref, o_ref,
                     *, heads, dim_head):
    """One (batch image, query-pixel tile) grid step.

    xf_ref:   (1, C, N)      full image: channels on sublanes, pixels on lanes (f32)
    xq_ref:   (1, C, TQ)     query-pixel tile of the same image (f32)
    wq_ref:   (hidden, C)    q 1x1-conv weight, softmax scale pre-folded (bf16)
    wkv_ref:  (2*hidden, C)  k|v 1x1-conv weight (bf16)
    wout_ref: (C, hidden)    output 1x1-conv weight (bf16)
    bout_ref: (C, 1)         output 1x1-conv bias (f32)
    o_ref:    (1, C, TQ)     output tile (f32)
    """
    hidden = heads * dim_head
    f32 = jnp.float32
    bf16 = jnp.bfloat16

    x_full = xf_ref[0].astype(bf16)                      # (C, N)
    x_tile = xq_ref[0].astype(bf16)                      # (C, TQ)
    n = x_full.shape[-1]
    tq = x_tile.shape[-1]

    # --- 1x1 convs as lane-dense MXU matmuls (bf16 in, f32 accumulate) ---
    q2 = jnp.dot(wq_ref[...], x_tile, preferred_element_type=f32)    # (hidden, TQ)
    kv = jnp.dot(wkv_ref[...], x_full, preferred_element_type=f32)   # (2*hidden, N)

    # Head split: pure sublane-axis reshapes (dim_head multiple of 8 -> free).
    q3 = q2.reshape(heads, dim_head, tq)                 # (h, d, i)
    k3 = kv[0:hidden].reshape(heads, dim_head, n)        # (h, d, j)
    v3 = kv[hidden:2 * hidden].reshape(heads, dim_head, n)

    # Put q in (h, i, d) so both attention matmuls use the standard MXU forms.
    q3t = jnp.swapaxes(q3, 1, 2)                         # (h, TQ, d) f32

    # sim[h,i,j] = sum_d q[h,i,d] * k[h,d,j]   (scale already folded into wq)
    sim = lax.dot_general(q3t.astype(bf16), k3.astype(bf16),
                          (((2,), (1,)), ((0,), (0,))),
                          preferred_element_type=f32)    # (h, TQ, N)

    # Softmax statistics in f32 (VPU/EUP); only MXU operands are bf16.
    sim = sim - jnp.max(sim, axis=-1, keepdims=True)
    p = jnp.exp(sim)                                     # (h, TQ, N) f32
    l = jnp.sum(p, axis=-1)                              # (h, TQ) f32

    # out[h,d,i] = sum_j v[h,d,j] * p[h,i,j]; softmax normalization folded into
    # this (h, dh, TQ) result via EUP reciprocal instead of dividing p (N-wide).
    out = lax.dot_general(v3.astype(bf16), p.astype(bf16),
                          (((2,), (2,)), ((0,), (0,))),
                          preferred_element_type=f32)    # (h, dh, TQ)
    out = out * pl.reciprocal(l, approx=True)[:, None, :]

    # Head-major channel order == rearrange 'b h (x y) d -> b (h d) x y'.
    out2d = out.reshape(hidden, tq)                      # free sublane merge

    # to_out: 1x1 conv with bias.
    y = jnp.dot(wout_ref[...], out2d.astype(bf16),
                preferred_element_type=f32) + bout_ref[...]           # (C, TQ)
    o_ref[0] = y.astype(o_ref.dtype)


@functools.partial(jax.jit, static_argnames=("heads", "dim_head"))
def attention_forward(x, w_qkv, w_out, b_out, *, heads, dim_head):
    """x: (B, C, H, W) f32. w_qkv: (3*hidden, C, 1, 1). w_out: (C, hidden, 1, 1).
    b_out: (C,). Returns (B, C, H, W)."""
    B, C, H, W = x.shape
    N = H * W
    hidden = heads * dim_head
    scale = float(dim_head) ** -0.5

    # NCHW kept natively: (B, C, H, W) -> (B, C, N) is a free reshape.
    x2 = x.reshape(B, C, N)

    w_qkv2 = w_qkv.reshape(3 * hidden, C)
    w_q = (w_qkv2[:hidden] * scale).astype(jnp.bfloat16)   # scale folded into weight
    w_kv = w_qkv2[hidden:].astype(jnp.bfloat16)
    w_o = w_out.reshape(C, hidden).astype(jnp.bfloat16)
    b_o = b_out.reshape(C, 1)                               # bias stays f32

    # Query-pixel tiling: more grid steps than B (pipelining / v7x TC balance).
    TQ = 128 if (N % 128 == 0 and N > 128) else N
    num_q = N // TQ

    kernel = functools.partial(attention_kernel, heads=heads, dim_head=dim_head)

    out = pl.pallas_call(
        kernel,
        out_shape=jax.ShapeDtypeStruct((B, C, N), x.dtype),
        grid=(B, num_q),
        in_specs=[
            pl.BlockSpec((1, C, N), lambda b, q: (b, 0, 0)),      # full image (for K/V)
            pl.BlockSpec((1, C, TQ), lambda b, q: (b, 0, q)),     # query pixel tile
            pl.BlockSpec((hidden, C), lambda b, q: (0, 0)),       # resident weights
            pl.BlockSpec((2 * hidden, C), lambda b, q: (0, 0)),
            pl.BlockSpec((C, hidden), lambda b, q: (0, 0)),
            pl.BlockSpec((C, 1), lambda b, q: (0, 0)),
        ],
        out_specs=pl.BlockSpec((1, C, TQ), lambda b, q: (b, 0, q)),
        compiler_params=pltpu.CompilerParams(
            dimension_semantics=("parallel", "parallel"),
            vmem_limit_bytes=64 * 1024 * 1024,
        ),
    )(x2, x2, w_q, w_kv, w_o, b_o)

    return out.reshape(B, C, H, W)


def reference_forward(x, w_qkv, w_out, b_out, *, heads, dim_head):
    """Pure-JAX (XLA, f32 HIGHEST) reference mirroring the PyTorch module."""
    b, c, h, w = x.shape
    hidden = heads * dim_head
    scale = float(dim_head) ** -0.5
    hp = jax.lax.Precision.HIGHEST

    qkv = jnp.einsum('bchw,oc->bohw', x, w_qkv.reshape(3 * hidden, c),
                     precision=hp)                              # (b, 3*hidden, h, w)
    q, k, v = jnp.split(qkv, 3, axis=1)
    rearr = lambda t: t.reshape(b, heads, dim_head, h * w)      # 'b (h c) x y -> b h c (x y)'
    q, k, v = rearr(q), rearr(k), rearr(v)
    q = q * scale
    sim = jnp.einsum('bhdi,bhdj->bhij', q, k, precision=hp)
    sim = sim - jnp.max(sim, axis=-1, keepdims=True)
    attn = jax.nn.softmax(sim, axis=-1)
    out = jnp.einsum('bhij,bhdj->bhid', attn, v, precision=hp)  # (b, heads, N, dh)
    out = jnp.transpose(out, (0, 1, 3, 2)).reshape(b, hidden, h, w)
    y = jnp.einsum('bchw,oc->bohw', out, w_out.reshape(c, hidden),
                   precision=hp) + b_out[None, :, None, None]
    return y


if __name__ == "__main__":
    B, DIM, H, W = 2, 128, 16, 16          # batch, channels ("dim"), spatial
    HEADS, DIM_HEAD = 4, 32                # module defaults
    HIDDEN = HEADS * DIM_HEAD

    key = jax.random.PRNGKey(0)
    kx, kq, ko, kb = jax.random.split(key, 4)

    x = jax.random.normal(kx, (B, DIM, H, W), dtype=jnp.float32)
    # Conv weights in PyTorch layout: (out_ch, in_ch, 1, 1).
    w_qkv = (jax.random.normal(kq, (3 * HIDDEN, DIM, 1, 1), dtype=jnp.float32)
             * (1.0 / jnp.sqrt(DIM)))
    w_out = (jax.random.normal(ko, (DIM, HIDDEN, 1, 1), dtype=jnp.float32)
             * (1.0 / jnp.sqrt(HIDDEN)))
    b_out = jax.random.normal(kb, (DIM,), dtype=jnp.float32) * 0.1

    out = attention_forward(x, w_qkv, w_out, b_out, heads=HEADS, dim_head=DIM_HEAD)
    out = jax.block_until_ready(out)

    ref = reference_forward(x, w_qkv, w_out, b_out, heads=HEADS, dim_head=DIM_HEAD)
    assert out.shape == (B, DIM, H, W)

    # bf16 MXU operands + approx reciprocal -> looser tolerance than pure f32.
    abs_err = jnp.abs(out - ref)
    max_err = float(jnp.max(abs_err))
    mean_err = float(jnp.mean(abs_err))
    assert jnp.allclose(out, ref, atol=1e-1, rtol=1e-2), f"max abs err {max_err}"
    assert mean_err < 2e-2, f"mean abs err {mean_err}"

    print("KERNEL_OK")
</pallas_src>

<mosaic_0001>
module attributes {stable_mosaic.version = 11 : i64} {
  func.func @attention_kernel(%arg0: i32, %arg1: i32, %arg2: memref<1x128x256xf32, #tpu.memory_space<vmem>>, %arg3: memref<1x128x128xf32, #tpu.memory_space<vmem>>, %arg4: memref<128x128xbf16, #tpu.memory_space<vmem>>, %arg5: memref<256x128xbf16, #tpu.memory_space<vmem>>, %arg6: memref<128x128xbf16, #tpu.memory_space<vmem>>, %arg7: memref<128x1xf32, #tpu.memory_space<vmem>>, %arg8: memref<1x128x128xf32, #tpu.memory_space<vmem>>) attributes {dimension_semantics = [#tpu.dimension_semantics<parallel>, #tpu.dimension_semantics<parallel>], iteration_bounds = array<i64: 2, 2>, scalar_prefetch = 0 : i64, scratch_operands = 0 : i64, tpu.core_type = #tpu.core_type<tc>, window_params = [{transform_indices = @transform_0, window_bounds = array<i64: 1, 128, 256>}, {transform_indices = @transform_1, window_bounds = array<i64: 1, 128, 128>}, {pipeline_mode = #tpu.pipeline_mode<synchronous>, transform_indices = @transform_2, window_bounds = array<i64: 128, 128>}, {pipeline_mode = #tpu.pipeline_mode<synchronous>, transform_indices = @transform_3, window_bounds = array<i64: 256, 128>}, {pipeline_mode = #tpu.pipeline_mode<synchronous>, transform_indices = @transform_4, window_bounds = array<i64: 128, 128>}, {pipeline_mode = #tpu.pipeline_mode<synchronous>, transform_indices = @transform_5, window_bounds = array<i64: 128, 1>}, {transform_indices = @transform_6, window_bounds = array<i64: 1, 128, 128>}]} {
    %c0 = arith.constant 0 : index
    %c0_0 = arith.constant 0 : index
    %c0_1 = arith.constant 0 : index
    %0 = vector.load %arg2[%c0, %c0_0, %c0_1] : memref<1x128x256xf32, #tpu.memory_space<vmem>>, vector<1x128x256xf32>
    %1 = vector.shape_cast %0 : vector<1x128x256xf32> to vector<128x256xf32>
    %2 = arith.truncf %1 : vector<128x256xf32> to vector<128x256xbf16>
    %c0_2 = arith.constant 0 : index
    %c0_3 = arith.constant 0 : index
    %c0_4 = arith.constant 0 : index
    %3 = vector.load %arg3[%c0_2, %c0_3, %c0_4] : memref<1x128x128xf32, #tpu.memory_space<vmem>>, vector<1x128x128xf32>
    %4 = vector.shape_cast %3 : vector<1x128x128xf32> to vector<128x128xf32>
    %5 = arith.truncf %4 : vector<128x128xf32> to vector<128x128xbf16>
    %c0_5 = arith.constant 0 : index
    %c0_6 = arith.constant 0 : index
    %6 = vector.load %arg4[%c0_5, %c0_6] : memref<128x128xbf16, #tpu.memory_space<vmem>>, vector<128x128xbf16>
    %cst = arith.constant dense<0.000000e+00> : vector<128x128xf32>
    %7 = tpu.matmul %6, %5, %cst {dimension_numbers = #tpu.dot_dimension_numbers<[1], [0], [0], [1], [0, 0, 1, 1], [], []>} : vector<128x128xbf16>, vector<128x128xbf16>, vector<128x128xf32> -> vector<128x128xf32>
    %c0_7 = arith.constant 0 : index
    %c0_8 = arith.constant 0 : index
    %8 = vector.load %arg5[%c0_7, %c0_8] : memref<256x128xbf16, #tpu.memory_space<vmem>>, vector<256x128xbf16>
    %cst_9 = arith.constant dense<0.000000e+00> : vector<256x256xf32>
    %9 = tpu.matmul %8, %2, %cst_9 {dimension_numbers = #tpu.dot_dimension_numbers<[1], [0], [0], [1], [0, 0, 1, 1], [], []>} : vector<256x128xbf16>, vector<128x256xbf16>, vector<256x256xf32> -> vector<256x256xf32>
    %10 = vector.shape_cast %7 : vector<128x128xf32> to vector<4x32x128xf32>
    %11 = vector.extract_strided_slice %9 {offsets = [0, 0], sizes = [128, 256], strides = [1, 1]} : vector<256x256xf32> to vector<128x256xf32>
    %12 = vector.shape_cast %11 : vector<128x256xf32> to vector<4x32x256xf32>
    %13 = vector.extract_strided_slice %9 {offsets = [128, 0], sizes = [128, 256], strides = [1, 1]} : vector<256x256xf32> to vector<128x256xf32>
    %14 = vector.shape_cast %13 : vector<128x256xf32> to vector<4x32x256xf32>
    %15 = tpu.transpose %10, [0, 2, 1] : vector<4x32x128xf32> -> vector<4x128x32xf32>
    %16 = arith.truncf %15 : vector<4x128x32xf32> to vector<4x128x32xbf16>
    %17 = arith.truncf %12 : vector<4x32x256xf32> to vector<4x32x256xbf16>
    %cst_10 = arith.constant dense<0.000000e+00> : vector<4x128x256xf32>
    %18 = tpu.matmul %16, %17, %cst_10 {dimension_numbers = #tpu.dot_dimension_numbers<[2], [1], [1], [2], [0, 0, 0, 1, 1, 2], [0], [0]>} : vector<4x128x32xbf16>, vector<4x32x256xbf16>, vector<4x128x256xf32> -> vector<4x128x256xf32>
    %cst_11 = arith.constant dense<0xFF800000> : vector<4x128xf32>
    %19 = vector.multi_reduction <maximumf>, %18, %cst_11 [2] : vector<4x128x256xf32> to vector<4x128xf32>
    %20 = vector.shape_cast %19 : vector<4x128xf32> to vector<4x128x1xf32>
    %21 = vector.broadcast %20 : vector<4x128x1xf32> to vector<4x128x256xf32>
    %22 = arith.subf %18, %21 : vector<4x128x256xf32>
    %23 = math.exp %22 : vector<4x128x256xf32>
    %cst_12 = arith.constant dense<0.000000e+00> : vector<4x128xf32>
    %24 = vector.multi_reduction <add>, %23, %cst_12 [2] : vector<4x128x256xf32> to vector<4x128xf32>
    %25 = arith.truncf %14 : vector<4x32x256xf32> to vector<4x32x256xbf16>
    %26 = arith.truncf %23 : vector<4x128x256xf32> to vector<4x128x256xbf16>
    %cst_13 = arith.constant dense<0.000000e+00> : vector<4x32x128xf32>
    %27 = tpu.matmul %25, %26, %cst_13 {dimension_numbers = #tpu.dot_dimension_numbers<[2], [2], [1], [1], [0, 0, 0, 1, 1, 1], [0], [0]>} : vector<4x32x256xbf16>, vector<4x128x256xbf16>, vector<4x32x128xf32> -> vector<4x32x128xf32>
    %28 = tpu.reciprocal %24 {approx = true} : vector<4x128xf32> -> vector<4x128xf32>
    %29 = vector.shape_cast %28 : vector<4x128xf32> to vector<4x1x128xf32>
    %30 = vector.broadcast %29 : vector<4x1x128xf32> to vector<4x32x128xf32>
    %31 = arith.mulf %27, %30 : vector<4x32x128xf32>
    %32 = vector.shape_cast %31 : vector<4x32x128xf32> to vector<128x128xf32>
    %c0_14 = arith.constant 0 : index
    %c0_15 = arith.constant 0 : index
    %33 = vector.load %arg6[%c0_14, %c0_15] : memref<128x128xbf16, #tpu.memory_space<vmem>>, vector<128x128xbf16>
    %34 = arith.truncf %32 : vector<128x128xf32> to vector<128x128xbf16>
    %cst_16 = arith.constant dense<0.000000e+00> : vector<128x128xf32>
    %35 = tpu.matmul %33, %34, %cst_16 {dimension_numbers = #tpu.dot_dimension_numbers<[1], [0], [0], [1], [0, 0, 1, 1], [], []>} : vector<128x128xbf16>, vector<128x128xbf16>, vector<128x128xf32> -> vector<128x128xf32>
    %c0_17 = arith.constant 0 : index
    %c0_18 = arith.constant 0 : index
    %36 = vector.load %arg7[%c0_17, %c0_18] : memref<128x1xf32, #tpu.memory_space<vmem>>, vector<128x1xf32>
    %37 = vector.broadcast %36 : vector<128x1xf32> to vector<128x128xf32>
    %38 = arith.addf %35, %37 : vector<128x128xf32>
    %c0_19 = arith.constant 0 : index
    %c0_20 = arith.constant 0 : index
    %c0_21 = arith.constant 0 : index
    %39 = vector.load %arg8[%c0_19, %c0_20, %c0_21] : memref<1x128x128xf32, #tpu.memory_space<vmem>>, vector<1x128x128xf32>
    %40 = vector.shape_cast %39 : vector<1x128x128xf32> to vector<128x128xf32>
    %41 = vector.shape_cast %38 : vector<128x128xf32> to vector<1x128x128xf32>
    tpu.vector_store %arg8[%c0_19, %c0_20, %c0_21], %41 {strides = array<i32>} : memref<1x128x128xf32, #tpu.memory_space<vmem>>, vector<1x128x128xf32>,
    return
  }
  func.func @transform_0(%arg0: i32, %arg1: i32) -> (i32, i32, i32) {
    %c0_i32 = arith.constant 0 : i32
    %c0_i32_0 = arith.constant 0 : i32
    %c0_i32_1 = arith.constant 0 : i32
    return %arg0, %c0_i32, %c0_i32_0 : i32, i32, i32
  }
  func.func @transform_1(%arg0: i32, %arg1: i32) -> (i32, i32, i32) {
    %c0_i32 = arith.constant 0 : i32
    %c0_i32_0 = arith.constant 0 : i32
    return %arg0, %c0_i32, %arg1 : i32, i32, i32
  }
  func.func @transform_2(%arg0: i32, %arg1: i32) -> (i32, i32) {
    %c0_i32 = arith.constant 0 : i32
    %c0_i32_0 = arith.constant 0 : i32
    %c0_i32_1 = arith.constant 0 : i32
    return %c0_i32, %c0_i32_0 : i32, i32
  }
  func.func @transform_3(%arg0: i32, %arg1: i32) -> (i32, i32) {
    %c0_i32 = arith.constant 0 : i32
    %c0_i32_0 = arith.constant 0 : i32
    %c0_i32_1 = arith.constant 0 : i32
    return %c0_i32, %c0_i32_0 : i32, i32
  }
  func.func @transform_4(%arg0: i32, %arg1: i32) -> (i32, i32) {
    %c0_i32 = arith.constant 0 : i32
    %c0_i32_0 = arith.constant 0 : i32
    %c0_i32_1 = arith.constant 0 : i32
    return %c0_i32, %c0_i32_0 : i32, i32
  }
  func.func @transform_5(%arg0: i32, %arg1: i32) -> (i32, i32) {
    %c0_i32 = arith.constant 0 : i32
    %c0_i32_0 = arith.constant 0 : i32
    %c0_i32_1 = arith.constant 0 : i32
    return %c0_i32, %c0_i32_0 : i32, i32
  }
  func.func @transform_6(%arg0: i32, %arg1: i32) -> (i32, i32, i32) {
    %c0_i32 = arith.constant 0 : i32
    %c0_i32_0 = arith.constant 0 : i32
    return %arg0, %c0_i32, %arg1 : i32, i32, i32
  }
}

</mosaic_0001>

<bundles_post_ra>
// kernel: attention_forward.1
= control target key start
LH: loop header
LB: loop body
LE: loop exit
PB: predicated region body
PF: predicated region fallthrough
CT: control target
= control target key end

     0   :  { %s6784_s0 = inlined_call_operand.hbm [shape: f32[2,128,256], index: 0, kind: input, shape index: {}, may-alias: {0,1}]   ;;  %s6785_s1 = inlined_call_operand.hbm [shape: f32[2,128,256], index: 1, kind: input, shape index: {}, may-alias: {0,1}]   ;;  %s6786_s2 = inlined_call_operand.hbm [shape: bf16[128,128], index: 2, kind: input, shape index: {}]   ;;  %s6787_s3 = inlined_call_operand.hbm [shape: bf16[256,128], index: 3, kind: input, shape index: {}]   ;;  %s6788_s4 = inlined_call_operand.hbm [shape: bf16[128,128], index: 4, kind: input, shape index: {}]   ;;  %s6789_s5 = inlined_call_operand.hbm [shape: f32[128,1], index: 5, kind: input, shape index: {}]   ;;  %s6790_s6 = inlined_call_operand.hbm [shape: f32[2,128,256], index: 6, kind: output, shape index: {}]  }
   0x1   :  { %6904 = sst [smem:[#allocation125_spill]] %s6784_s0 }
   0x2   :  { %6905 = sst [smem:[#allocation126_spill]] %s6786_s2 }
   0x3   :  { %6906 = sst [smem:[#allocation127_spill]] %s6790_s6 }
   0x4   :  { %11 = vsyncpa [#allocation3], 0 }
   0x5   :  { %13 = vsyncpa [#allocation3 + $0x1], 0 }
   0x6   :  { %14 = vsyncpa [#allocation6], 0 }
   0x7   :  { %16 = vsyncpa [#allocation6 + $0x1], 0 }
   0x8   :  { %17 = vsyncpa [#allocation9], 0 }
   0x9   :  { %18 = vsyncpa [#allocation12], 0 }
   0xa   :  { %19 = vsyncpa [#allocation4], 0 }
   0xb   :  { %21 = vsyncpa [#allocation4 + $0x1], 0  ;;  %s4913_s21 = smov 0   ;;  %s4915_s22 = smov 0  }
   0xc   :  { %s4917_s23 = smov 0   ;;  %s4919_s24 = smov 0  }
   0xd   :  { %s4921_s25 = smov 0   ;;  %s4923_s26 = smov 0  }
   0xe   :  { %s4925_s27 = smov 0   ;;  %s4927_s28 = smov 0  }
   0xf   :  { %s4929_s29 = smov 0   ;;  %s4931_s30 = smov 0  }
  0x10   :  { %s4933_s7 = smov 0  }
  0x11 LB: > { %6907 = sst [smem:[#allocation20_spill]] %s4819_s21  ;;  %s4969_s8 = sadd.s32 4294967295, %s4859_s7   ;;  %s4859_s7 = sphi %s4933_s7, %s27_s7   ;;  %s4855_s30 = sphi %s4931_s30, %s7217_s30   ;;  %s4851_s29 = sphi %s4929_s29, %s7216_s29   ;;  %s4847_s28 = sphi %s4927_s28, %s7215_s28   ;;  %s4843_s27 = sphi %s4925_s27, %s7214_s27   ;;  %s4839_s26 = sphi %s4923_s26, %s7213_s26   ;;  %s4835_s25 = sphi %s4921_s25, %s7212_s25   ;;  %s4831_s24 = sphi %s4919_s24, %s7211_s24   ;;  %s4827_s23 = sphi %s4917_s23, %s7210_s23   ;;  %s4823_s22 = sphi %s4915_s22, %s7209_s22   ;;  %s4819_s21 = sphi %s4913_s21, %s7208_s21  }
  0x12   : > { %6908 = sst [smem:[#allocation21_spill]] %s4843_s27  ;;  %s3681_s9 = sadd.s32 4294967294, %s4859_s7  }
  0x13   : > { %6909 = sst [smem:[#allocation22_spill]] %s4847_s28  ;;  %p6794_p0 = scmp.eq.s32.totalorder %s4969_s8, 0 }
  0x14   : > { %p87_p1 = scmp.ne.s32.totalorder %s4823_s22, %s4819_s21  ;;  %p203_p3 = scmp.eq.s32.totalorder %s3681_s9, 3 }
  0x15   : > { %p3682_p5 = scmp.ge.s32.totalorder %s4859_s7, 1  ;;  %p210_p7 = scmp.lt.s32.totalorder %s4859_s7, 5 }
  0x16   : > { %p4978_p4 = por %p87_p1, %p6794_p0  ;;  %p4983_p6 = por %p203_p3, %p87_p1 }
  0x17   : > { %p4988_p8 = pnand %p3682_p5, %p210_p7  ;;  %s4861_s13 = smov [#allocation7]  }
  0x18   : > { %s6910_s10 = scalar_select %p4978_p4, 1, 0 }
  0x19   : > { %s6912_s11 = scalar_select %p4983_p6, 1, 0 }
  0x1a   : > { %6911 = sst [smem:[#allocation23_spill]] %s6910_s10  ;;  %s222_s14 = sshll.u32 %s4861_s13, 4  ;;  %s4992_s14 = int_to_ptr.vmem [resolvable:$true] %s222_s14 }
  0x1b   : > { %6913 = sst [smem:[#allocation24_spill]] %s6912_s11  ;;  %p3906_p9 = pneg %p4988_p8 }
  0x1c   : > { %s6914_s12 = scalar_select %p4988_p8, 1, 0 }
  0x1d   : > { %p4998_p10 = pnand %p3906_p9, %p6794_p0  ;;  %s4862_s16 = smov [#allocation8]  }
  0x1e   : > { %6915 = sst [smem:[#allocation25_spill]] %s6914_s12  ;;  %s235_s17 = sshll.u32 %s4862_s16, 4  ;;  %s5002_s17 = int_to_ptr.vmem [resolvable:$true] %s235_s17 }
  0x1f   : > { %s4863_s18 = smov [#allocation10]   ;;  %s6917_s2 = sld [smem:[#allocation126_spill]] }
  0x20   : > { %s5004_s19 = sshll.u32 %s4863_s18, 4  ;;  %p5014_p12 = pneg %p4998_p10  ;;  %s249_s19 = int_to_ptr.vmem [resolvable:$true] %s5004_s19 }
  0x25   : > { %s4549_s13 = scalar_lea.hbm %s6917_s2, 1024 }
  0x26   : > { %p4550_p11 = scmp.ne.s32.totalorder %s6917_s2, %s4549_s13  ;;  %p4556_p3 = scmp.lt.u32.totalorder %s4549_s13, %s6917_s2 }
  0x28   : > { %p4552_p13 = pnand %p5014_p12, %p4550_p11 }
  0x2a   : > { %p4553_p1 = pneg %p4552_p13 }
  0x2c   : > { %p4558_p5 = pnand %p4556_p3, %p4553_p1 }
  0x2e   : > { %4561 = shalt.err (!%p4558_p5)
}
  0x2f   : > { %s4562_s21 = scalar_lea.vmem %s4992_s14, 1024  ;;  %p4570_p0 = scmp.lt.s32.totalorder %s4992_s14, %s4992_s14 }
  0x30   : > { %p4563_p7 = scmp.ne.s32.totalorder %s4992_s14, %s4562_s21  ;;  %p4571_p6 = scmp.lt.s32.totalorder %s4562_s21, %s4562_s21 }
  0x32   : > { %p4565_p9 = pnand %p4563_p7, %p5014_p12  ;;  %p4572_p11 = por %p4571_p6, %p4570_p0 }
  0x34   : > { %p4566_p2 = pneg %p4565_p9 }
  0x36   : > { %p4573_p13 = pnand %p4572_p11, %p4566_p2 }
  0x38   : > { %4576 = shalt.err (!%p4573_p13)
}
  0x39   : > { %s4864_s11 = smov 64   ;;  %s4865_s20 = smov 4  }
  0x3a   : > { %3909 = dma.hbm_to_vmem [thread:$0]  (!%p4998_p10), %s6917_s2, 1024, %s4992_s14, [#allocation6], %s4864_s11, %s4864_s11, %s4865_s20  }
  0x3b   : > { %s4577_s21 = scalar_lea.hbm %s6787_s3, 2048 }
  0x3c   : > { %p4578_p0 = scmp.ne.s32.totalorder %s6787_s3, %s4577_s21  ;;  %p4584_p1 = scmp.lt.u32.totalorder %s4577_s21, %s6787_s3 }
  0x3e   : > { %p4580_p2 = pnand %p4578_p0, %p5014_p12 }
  0x40   : > { %p4581_p6 = pneg %p4580_p2 }
  0x42   : > { %p4586_p3 = pnand %p4584_p1, %p4581_p6 }
  0x44   : > { %4589 = shalt.err (!%p4586_p3)
}
  0x45   : > { %s4590_s14 = scalar_lea.vmem %s5002_s17, 2048  ;;  %p4598_p11 = scmp.lt.s32.totalorder %s5002_s17, %s5002_s17 }
  0x46   : > { %p4591_p5 = scmp.ne.s32.totalorder %s5002_s17, %s4590_s14  ;;  %p4599_p13 = scmp.lt.s32.totalorder %s4590_s14, %s4590_s14 }
  0x48   : > { %p4593_p7 = pnand %p4591_p5, %p5014_p12  ;;  %p4600_p0 = por %p4599_p13, %p4598_p11 }
  0x4a   : > { %p4594_p9 = pneg %p4593_p7 }
  0x4c   : > { %p4601_p2 = pnand %p4600_p0, %p4594_p9 }
  0x4e   : > { %4604 = shalt.err (!%p4601_p2)
}
  0x4f   : > { %3912 = dma.hbm_to_vmem [thread:$0]  (!%p4998_p10), %s6787_s3, 2048, %s5002_s17, [#allocation9], %s4864_s11, %s4864_s11, %s4865_s20  }
  0x50   : > { %s4605_s9 = scalar_lea.hbm %s6788_s4, 1024 }
  0x51   : > { %p4606_p6 = scmp.ne.s32.totalorder %s6788_s4, %s4605_s9  ;;  %p4612_p5 = scmp.lt.u32.totalorder %s4605_s9, %s6788_s4 }
  0x53   : > { %p4608_p1 = pnand %p4606_p6, %p5014_p12 }
  0x55   : > { %p4609_p3 = pneg %p4608_p1 }
  0x57   : > { %p4614_p7 = pnand %p4612_p5, %p4609_p3 }
  0x59   : > { %4617 = shalt.err (!%p4614_p7)
}
  0x5a   : > { %s4618_s14 = scalar_lea.vmem %s249_s19, 1024  ;;  %p4626_p0 = scmp.lt.s32.totalorder %s249_s19, %s249_s19 }
  0x5b   : > { %p4619_p9 = scmp.ne.s32.totalorder %s249_s19, %s4618_s14  ;;  %p4627_p2 = scmp.lt.s32.totalorder %s4618_s14, %s4618_s14 }
  0x5d   : > { %p4621_p11 = pnand %p4619_p9, %p5014_p12  ;;  %p4628_p4 = por %p4627_p2, %p4626_p0 }
  0x5f   : > { %p4622_p13 = pneg %p4621_p11 }
  0x61   : > { %p4629_p8 = pnand %p4628_p4, %p4622_p13 }
  0x63   : > { %4632 = shalt.err (!%p4629_p8)
}
  0x64   : > { %3915 = dma.hbm_to_vmem [thread:$0]  (!%p4998_p10), %s6788_s4, 1024, %s249_s19, [#allocation9], %s4864_s11, %s4864_s11, %s4865_s20  }
  0x65   : > { %s4866_s28 = smov [#allocation11]   ;;  %s4633_s13 = scalar_lea.hbm %s6789_s5, 2048 }
  0x66   : > { %s261_s10 = sshll.u32 %s4866_s28, 4  ;;  %p4634_p4 = scmp.ne.s32.totalorder %s6789_s5, %s4633_s13  ;;  %s262_s10 = int_to_ptr.vmem [resolvable:$true] %s261_s10 }
  0x67   : > { %p4640_p1 = scmp.lt.u32.totalorder %s4633_s13, %s6789_s5 }
  0x68   : > { %p4636_p8 = pnand %p4634_p4, %p5014_p12 }
  0x6a   : > { %p4637_p6 = pneg %p4636_p8 }
  0x6c   : > { %p4642_p3 = pnand %p4640_p1, %p4637_p6 }
  0x6e   : > { %4645 = shalt.err (!%p4642_p3)
}
  0x6f   : > { %s4646_s19 = scalar_lea.vmem %s262_s10, 2048  ;;  %p4654_p11 = scmp.lt.s32.totalorder %s262_s10, %s262_s10 }
  0x70   : > { %p4647_p5 = scmp.ne.s32.totalorder %s262_s10, %s4646_s19  ;;  %p4655_p13 = scmp.lt.s32.totalorder %s4646_s19, %s4646_s19 }
  0x72   : > { %p4649_p7 = pnand %p4647_p5, %p5014_p12  ;;  %p4656_p0 = por %p4655_p13, %p4654_p11 }
  0x74   : > { %p4650_p9 = pneg %p4649_p7 }
  0x76   : > { %p4657_p2 = pnand %p4656_p0, %p4650_p9 }
  0x78   : > { %4660 = shalt.err (!%p4657_p2)
}
  0x79   : > { %s6800_s11 = smov 128   ;;  %s6801_s6 = smov 8  }
  0x7a   : > { %3918 = dma.hbm_to_vmem [thread:$0]  (!%p4998_p10), %s6789_s5, 2048, %s262_s10, [#allocation12], %s6800_s11, %s6800_s11, %s6801_s6  }
  0x7b   : > { %s36_s27 = sadd.s32 1, %s4851_s29  ;;  %s39_s28 = sadd.s32 1, %s4855_s30 }
  0x7c   : > { %p37_p12 = scmp.ge.s32.totalorder %s36_s27, 2  ;;  %s46_s12 = sadd.s32 1, %s4839_s26 }
  0x7d   : > { %p53_p4 = scmp.ne.s32.totalorder %s4839_s26, %s4835_s25  ;;  %p6803_p8 = scmp.eq.s32.totalorder %s4859_s7, 0 }
  0x7e   : > { %s7219_s27 = smov (%p37_p12, %s36_s27), 0  ;;  %s7221_s28 = smov (!%p37_p12, %s39_s28), %s4855_s30 }
  0x7f   : > { %p5118_p6 = por %p6803_p8, %p53_p4  ;;  %p59_p10 = scmp.ne.s32.totalorder %s4835_s25, %s4831_s24 }
  0x80   : > { %p41_p1 = scmp.ge.s32.totalorder %s7221_s28, 2  ;;  %s70_s10 = ssub.s32 %s4851_s29, %s7219_s27 }
  0x81   : > { %p6920_p3 = scmp.eq.s32.totalorder %s4969_s8, 0  ;;  %p6802_p7 = scmp.lt.s32.totalorder %s4859_s7, 4 }
  0x82   : > { %s7223_s28 = smov (%p41_p1, %s7221_s28), 0  ;;  %s275_s13 = sand.u32 1, %s4839_s26  }
  0x83   : > { %p5128_p5 = por %p6920_p3, %p59_p10  ;;  %s3771_s16 = sshll.u32 %s4855_s30, 12 }
  0x84   : > { %s43_s18 = ssub.s32 %s4855_s30, %s7223_s28  ;;  %s3688_s24 = sshll.u32 %s275_s13, 8 }
  0x85   : > { %p44_p9 = scmp.eq.s32.totalorder %s43_s18, 0  ;;  %s5139_s21 = sor.u32 %s70_s10, %s43_s18 }
  0x86   : > { %s6922_s0 = sld [smem:[#allocation125_spill]]  ;;  %s279_s11 = scalar_lea.vmem [#allocation2], %s3688_s24 }
  0x87   : > { %s5143_s14 = scalar_select %p44_p9, %s4839_s26, %s46_s12  }
  0x88   : > { %s286_s6 = sshll.u32 %s279_s11, 4  ;;  %p5154_p13 = pnand %p6802_p7, %p5118_p6  ;;  %s5158_s6 = int_to_ptr.vmem [resolvable:$true] %s286_s6 }
  0x89   : > { %s5160_s12 = scalar_lea.sflag [#allocation3], %s275_s13 }
  0x8a   : > { %p4663_p2 = pneg %p5154_p13 }
  0x8c   : > { %s5148_s17 = scalar_lea.hbm %s6922_s0, %s3771_s16  ;;  %s4666_s18 = scalar_lea.hbm %s6922_s0, 8192 }
  0x8d   : > { %s4661_s16 = scalar_lea.hbm %s5148_s17, 4096  ;;  %p4667_p6 = scmp.lt.u32.totalorder %s5148_s17, %s6922_s0 }
  0x8e   : > { %p4662_p0 = scmp.ne.s32.totalorder %s5148_s17, %s4661_s16  ;;  %p4668_p10 = scmp.lt.u32.totalorder %s4666_s18, %s4661_s16 }
  0x8f   : > { %p4670_p3 = scmp.lt.u32.totalorder %s4661_s16, %s5148_s17 }
  0x90   : > { %p4664_p12 = pnand %p4663_p2, %p4662_p0  ;;  %p4669_p1 = por %p4668_p10, %p4667_p6 }
  0x92   : > { %p4665_p4 = pneg %p4664_p12  ;;  %p4671_p9 = por %p4670_p3, %p4669_p1 }
  0x94   : > { %p4672_p7 = pnand %p4671_p9, %p4665_p4 }
  0x96   : > { %4675 = shalt.err (!%p4672_p7)
}
  0x97   : > { %s4676_s13 = scalar_lea.vmem %s5158_s6, 4096  ;;  %s4869_s20 = smov [#allocation2]  }
  0x98   : > { %p4677_p0 = scmp.ne.s32.totalorder %s5158_s6, %s4676_s13  ;;  %s4681_s11 = sshll.u32 %s4869_s20, 4  ;;  %s4682_s11 = int_to_ptr.vmem [resolvable:$false] %s4681_s11 }
  0x99   : > { %s4683_s15 = scalar_lea.vmem %s4682_s11, 8192  ;;  %p4684_p11 = scmp.lt.s32.totalorder %s5158_s6, %s4682_s11 }
  0x9a   : > { %p4679_p12 = pnand %p4677_p0, %p4663_p2  ;;  %p4685_p6 = scmp.lt.s32.totalorder %s4683_s15, %s4676_s13 }
  0x9c   : > { %p4680_p8 = pneg %p4679_p12  ;;  %p4686_p10 = por %p4685_p6, %p4684_p11 }
  0x9e   : > { %p4687_p1 = pnand %p4686_p10, %p4680_p8 }
  0xa0   : > { %4690 = shalt.err (!%p4687_p1)
}
  0xa1   : > { %s4870_s16 = smov 256   ;;  %s4871_s18 = smov 16  }
  0xa2   : > { %3922 = dma.hbm_to_vmem [thread:$0]  (!%p5154_p13), %s5148_s17, 4096, %s5158_s6, %s5160_s12, %s4870_s16, %s4870_s16, %s4871_s18  }
  0xa3   : > { %s296_s24 = sand.u32 1, %s4859_s7   ;;  %s74_s19 = sadd.s32 1, %s4827_s23 }
  0xa4   : > { %p81_p8 = scmp.ne.s32.totalorder %s4827_s23, %s4823_s22  ;;  %p6924_p7 = scmp.eq.s32.totalorder %s5139_s21, 0 }
  0xa5   : > { %p6925_p11 = scmp.eq.s32.totalorder %s4859_s7, 0  ;;  %p6926_p4 = scmp.eq.s32.totalorder %s4969_s8, 3 }
  0xa6   : > { %s5197_s13 = scalar_select %p6924_p7, %s4827_s23, %s74_s19  }
  0xa7   : > { %p83_p2 = por %p81_p8, %p6925_p11  ;;  %p5203_p3 = por %p6926_p4, %p81_p8 }
  0xa8   : > { %s298_s11 = sand.u32 1, %s4827_s23   ;;  %s3692_s15 = sshll.u32 %s4855_s30, 5 }
  0xa9   : > { %s6927_s20 = scalar_select %p5203_p3, 1, 0 }
  0xaa   : > { %s3691_s10 = sshll.u32 %s298_s11, 7  ;;  %s305_s0 = sadd.s32 %s4851_s29, %s3692_s15 }
  0xab   : > { %s3693_s2 = sshll.u32 %s305_s0, 7  ;;  %s300_s21 = scalar_lea.vmem [#allocation5], %s3691_s10 }
  0xac   : > { %s5213_s12 = scalar_lea.hbm %s6785_s1, %s3693_s2  ;;  %s308_s18 = sshll.u32 %s300_s21, 4  ;;  %s5215_s18 = int_to_ptr.vmem [resolvable:$true] %s308_s18 }
  0xad   : > { %p6928_p13 = scmp.lt.s32.totalorder %s4859_s7, 4  ;;  %s5223_s0 = scalar_lea.sflag [#allocation6], %s296_s24 }
  0xae   : > { %s4691_s11 = scalar_lea.hbm %s5213_s12, 2048  ;;  %s4696_s10 = scalar_lea.hbm %s6785_s1, 8192 }
  0xaf   : > { %p5219_p9 = pnand %p6928_p13, %p83_p2  ;;  %p4692_p0 = scmp.ne.s32.totalorder %s5213_s12, %s4691_s11 }
  0xb0   : > { %p4697_p1 = scmp.lt.u32.totalorder %s5213_s12, %s6785_s1  ;;  %p4698_p8 = scmp.lt.u32.totalorder %s4696_s10, %s4691_s11 }
  0xb1   : > { %p4693_p12 = pneg %p5219_p9  ;;  %p4700_p11 = scmp.lt.u32.totalorder %s4691_s11, %s5213_s12 }
  0xb2   : > { %p4699_p7 = por %p4698_p8, %p4697_p1 }
  0xb3   : > { %p4694_p6 = pnand %p4693_p12, %p4692_p0 }
  0xb4   : > { %p4701_p2 = por %p4700_p11, %p4699_p7 }
  0xb5   : > { %p4695_p10 = pneg %p4694_p6 }
  0xb7   : > { %p4702_p4 = pnand %p4701_p2, %p4695_p10 }
  0xb9   : > { %4705 = shalt.err (!%p4702_p4)
}
  0xba   : > { %s4706_s24 = scalar_lea.vmem %s5215_s18, 2048  ;;  %s4872_s21 = smov [#allocation5]  }
  0xbb   : > { %p4707_p13 = scmp.ne.s32.totalorder %s5215_s18, %s4706_s24  ;;  %s4711_s2 = sshll.u32 %s4872_s21, 4  ;;  %s4712_s2 = int_to_ptr.vmem [resolvable:$false] %s4711_s2 }
  0xbc   : > { %s4713_s15 = scalar_lea.vmem %s4712_s2, 4096  ;;  %p4714_p3 = scmp.lt.s32.totalorder %s5215_s18, %s4712_s2 }
  0xbd   : > { %p4709_p0 = pnand %p4707_p13, %p4693_p12  ;;  %p4715_p1 = scmp.lt.s32.totalorder %s4713_s15, %s4706_s24 }
  0xbf   : > { %p4710_p6 = pneg %p4709_p0  ;;  %p4716_p8 = por %p4715_p1, %p4714_p3 }
  0xc1   : > { %p4717_p7 = pnand %p4716_p8, %p4710_p6 }
  0xc3   : > { %4720 = shalt.err (!%p4717_p7)
}
  0xc4   : > { %s6930_s11 = smov 8   ;;  %s6931_s10 = smov 128  }
  0xc5   : > { %3925 = dma.hbm_to_vmem [thread:$0]  (!%p5219_p9), %s5213_s12, 2048, %s5215_s18, %s5223_s0, %s4870_s16, %s6931_s10, %s6930_s11  }
  0xc6   : > { %s6932_s6 = sld [smem:[#allocation25_spill]] }
  0xcc   : > { %p6933_p12 = scmp.ne.s32.totalorder %s6932_s6, 0 }
  0xce   : > { %320 = sbr.rel (%p6933_p12) target bundleno = 1680 (0x690), region = 44 }
  0xd5   : > { %s322_s17 = sand.u32 1, %s4835_s25  }
  0xd6   : > { %s3695_s21 = sshll.u32 %s322_s17, 8  ;;  %s323_s24 = scalar_lea.sflag [#allocation3], %s322_s17 }
  0xd7   : > { %s5257_s2 = scalar_lea.vmem [#allocation2], %s3695_s21 }
  0xd8   : > { %4794 = dma.done.wait (%p5128_p5), %s323_s24, 4096  }
  0xd9   : > { %4796 = vsyncadd (%p5128_p5), %s323_s24, 4294963200  ;;  %s6934_s19 = sld [smem:[#allocation23_spill]]  ;;  %s331_s16 = sand.u32 1, %s4969_s8  }
  0xda   : > { %s333_s12 = sand.u32 1, %s4823_s22   ;;  %s332_s0 = scalar_lea.sflag [#allocation6], %s331_s16 }
  0xdb   : > { %s5267_s18 = sshll.u32 %s333_s12, 7 }
  0xdc   : > { %s5270_s15 = scalar_lea.vmem [#allocation5], %s5267_s18 }
  0xdf   : > { %p6935_p3 = scmp.ne.s32.totalorder %s6934_s19, 0 }
  0xe1   : > { %4798 = dma.done.wait (%p6935_p3), %s332_s0, 2048  }
  0xe2   : > { %4800 = vsyncadd (%p6935_p3), %s332_s0, 4294965248  ;;  %p6936_p5 = scmp.eq.s32.totalorder %s4969_s8, 0 }
  0xe4   : > { %4802 = dma.done.wait (%p6936_p5), [#allocation6], 1024   ;;  %p6937_p9 = pmov %p6936_p5 }
  0xe5   : > { %p6938_p10 = pmov %p6936_p5 }
  0xe6   : > { %4804 = vsyncadd (%p6937_p9), [#allocation6], 4294966272 }
  0xe7   : > { %4806 = dma.done.wait (%p6938_p10), [#allocation9], 3072   ;;  %p6939_p11 = pmov %p6936_p5 }
  0xe8   : > { %p6940_p2 = pmov %p6936_p5 }
  0xe9   : > { %4808 = vsyncadd (%p6939_p11), [#allocation9], 4294964224 }
  0xea   : > { %4810 = dma.done.wait (%p6940_p2), [#allocation12], 2048   ;;  %p6941_p4 = pmov %p6940_p2 }
  0xeb   : > { %v4873_v0 = vmov 0   ;;  %v434_v1 = vld [vmem:[%s5270_s15] sm:$0xff]  ;;  %v435_v2 = vld [vmem:[%s5270_s15 + $0x8] sm:$0xff]  ;;  %v436_v3 = vld [vmem:[%s5270_s15 + $0x10] sm:$0xff]  ;;  %vm1116_vm0 = vcmask 261120   ;;  %vm2848_vm1 = vcmask 130112  }
  0xec   : > { %4812 = vsyncadd (%p6941_p4), [#allocation12], 4294965248  ;;  %789 = vmatprep.mubr.bf16.mxu1 %v4873_v0  ;;  %v450_v4 = vpack.c.bf16 %v435_v2, %v434_v1  ;;  %v437_v5 = vld [vmem:[%s5270_s15 + $0x18] sm:$0xff]  ;;  %v438_v7 = vld [vmem:[%s5270_s15 + $0x20] sm:$0xff]  ;;  %vm2855_vm2 = vcmask 195712   ;;  %vm2862_vm3 = vcmask 261312  }
  0xed   : > { %v451_v6 = vpack.c.bf16 %v437_v5, %v436_v3  ;;  %v439_v8 = vld [vmem:[%s5270_s15 + $0x28] sm:$0xff]  ;;  %v440_v9 = vld [vmem:[%s5270_s15 + $0x30] sm:$0xff]  ;;  %v441_v11 = vld [vmem:[%s5270_s15 + $0x38] sm:$0xff]  ;;  %vm2869_vm4 = vcmask 326912   ;;  %vm2876_vm5 = vcmask 392512   ;;  %vm2883_vm6 = vcmask 458112  }
  0xee   : > { %3804 = vmatprep.subr.bf16.mxu0 %v450_v4  ;;  %v452_v10 = vpack.c.bf16 %v439_v8, %v438_v7  ;;  %v4133_v12 = vld [vmem:[#allocation7] sm:$0xff]   ;;  %v453_v14 = vpack.c.bf16 %v441_v11, %v440_v9  ;;  %v443_v15 = vld [vmem:[%s5270_s15 + $0x48] sm:$0xff]  ;;  %v389_v17 = vld [vmem:[%s5257_s2 + $0x18] sm:$0xff]  ;;  %vm2890_vm7 = vcmask 523712   ;;  %vm2897_vm8 = vcmask 589312   ;;  %s6693_s8 = scalar_lea.vmem [#allocation13], %s5267_s18 }
  0xef   : > { %3805 = vmatpush3.bf16.msra.mxu0 %v450_v4  ;;  %v442_v13 = vld [vmem:[%s5270_s15 + $0x40] sm:$0xff]  ;;  %3820 = vmatprep.mubr.bf16.mxu0 %v4133_v12  ;;  %v387_v16 = vld [vmem:[%s5257_s2 + $0x8] sm:$0xff]  ;;  %v388_v20 = vld [vmem:[%s5257_s2 + $0x10] sm:$0xff]  ;;  %vm2904_vm9 = vcmask 654912   ;;  %vm2911_vm10 = vcmask 720512   ;;  %vm2918_vm11 = vcmask 786112  }
  0xf0   : > { %3806 = vmatprep.subr.bf16.mxu0 %v451_v6  ;;  %v5301_v18 = vpack.c.bf16 %v389_v17, %v387_v16  ;;  %v386_v19 = vld [vmem:[%s5257_s2] sm:$0xff]  ;;  %v391_v21 = vld [vmem:[%s5257_s2 + $0x28] sm:$0xff]  ;;  %v393_v23 = vld [vmem:[%s5257_s2 + $0x38] sm:$0xff]  ;;  %v454_v27 = vpack.c.bf16 %v443_v15, %v442_v13  ;;  %vm2925_vm12 = vcmask 851712   ;;  %vm2932_vm13 = vcmask 917312   ;;  %s7199_s9 = sld [smem:[#allocation22_spill]] }
  0xf1   : > { %v5306_v22 = vpack.c.bf16 %v388_v20, %v386_v19  ;;  %v5310_v24 = vpack.c.bf16 %v393_v23, %v391_v21  ;;  %v390_v25 = vld [vmem:[%s5257_s2 + $0x20] sm:$0xff]  ;;  %v392_v26 = vld [vmem:[%s5257_s2 + $0x30] sm:$0xff]  ;;  %v395_v28 = vld [vmem:[%s5257_s2 + $0x48] sm:$0xff]  ;;  %vm2939_vm14 = vcmask 982912   ;;  %vm2946_vm15 = vcmask 1048512   ;;  %s7200_s11 = sld [smem:[#allocation21_spill]] }
  0xf2   : > { %3868 = vmatprep.subr.bf16.mxu1 %v5301_v18  ;;  %v397_v29 = vld [vmem:[%s5257_s2 + $0x58] sm:$0xff]  ;;  %v444_v30 = vld [vmem:[%s5270_s15 + $0x50] sm:$0xff]  ;;  %v5320_v32 = vpack.c.bf16 %v392_v26, %v390_v25  ;;  %v394_v34 = vld [vmem:[%s5257_s2 + $0x40] sm:$0xff]  ;;  %s3531_s21 = sshll.u32 %s6693_s8, 4  ;;  %s7201_s19 = sld [smem:[#allocation127_spill]]  ;;  %s6716_s21 = int_to_ptr.vmem [resolvable:$true] %s3531_s21 }
  0xf3   : > { %3807 = vmatpush3.bf16.msra.mxu0 %v451_v6  ;;  %3876 = vmatpush1.bf16.msra.mxu1 %v5306_v22  ;;  %v445_v31 = vld [vmem:[%s5270_s15 + $0x58] sm:$0xff]  ;;  %v5322_v33 = vpack.c.bf16 %v397_v29, %v395_v28  ;;  %v396_v35 = vld [vmem:[%s5257_s2 + $0x50] sm:$0xff]  ;;  %v399_v37 = vld [vmem:[%s5257_s2 + $0x68] sm:$0xff]  ;;  %s6723_s18 = scalar_lea.sflag [#allocation4], %s333_s12  ;;  %s4721_s0 = scalar_lea.vmem %s6716_s21, 2048 }
  0xf4   : > { %3808 = vmatprep.subr.bf16.mxu0 %v452_v10  ;;  %3869 = vmatprep.subr.bf16.mxu1 %v5310_v24  ;;  %v455_v36 = vpack.c.bf16 %v445_v31, %v444_v30  ;;  %v401_v38 = vld [vmem:[%s5257_s2 + $0x78] sm:$0xff]  ;;  %v446_v39 = vld [vmem:[%s5270_s15 + $0x60] sm:$0xff]  ;;  %v447_v40 = vld [vmem:[%s5270_s15 + $0x68] sm:$0xff]  ;;  %v5332_v41 = vpack.c.bf16 %v396_v35, %v394_v34  ;;  %p4722_p13 = scmp.ne.s32.totalorder %s6716_s21, %s4721_s0  ;;  %p7202_p0 = scmp.ne.s32.totalorder %s6927_s20, 0 }
  0xf5   : > { %v398_v42 = vld [vmem:[%s5257_s2 + $0x60] sm:$0xff]  ;;  %v425_v43 = vpack.c.bf16 %v401_v38, %v399_v37  ;;  %v400_v44 = vld [vmem:[%s5257_s2 + $0x70] sm:$0xff]  ;;  %v456_v45 = vpack.c.bf16 %v447_v40, %v446_v39  ;;  %v403_v46 = vld [vmem:[%s5257_s2 + $0x88] sm:$0xff] }
  0xf6   : > { %v405_v47 = vld [vmem:[%s5257_s2 + $0x98] sm:$0xff]  ;;  %v448_v48 = vld [vmem:[%s5270_s15 + $0x70] sm:$0xff]  ;;  %v424_v50 = vpack.c.bf16 %v400_v44, %v398_v42  ;;  %v402_v51 = vld [vmem:[%s5257_s2 + $0x80] sm:$0xff]  ;;  %s3767_s10 = sshll.u32 %s7199_s9, 5  ;;  %p4723_p6 = pnand %p4722_p13, %p7202_p0 }
  0xf7   : > { %3809 = vmatpush3.bf16.msra.mxu0 %v452_v10  ;;  %3877 = vmatpush1.bf16.msra.mxu1 %v5320_v32  ;;  %v449_v49 = vld [vmem:[%s5270_s15 + $0x78] sm:$0xff]  ;;  %v404_v52 = vld [vmem:[%s5257_s2 + $0x90] sm:$0xff]  ;;  %v427_v53 = vpack.c.bf16 %v405_v47, %v403_v46  ;;  %v407_v54 = vld [vmem:[%s5257_s2 + $0xa8] sm:$0xff]  ;;  %s3528_s6 = sadd.s32 %s7200_s11, %s3767_s10  ;;  %s4874_s15 = smov [#allocation13]  }
  0xf8   : > { %3810 = vmatprep.subr.bf16.mxu0 %v453_v14  ;;  %3870 = vmatprep.subr.bf16.mxu1 %v5322_v33  ;;  %v457_v55 = vpack.c.bf16 %v449_v49, %v448_v48  ;;  %v409_v56 = vld [vmem:[%s5257_s2 + $0xb8] sm:$0xff]  ;;  %v406_v57 = vld [vmem:[%s5257_s2 + $0xa0] sm:$0xff]  ;;  %v426_v58 = vpack.c.bf16 %v404_v52, %v402_v51  ;;  %v408_v59 = vld [vmem:[%s5257_s2 + $0xb0] sm:$0xff]  ;;  %s3768_s17 = sshll.u32 %s3528_s6, 7  ;;  %p4724_p1 = pneg %p4723_p6 }
  0xf9   : > { %v429_v60 = vpack.c.bf16 %v409_v56, %v407_v54  ;;  %v411_v61 = vld [vmem:[%s5257_s2 + $0xc8] sm:$0xff]  ;;  %v413_v63 = vld [vmem:[%s5257_s2 + $0xd8] sm:$0xff]  ;;  %v4135_v1 = vld [vmem:[#allocation7 + $0x10] sm:$0xff]   ;;  %v428_v4 = vpack.c.bf16 %v408_v59, %v406_v57  ;;  %s6713_s16 = scalar_lea.hbm %s7201_s19, %s3768_s17  ;;  %s4725_s9 = sshll.u32 %s4874_s15, 4  ;;  %s4726_s9 = int_to_ptr.vmem [resolvable:$false] %s4725_s9 }
  0xfa   : > { %v4134_v62 = vld [vmem:[#allocation7 + $0x8] sm:$0xff]   ;;  %v410_v2 = vld [vmem:[%s5257_s2 + $0xc0] sm:$0xff]  ;;  %v412_v3 = vld [vmem:[%s5257_s2 + $0xd0] sm:$0xff]  ;;  %v431_v7 = vpack.c.bf16 %v413_v63, %v411_v61  ;;  %s4727_s11 = scalar_lea.vmem %s4726_s9, 4096  ;;  %p4728_p8 = scmp.lt.s32.totalorder %s6716_s21, %s4726_s9 }
  0xfb   : > { %3811 = vmatpush3.bf16.msra.mxu0 %v453_v14  ;;  %3878 = vmatpush1.bf16.msra.mxu1 %v5332_v41  ;;  %v415_v5 = vld [vmem:[%s5257_s2 + $0xe8] sm:$0xff]  ;;  %v417_v6 = vld [vmem:[%s5257_s2 + $0xf8] sm:$0xff]  ;;  %v414_v8 = vld [vmem:[%s5257_s2 + $0xe0] sm:$0xff]  ;;  %v430_v10 = vpack.c.bf16 %v412_v3, %v410_v2  ;;  %p4729_p7 = scmp.lt.s32.totalorder %s4727_s11, %s4721_s0 }
  0xfc   : > { %3812 = vmatprep.subr.bf16.mxu0 %v454_v27  ;;  %3871 = vmatprep.subr.bf16.mxu1 %v425_v43  ;;  %v416_v9 = vld [vmem:[%s5257_s2 + $0xf0] sm:$0xff]  ;;  %v433_v11 = vpack.c.bf16 %v417_v6, %v415_v5  ;;  %v4136_v12 = vld [vmem:[#allocation7 + $0x18] sm:$0xff]   ;;  %v4137_v13 = vld [vmem:[#allocation7 + $0x20] sm:$0xff]  }
  0xfd   : > { %v432_v14 = vpack.c.bf16 %v416_v9, %v414_v8  ;;  %v4142_v15 = vld [vmem:[#allocation8 + $0x8] sm:$0xff]   ;;  %v4139_v17 = vld [vmem:[#allocation7 + $0x30] sm:$0xff]   ;;  %v4140_v19 = vld [vmem:[#allocation7 + $0x38] sm:$0xff]   ;;  %p4730_p12 = por %p4729_p7, %p4728_p8 }
  0xfe   : > { %v4138_v16 = vld [vmem:[#allocation7 + $0x28] sm:$0xff]   ;;  %v4144_v20 = vld [vmem:[#allocation8 + $0x18] sm:$0xff]   ;;  %v4141_v21 = vld [vmem:[#allocation8] sm:$0xff]  }
  0xff   : > { %3813 = vmatpush3.bf16.msra.mxu0 %v454_v27  ;;  %3879 = vmatpush1.bf16.msra.mxu1 %v424_v50  ;;  %v4146_v23 = vld [vmem:[#allocation8 + $0x28] sm:$0xff]   ;;  %v4148_v25 = vld [vmem:[#allocation8 + $0x38] sm:$0xff]   ;;  %p4731_p3 = pnand %p4730_p12, %p4724_p1 }
 0x100   : > { %3814 = vmatprep.subr.bf16.mxu0 %v455_v36  ;;  %3872 = vmatprep.subr.bf16.mxu1 %v427_v53 }
 0x103   : > { %3815 = vmatpush3.bf16.msra.mxu0 %v455_v36  ;;  %3880 = vmatpush1.bf16.msra.mxu1 %v426_v58 }
 0x104   : > { %3816 = vmatprep.subr.bf16.mxu0 %v456_v45  ;;  %3873 = vmatprep.subr.bf16.mxu1 %v429_v60 }
 0x107   : > { %3817 = vmatpush3.bf16.msra.mxu0 %v456_v45  ;;  %3881 = vmatpush1.bf16.msra.mxu1 %v428_v4 }
 0x108   : > { %3818 = vmatprep.subr.bf16.mxu0 %v457_v55  ;;  %3874 = vmatprep.subr.bf16.mxu1 %v431_v7 }
 0x10b   : > { %3819 = vmatpush3.bf16.msra.mxu0 %v457_v55  ;;  %3882 = vmatpush1.bf16.msra.mxu1 %v430_v10 }
 0x10c   : > { %747 = vmatprep.subr.bf16.mxu0 %v5301_v18  ;;  %3875 = vmatprep.subr.bf16.mxu1 %v433_v11  ;;  %v4143_v18 = vld [vmem:[#allocation8 + $0x10] sm:$0xff]  }
 0x10e   : > { %3821 = vmatmul.mubr.bf16.vlgmr.msra.gmra.mrb[0].mxu0 %v4134_v62 }
 0x10f   : > { %3824 = vmatprep.mubr.bf16.mxu0 %v4135_v1  ;;  %748 = vmatpush1.bf16.msra.mxu0 %v5306_v22  ;;  %v4145_v22 = vld [vmem:[#allocation8 + $0x20] sm:$0xff]  }
 0x110   : > { %749 = vmatprep.subr.bf16.mxu0 %v5310_v24  ;;  %3883 = vmatpush1.bf16.msra.mxu1 %v432_v14  ;;  %v4147_v24 = vld [vmem:[#allocation8 + $0x30] sm:$0xff]  }
 0x113   : > { %750 = vmatpush1.bf16.msra.mxu0 %v5320_v32  ;;  %790 = vmatmul.mubr.bf16.vlgmr.msra.gmra.mrb[0].mxu1 %v4142_v15 }
 0x114   : > { %751 = vmatprep.subr.bf16.mxu0 %v5322_v33  ;;  %799 = vmatprep.mubr.bf16.mxu1 %v4873_v0 }
 0x116   : > { %3825 = vmatmul.mubr.bf16.gmra.mrb[4].mxu0 %v4136_v12 }
 0x117   : > { %752 = vmatpush1.bf16.msra.mxu0 %v5332_v41  ;;  %3828 = vmatprep.mubr.bf16.mxu0 %v4137_v13  ;;  %v4149_v13 = vld [vmem:[#allocation8 + $0x40] sm:$0xff]  }
 0x118   : > { %753 = vmatprep.subr.bf16.mxu0 %v425_v43 }
 0x11b   : > { %754 = vmatpush1.bf16.msra.mxu0 %v424_v50  ;;  %800 = vmatmul.mubr.bf16.gmra.mrb[4].mxu1 %v4143_v18 }
 0x11c   : > { %755 = vmatprep.subr.bf16.mxu0 %v427_v53  ;;  %809 = vmatprep.mubr.bf16.mxu1 %v4873_v0 }
 0x11e   : > { %3829 = vmatmul.mubr.bf16.gmra.mrb[8].mxu0 %v4138_v16 }
 0x11f   : > { %756 = vmatpush1.bf16.msra.mxu0 %v426_v58  ;;  %3832 = vmatprep.mubr.bf16.mxu0 %v4139_v17 }
 0x120   : > { %757 = vmatprep.subr.bf16.mxu0 %v429_v60 }
 0x123   : > { %758 = vmatpush1.bf16.msra.mxu0 %v428_v4  ;;  %810 = vmatmul.mubr.bf16.gmra.mrb[8].mxu1 %v4144_v20  ;;  %v4150_v20 = vld [vmem:[#allocation8 + $0x48] sm:$0xff]  }
 0x124   : > { %759 = vmatprep.subr.bf16.mxu0 %v431_v7  ;;  %819 = vmatprep.mubr.bf16.mxu1 %v4873_v0 }
 0x126   : > { %3833 = vmatmul.mubr.bf16.gmra.mrb[12].mxu0 %v4140_v19 }
 0x127   : > { %760 = vmatpush1.bf16.msra.mxu0 %v430_v10  ;;  %779 = vmatprep.mubr.bf16.mxu0 %v4873_v0 }
 0x128   : > { %761 = vmatprep.subr.bf16.mxu0 %v433_v11 }
 0x12b   : > { %762 = vmatpush1.bf16.msra.mxu0 %v432_v14  ;;  %820 = vmatmul.mubr.bf16.gmra.mrb[12].mxu1 %v4145_v22 }
 0x12c   : > { %829 = vmatprep.mubr.bf16.mxu1 %v4873_v0 }
 0x12e   : > { %780 = vmatmul.mubr.bf16.vlgmr.msra.gmra.mrb[16].mxu0 %v4141_v21 }
 0x12f   : > { %1173 = vmatprep.mubr.bf16.mxu0 %v4873_v0 }
 0x133   : > { %830 = vmatmul.mubr.bf16.gmra.mrb[16].mxu1 %v4146_v23 }
 0x134   : > { %839 = vmatprep.mubr.bf16.mxu1 %v4873_v0 }
 0x13b   : > { %840 = vmatmul.mubr.bf16.gmra.mrb[20].mxu1 %v4147_v24 }
 0x13c   : > { %849 = vmatprep.mubr.bf16.mxu1 %v4873_v0 }
 0x143   : > { %850 = vmatmul.mubr.bf16.gmra.mrb[24].mxu1 %v4148_v25 }
 0x144   : > { %859 = vmatprep.mubr.bf16.mxu1 %v4873_v0 }
 0x14b   : > { %860 = vmatmul.mubr.bf16.gmra.mrb[28].mxu1 %v4149_v13 }
 0x14c   : > { %869 = vmatprep.mubr.bf16.mxu1 %v4873_v0 }
 0x153   : > { %870 = vmatmul.mubr.bf16.gmra.mrb[32].mxu1 %v4150_v20 }
 0x154   : > { %879 = vmatprep.mubr.bf16.mxu1 %v4873_v0 }
 0x1e1   : > { %v3822_v26 = vpop.f32.mrb[0].mxu0 }
 0x1e2   : > { %v556_v27 = vpop.f32.mrb[1].mxu0 }
 0x1e3   : > { %940 = vxpose.xlu0.b32.start [1/4] (short) %v556_v27, 128  ;;  %v3823_v28 = vpop.f32.mrb[2].mxu0  ;;  %v4151_v27 = vld [vmem:[#allocation8 + $0x50] sm:$0xff]  }
 0x1e4   : > { %v559_v29 = vpop.f32.mrb[3].mxu0  ;;  %880 = vmatmul.mubr.bf16.gmra.mrb[36].mxu1 %v4151_v27 }
 0x1e5   : > { %889 = vmatprep.mubr.bf16.mxu1 %v4873_v0 }
 0x1e6   : > { %v791_v33 = vpop.f32.mrb[0].mxu1 }
 0x1e7   : > { %941 = vxpose.xlu0.b32.cont [2/4] (short) %v559_v29, 128  ;;  %v793_v35 = vpop.f32.mrb[1].mxu1  ;;  %v4153_v29 = vld [vmem:[#allocation8 + $0x60] sm:$0xff]  }
 0x1e8   : > { %v795_v36 = vpop.f32.mrb[2].mxu1 }
 0x1e9   : > { %v3826_v30 = vpop.f32.mrb[4].mxu0  ;;  %v1102_v37 = vpack.c.bf16 %v795_v36, %v791_v33  ;;  %v797_v38 = vpop.f32.mrb[3].mxu1 }
 0x1ea   : > { %v572_v31 = vpop.f32.mrb[5].mxu0  ;;  %v1103_v39 = vpack.c.bf16 %v797_v38, %v793_v35  ;;  %v4156_v38 = vld [vmem:[#allocation8 + $0x78] sm:$0xff]  }
 0x1eb   : > { %942 = vxpose.xlu0.b32.cont [3/4] (short) %v3822_v26, 128  ;;  %972 = vxpose.xlu1.b32.start [1/4] (short) %v572_v31, 128  ;;  %v3827_v32 = vpop.f32.mrb[6].mxu0 }
 0x1ec   : > { %v575_v34 = vpop.f32.mrb[7].mxu0 }
 0x1ee   : > { %v5374_v43 = vpop.f32.mrb[4].mxu1 }
 0x1ef   : > { %943 = vxpose.xlu0.b32.end [4/4] (short) %v3823_v28, 128  ;;  %973 = vxpose.xlu1.b32.cont [2/4] (short) %v575_v34, 128  ;;  %v803_v45 = vpop.f32.mrb[5].mxu1  ;;  %v4152_v28 = vld [vmem:[#allocation8 + $0x58] sm:$0xff]  }
 0x1f0   : > { %v5376_v46 = vpop.f32.mrb[6].mxu1  ;;  %890 = vmatmul.mubr.bf16.gmra.mrb[40].mxu1 %v4152_v28 }
 0x1f1   : > { %v5370_v40 = vpop.f32.mrb[8].mxu0  ;;  %v1104_v47 = vpack.c.bf16 %v5376_v46, %v5374_v43  ;;  %v807_v48 = vpop.f32.mrb[7].mxu1  ;;  %899 = vmatprep.mubr.bf16.mxu1 %v4873_v0 }
 0x1f2   : > { %v588_v41 = vpop.f32.mrb[9].mxu0  ;;  %v1105_v49 = vpack.c.bf16 %v807_v48, %v803_v45 }
 0x1f3   : > { %974 = vxpose.xlu1.b32.cont [3/4] (short) %v3826_v30, 128  ;;  %v5372_v42 = vpop.f32.mrb[10].mxu0  ;;  %v4154_v30 = vld [vmem:[#allocation8 + $0x68] sm:$0xff]  }
 0x1f4   : > { %v591_v44 = vpop.f32.mrb[11].mxu0 }
 0x1f6   : > { %v5381_v55 = vpop.f32.mrb[8].mxu1 }
 0x1f7   : > { %975 = vxpose.xlu1.b32.end [4/4] (short) %v3827_v32, 128  ;;  %v5384_v58 = vpop.f32.mrb[9].mxu1 }
 0x1f8   : > { %v5386_v60 = vpop.f32.mrb[10].mxu1  ;;  %900 = vmatmul.mubr.bf16.gmra.mrb[44].mxu1 %v4153_v29 }
 0x1f9   : > { %v3834_v50 = vpop.f32.mrb[12].mxu0  ;;  %v1106_v61 = vpack.c.bf16 %v5386_v60, %v5381_v55  ;;  %v5390_v62 = vpop.f32.mrb[11].mxu1  ;;  %909 = vmatprep.mubr.bf16.mxu1 %v4873_v0 }
 0x1fa   : > { %v4047_v51 = vpack.i.bf16 %v3834_v50, %v5370_v40  ;;  %v604_v52 = vpop.f32.mrb[13].mxu0  ;;  %v1107_v63 = vpack.c.bf16 %v5390_v62, %v5384_v58 }
 0x1fb   : > { %v4043_v53 = vpack.i.bf16 %v604_v52, %v588_v41  ;;  %v3835_v54 = vpop.f32.mrb[14].mxu0 }
 0x1fc   : > { %v4049_v56 = vpack.i.bf16 %v3835_v54, %v5372_v42  ;;  %v607_v57 = vpop.f32.mrb[15].mxu0 }
 0x1fd   : > { %v4045_v59 = vpack.i.bf16 %v607_v57, %v591_v44 }
 0x1fe   : > { %v821_v4 = vpop.f32.mrb[12].mxu1 }
 0x1ff   : > { %v823_v7 = vpop.f32.mrb[13].mxu1 }
 0x200   : > { %v825_v9 = vpop.f32.mrb[14].mxu1  ;;  %910 = vmatmul.mubr.bf16.gmra.mrb[48].mxu1 %v4154_v30 }
 0x201   : > { %v781_v1 = vpop.f32.mrb[16].mxu0  ;;  %v1108_v10 = vpack.c.bf16 %v825_v9, %v821_v4  ;;  %v827_v11 = vpop.f32.mrb[15].mxu1  ;;  %919 = vmatprep.mubr.bf16.mxu1 %v4873_v0 }
 0x202   : > { %v783_v2 = vpop.f32.mrb[17].mxu0  ;;  %v1109_v12 = vpack.c.bf16 %v827_v11, %v823_v7 }
 0x203   : > { %v785_v3 = vpop.f32.mrb[18].mxu0 }
 0x204   : > { %v1100_v5 = vpack.c.bf16 %v785_v3, %v781_v1  ;;  %v787_v6 = vpop.f32.mrb[19].mxu0  ;;  %1415 = vmatprep.subr.bf16.mxu1 %v1109_v12 }
 0x205   : > { %v1101_v8 = vpack.c.bf16 %v787_v6, %v783_v2  ;;  %1416 = vmatpush1.bf16.msra.mxu1 %v1108_v10 }
 0x206   : > { %v831_v14 = vpop.f32.mrb[16].mxu1 }
 0x207   : > { %1141 = vmatprep.subr.bf16.mxu0 %v1101_v8  ;;  %v833_v15 = vpop.f32.mrb[17].mxu1 }
 0x208   : > { %1142 = vmatpush1.bf16.msra.mxu0 %v1100_v5  ;;  %v835_v16 = vpop.f32.mrb[18].mxu1 }
 0x209   : > { %1143 = vmatprep.subr.bf16.mxu0 %v1103_v39  ;;  %v1110_v17 = vpack.c.bf16 %v835_v16, %v831_v14  ;;  %v837_v18 = vpop.f32.mrb[19].mxu1 }
 0x20a   : > { %v1111_v19 = vpack.c.bf16 %v837_v18, %v833_v15 }
 0x20c   : > { %1144 = vmatpush1.bf16.msra.mxu0 %v1102_v37  ;;  %1417 = vmatprep.subr.bf16.mxu1 %v1111_v19  ;;  %v4155_v37 = vld [vmem:[#allocation8 + $0x70] sm:$0xff]  }
 0x20d   : > { %1278 = vmatprep.subr.bf16.mxu0 %v1105_v49  ;;  %1418 = vmatpush1.bf16.msra.mxu1 %v1110_v17 }
 0x20e   : > { %v5396_v21 = vpop.f32.mrb[20].mxu1  ;;  %920 = vmatmul.mubr.bf16.gmra.mrb[52].mxu1 %v4155_v37 }
 0x20f   : > { %v843_v22 = vpop.f32.mrb[21].mxu1  ;;  %929 = vmatprep.mubr.bf16.mxu1 %v4873_v0 }
 0x210   : > { %v5399_v23 = vpop.f32.mrb[22].mxu1 }
 0x211   : > { %v1112_v24 = vpack.c.bf16 %v5399_v23, %v5396_v21  ;;  %v847_v25 = vpop.f32.mrb[23].mxu1 }
 0x212   : > { %v1113_v26 = vpack.c.bf16 %v847_v25, %v843_v22 }
 0x215   : > { %4131 = vset.pattern.permute.xlu1 %v4873_v0 }
 0x216   : > { %v5406_v31 = vpop.f32.mrb[24].mxu1  ;;  %930 = vmatmul.mubr.bf16.gmra.mrb[56].mxu1 %v4156_v38 }
 0x217   : > { %v5408_v32 = vpop.f32.mrb[25].mxu1  ;;  %1447 = vmatprep.mubr.bf16.mxu1 %v4873_v0 }
 0x218   : > { %v5410_v33 = vpop.f32.mrb[26].mxu1 }
 0x219   : > { %v1114_v34 = vpack.c.bf16 %v5410_v33, %v5406_v31  ;;  %v5415_v35 = vpop.f32.mrb[27].mxu1 }
 0x21a   : > { %v1115_v36 = vpack.c.bf16 %v5415_v35, %v5408_v32 }
 0x220   : > { %4044 = vxpose.xlu0.b32.start [1/4] (short) %v4043_v53, 128 }
 0x224   : > { %4046 = vxpose.xlu0.b32.cont [2/4] (short) %v4045_v59, 128 }
 0x228   : > { %4048 = vxpose.xlu0.b32.cont [3/4] (short) %v4047_v51, 128 }
 0x22c   : > { %4050 = vxpose.xlu0.b32.end [4/4] (short) %v4049_v56, 128 }
 0x255   : > { %4132 = vset.pattern.permute.xlu0 %v4873_v0 }
 0x263   : > { %v956_v39 = vpop.trf.xlu0 }
 0x267   : > { %v957_v40 = vpop.trf.xlu0 }
 0x268   : > { %v1068_v41 = vpack.c.bf16 %v957_v40, %v956_v39 }
 0x26a   : > { %3726 = vmatmul.mubr.msk.bf16.vlgmr.msra.gmra.mrb[20].mxu0 %vm1116_vm0, %v1068_v41 }
 0x26b   : > { %1279 = vmatpush1.bf16.msra.mxu0 %v1104_v47  ;;  %v958_v42 = vpop.trf.xlu0  ;;  %1183 = vmatprep.mubr.bf16.mxu0 %v4873_v0  ;;  %v988_v52 = vpop.trf.xlu1 }
 0x26c   : > { %1280 = vmatprep.subr.bf16.mxu0 %v1107_v63 }
 0x26f   : > { %1281 = vmatpush1.bf16.msra.mxu0 %v1106_v61  ;;  %v959_v44 = vpop.trf.xlu0  ;;  %v989_v56 = vpop.trf.xlu1 }
 0x270   : > { %v1069_v45 = vpack.c.bf16 %v959_v44, %v958_v42  ;;  %1552 = vmatprep.subr.bf16.mxu0 %v1113_v26  ;;  %v1076_v9 = vpack.c.bf16 %v989_v56, %v988_v52 }
 0x272   : > { %3727 = vmatmul.mubr.msk.bf16.gmra.mrb[24].mxu0 %vm1116_vm0, %v1069_v45 }
 0x273   : > { %v960_v48 = vpop.trf.xlu0  ;;  %1193 = vmatprep.mubr.bf16.mxu0 %v4873_v0  ;;  %v990_v59 = vpop.trf.xlu1 }
 0x277   : > { %v961_v43 = vpop.trf.xlu0  ;;  %v991_v62 = vpop.trf.xlu1 }
 0x278   : > { %v1070_v46 = vpack.c.bf16 %v961_v43, %v960_v48  ;;  %v1077_v17 = vpack.c.bf16 %v991_v62, %v990_v59 }
 0x27a   : > { %3728 = vmatmul.mubr.msk.bf16.gmra.mrb[28].mxu0 %vm1116_vm0, %v1070_v46 }
 0x27b   : > { %v962_v47 = vpop.trf.xlu0  ;;  %1203 = vmatprep.mubr.bf16.mxu0 %v4873_v0  ;;  %v992_v2 = vpop.trf.xlu1 }
 0x27f   : > { %v963_v49 = vpop.trf.xlu0  ;;  %v993_v5 = vpop.trf.xlu1 }
 0x280   : > { %v1071_v50 = vpack.c.bf16 %v963_v49, %v962_v47 }
 0x282   : > { %3729 = vmatmul.mubr.msk.bf16.gmra.mrb[32].mxu0 %vm1116_vm0, %v1071_v50 }
 0x283   : > { %v964_v51 = vpop.trf.xlu0  ;;  %1213 = vmatprep.mubr.bf16.mxu0 %v4873_v0  ;;  %v994_v11 = vpop.trf.xlu1 }
 0x287   : > { %v965_v53 = vpop.trf.xlu0  ;;  %v995_v15 = vpop.trf.xlu1 }
 0x288   : > { %v1072_v54 = vpack.c.bf16 %v965_v53, %v964_v51  ;;  %v1079_v32 = vpack.c.bf16 %v995_v15, %v994_v11 }
 0x28a   : > { %3730 = vmatmul.mubr.msk.bf16.gmra.mrb[36].mxu0 %vm1116_vm0, %v1072_v54 }
 0x28b   : > { %v966_v55 = vpop.trf.xlu0  ;;  %1223 = vmatprep.mubr.bf16.mxu0 %v4873_v0  ;;  %v996_v20 = vpop.trf.xlu1 }
 0x28f   : > { %v967_v57 = vpop.trf.xlu0  ;;  %v997_v26 = vpop.trf.xlu1 }
 0x290   : > { %v1073_v58 = vpack.c.bf16 %v967_v57, %v966_v55  ;;  %v1080_v39 = vpack.c.bf16 %v997_v26, %v996_v20 }
 0x292   : > { %3731 = vmatmul.mubr.msk.bf16.gmra.mrb[40].mxu0 %vm1116_vm0, %v1073_v58 }
 0x293   : > { %v968_v60 = vpop.trf.xlu0  ;;  %1233 = vmatprep.mubr.bf16.mxu0 %v4873_v0  ;;  %v998_v30 = vpop.trf.xlu1 }
 0x297   : > { %v969_v61 = vpop.trf.xlu0 }
 0x298   : > { %v1074_v63 = vpack.c.bf16 %v969_v61, %v968_v60 }
 0x29a   : > { %3732 = vmatmul.mubr.msk.bf16.gmra.mrb[44].mxu0 %vm1116_vm0, %v1074_v63 }
 0x29b   : > { %v970_v1 = vpop.trf.xlu0  ;;  %1243 = vmatprep.mubr.bf16.mxu0 %v4873_v0 }
 0x29f   : > { %v971_v3 = vpop.trf.xlu0 }
 0x2a0   : > { %v1075_v4 = vpack.c.bf16 %v971_v3, %v970_v1 }
 0x2a2   : > { %3733 = vmatmul.mubr.msk.bf16.gmra.mrb[48].mxu0 %vm1116_vm0, %v1075_v4 }
 0x2a3   : > { %1310 = vmatprep.mubr.bf16.mxu0 %v4873_v0  ;;  %v5447_v6 = vpop.trf.xlu0 }
 0x2a4   : > { %v4052_v7 = vunpack.i.l.bf16 %v5447_v6  ;;  %v4055_v1 = vunpack.i.h.bf16 %v5447_v6 }
 0x2a7   : > { %v5450_v8 = vpop.trf.xlu0 }
 0x2a8   : > { %v4057_v10 = vunpack.i.l.bf16 %v5450_v8 }
 0x2aa   : > { %3734 = vmatmul.mubr.msk.bf16.vlgmr.msra.gmra.mrb[52].mxu0 %vm1116_vm0, %v1076_v9  ;;  %v1084_v12 = vpack.c.bf16 %v4057_v10, %v4052_v7  ;;  %v5541_v7 = vpop.f32.mrb[28].mxu1 }
 0x2ab   : > { %1553 = vmatpush1.bf16.msra.mxu0 %v1112_v24  ;;  %1320 = vmatprep.mubr.bf16.mxu0 %v4873_v0  ;;  %v5458_v13 = vpop.trf.xlu0  ;;  %v1078_v24 = vpack.c.bf16 %v993_v5, %v992_v2  ;;  %v4060_v2 = vunpack.i.h.bf16 %v5450_v8  ;;  %6942 = vst [vmem:[#allocation26_spill] sm:$0xff] %v5541_v7  ;;  %v863_v10 = vpop.f32.mrb[29].mxu1 }
 0x2ac   : > { %1554 = vmatprep.subr.bf16.mxu0 %v1115_v36  ;;  %3742 = vmatmul.mubr.msk.bf16.vlgmr.msra.gmra.mrb[60].mxu1 %vm1116_vm0, %v1084_v12  ;;  %v4062_v14 = vunpack.i.l.bf16 %v5458_v13  ;;  %v999_v36 = vpop.trf.xlu1  ;;  %v4065_v4 = vunpack.i.h.bf16 %v5458_v13  ;;  %v5543_v11 = vpop.f32.mrb[30].mxu1 }
 0x2ad   : > { %1457 = vmatprep.mubr.bf16.mxu1 %v4873_v0  ;;  %v1081_v43 = vpack.c.bf16 %v999_v36, %v998_v30  ;;  %v1092_v3 = vpack.c.bf16 %v4060_v2, %v4055_v1  ;;  %6943 = vst [vmem:[#allocation27_spill] sm:$0xff] %v5543_v11  ;;  %v867_v8 = vpop.f32.mrb[31].mxu1 }
 0x2ae   : > { %v2434_v12 = vpack.c.bf16 %v867_v8, %v863_v10  ;;  %v5551_v15 = vpop.f32.mrb[32].mxu1 }
 0x2af   : > { %1555 = vmatpush1.bf16.msra.mxu0 %v1114_v34  ;;  %v5469_v16 = vpop.trf.xlu0  ;;  %6944 = vst [vmem:[#allocation28_spill] sm:$0xff] %v5551_v15 }
 0x2b0   : > { %v4067_v18 = vunpack.i.l.bf16 %v5469_v16  ;;  %v1000_v42 = vpop.trf.xlu1  ;;  %v4070_v5 = vunpack.i.h.bf16 %v5469_v16 }
 0x2b2   : > { %3735 = vmatmul.mubr.msk.bf16.gmra.mrb[56].mxu0 %vm1116_vm0, %v1077_v17  ;;  %v1085_v19 = vpack.c.bf16 %v4067_v18, %v4062_v14  ;;  %v1093_v9 = vpack.c.bf16 %v4070_v5, %v4065_v4  ;;  %v5553_v17 = vpop.f32.mrb[33].mxu1 }
 0x2b3   : > { %1330 = vmatprep.mubr.bf16.mxu0 %v4873_v0  ;;  %v5474_v21 = vpop.trf.xlu0  ;;  %6945 = vst [vmem:[#allocation29_spill] sm:$0xff] %v5553_v17  ;;  %v5555_v18 = vpop.f32.mrb[34].mxu1 }
 0x2b4   : > { %3743 = vmatmul.mubr.msk.bf16.gmra.mrb[64].mxu1 %vm1116_vm0, %v1085_v19  ;;  %v4072_v22 = vunpack.i.l.bf16 %v5474_v21  ;;  %v1001_v47 = vpop.trf.xlu1  ;;  %v4075_v14 = vunpack.i.h.bf16 %v5474_v21  ;;  %6946 = vst [vmem:[#allocation30_spill] sm:$0xff] %v5555_v18  ;;  %v5560_v20 = vpop.f32.mrb[35].mxu1 }
 0x2b5   : > { %1467 = vmatprep.mubr.bf16.mxu1 %v4873_v0  ;;  %v1082_v54 = vpack.c.bf16 %v1001_v47, %v1000_v42  ;;  %6947 = vst [vmem:[#allocation31_spill] sm:$0xff] %v5560_v20 }
 0x2b7   : > { %v5479_v23 = vpop.trf.xlu0 }
 0x2b8   : > { %v4077_v25 = vunpack.i.l.bf16 %v5479_v23  ;;  %v1002_v52 = vpop.trf.xlu1  ;;  %v4080_v13 = vunpack.i.h.bf16 %v5479_v23 }
 0x2ba   : > { %3736 = vmatmul.mubr.msk.bf16.gmra.mrb[60].mxu0 %vm1116_vm0, %v1078_v24  ;;  %v1086_v27 = vpack.c.bf16 %v4077_v25, %v4072_v22  ;;  %v1094_v16 = vpack.c.bf16 %v4080_v13, %v4075_v14  ;;  %v5567_v24 = vpop.f32.mrb[36].mxu1 }
 0x2bb   : > { %1340 = vmatprep.mubr.bf16.mxu0 %v4873_v0  ;;  %v5484_v28 = vpop.trf.xlu0  ;;  %6948 = vst [vmem:[#allocation32_spill] sm:$0xff] %v5567_v24  ;;  %v883_v26 = vpop.f32.mrb[37].mxu1 }
 0x2bc   : > { %3744 = vmatmul.mubr.msk.bf16.gmra.mrb[68].mxu1 %vm1116_vm0, %v1086_v27  ;;  %v4082_v29 = vunpack.i.l.bf16 %v5484_v28  ;;  %v1003_v58 = vpop.trf.xlu1  ;;  %v4085_v22 = vunpack.i.h.bf16 %v5484_v28  ;;  %v5569_v27 = vpop.f32.mrb[38].mxu1 }
 0x2bd   : > { %1477 = vmatprep.mubr.bf16.mxu1 %v4873_v0  ;;  %v1083_v61 = vpack.c.bf16 %v1003_v58, %v1002_v52  ;;  %6949 = vst [vmem:[#allocation33_spill] sm:$0xff] %v5569_v27  ;;  %v887_v30 = vpop.f32.mrb[39].mxu1 }
 0x2bf   : > { %v5489_v31 = vpop.trf.xlu0 }
 0x2c0   : > { %v4087_v33 = vunpack.i.l.bf16 %v5489_v31  ;;  %v4090_v23 = vunpack.i.h.bf16 %v5489_v31 }
 0x2c2   : > { %3737 = vmatmul.mubr.msk.bf16.gmra.mrb[64].mxu0 %vm1116_vm0, %v1079_v32  ;;  %v1087_v34 = vpack.c.bf16 %v4087_v33, %v4082_v29  ;;  %v1095_v25 = vpack.c.bf16 %v4090_v23, %v4085_v22  ;;  %v2438_v32 = vpack.c.bf16 %v887_v30, %v883_v26 }
 0x2c3   : > { %1350 = vmatprep.mubr.bf16.mxu0 %v4873_v0  ;;  %v5494_v35 = vpop.trf.xlu0  ;;  %v5577_v31 = vpop.f32.mrb[40].mxu1 }
 0x2c4   : > { %3745 = vmatmul.mubr.msk.bf16.gmra.mrb[72].mxu1 %vm1116_vm0, %v1087_v34  ;;  %v4092_v37 = vunpack.i.l.bf16 %v5494_v35  ;;  %v4095_v33 = vunpack.i.h.bf16 %v5494_v35  ;;  %6950 = vst [vmem:[#allocation34_spill] sm:$0xff] %v5577_v31  ;;  %v5579_v36 = vpop.f32.mrb[41].mxu1 }
 0x2c5   : > { %1487 = vmatprep.mubr.bf16.mxu1 %v4873_v0  ;;  %6951 = vst [vmem:[#allocation35_spill] sm:$0xff] %v5579_v36 }
 0x2c7   : > { %v5499_v38 = vpop.trf.xlu0 }
 0x2c8   : > { %v4097_v40 = vunpack.i.l.bf16 %v5499_v38  ;;  %v4100_v28 = vunpack.i.h.bf16 %v5499_v38 }
 0x2ca   : > { %3738 = vmatmul.mubr.msk.bf16.gmra.mrb[68].mxu0 %vm1116_vm0, %v1080_v39  ;;  %v1088_v41 = vpack.c.bf16 %v4097_v40, %v4092_v37  ;;  %v1096_v34 = vpack.c.bf16 %v4100_v28, %v4095_v33  ;;  %v5581_v37 = vpop.f32.mrb[42].mxu1 }
 0x2cb   : > { %1360 = vmatprep.mubr.bf16.mxu0 %v4873_v0  ;;  %v5504_v44 = vpop.trf.xlu0  ;;  %6952 = vst [vmem:[#allocation36_spill] sm:$0xff] %v5581_v37  ;;  %v5586_v40 = vpop.f32.mrb[43].mxu1 }
 0x2cc   : > { %3746 = vmatmul.mubr.msk.bf16.gmra.mrb[76].mxu1 %vm1116_vm0, %v1088_v41  ;;  %v4102_v45 = vunpack.i.l.bf16 %v5504_v44  ;;  %6953 = vst [vmem:[#allocation37_spill] sm:$0xff] %v5586_v40  ;;  %v4105_v38 = vunpack.i.h.bf16 %v5504_v44  ;;  %v5593_v42 = vpop.f32.mrb[44].mxu1 }
 0x2cd   : > { %1497 = vmatprep.mubr.bf16.mxu1 %v4873_v0  ;;  %6954 = vst [vmem:[#allocation38_spill] sm:$0xff] %v5593_v42 }
 0x2cf   : > { %v5509_v48 = vpop.trf.xlu0 }
 0x2d0   : > { %v4107_v46 = vunpack.i.l.bf16 %v5509_v48  ;;  %v4110_v41 = vunpack.i.h.bf16 %v5509_v48 }
 0x2d2   : > { %3739 = vmatmul.mubr.msk.bf16.gmra.mrb[72].mxu0 %vm1116_vm0, %v1081_v43  ;;  %v1089_v49 = vpack.c.bf16 %v4107_v46, %v4102_v45  ;;  %v1097_v45 = vpack.c.bf16 %v4110_v41, %v4105_v38  ;;  %v5595_v43 = vpop.f32.mrb[45].mxu1 }
 0x2d3   : > { %1370 = vmatprep.mubr.bf16.mxu0 %v4873_v0  ;;  %v5514_v50 = vpop.trf.xlu0  ;;  %6955 = vst [vmem:[#allocation39_spill] sm:$0xff] %v5595_v43  ;;  %v5597_v46 = vpop.f32.mrb[46].mxu1 }
 0x2d4   : > { %3747 = vmatmul.mubr.msk.bf16.gmra.mrb[80].mxu1 %vm1116_vm0, %v1089_v49  ;;  %v4112_v51 = vunpack.i.l.bf16 %v5514_v50  ;;  %6956 = vst [vmem:[#allocation40_spill] sm:$0xff] %v5597_v46  ;;  %v5602_v49 = vpop.f32.mrb[47].mxu1  ;;  %v4115_v48 = vunpack.i.h.bf16 %v5514_v50 }
 0x2d5   : > { %1507 = vmatprep.mubr.bf16.mxu1 %v4873_v0  ;;  %6957 = vst [vmem:[#allocation41_spill] sm:$0xff] %v5602_v49  ;;  %v5609_v52 = vpop.f32.mrb[48].mxu1 }
 0x2d6   : > { %6958 = vst [vmem:[#allocation42_spill] sm:$0xff] %v5609_v52 }
 0x2d7   : > { %v5519_v53 = vpop.trf.xlu0 }
 0x2d8   : > { %v4117_v55 = vunpack.i.l.bf16 %v5519_v53 }
 0x2da   : > { %3740 = vmatmul.mubr.msk.bf16.gmra.mrb[76].mxu0 %vm1116_vm0, %v1082_v54  ;;  %v1090_v56 = vpack.c.bf16 %v4117_v55, %v4112_v51  ;;  %v4120_v51 = vunpack.i.h.bf16 %v5519_v53  ;;  %v5611_v55 = vpop.f32.mrb[49].mxu1 }
 0x2db   : > { %1380 = vmatprep.mubr.bf16.mxu0 %v4873_v0  ;;  %v5524_v57 = vpop.trf.xlu0  ;;  %6959 = vst [vmem:[#allocation43_spill] sm:$0xff] %v5611_v55 }
 0x2dc   : > { %3748 = vmatmul.mubr.msk.bf16.gmra.mrb[84].mxu1 %vm1116_vm0, %v1090_v56  ;;  %v4122_v59 = vunpack.i.l.bf16 %v5524_v57  ;;  %v1098_v54 = vpack.c.bf16 %v4120_v51, %v4115_v48  ;;  %v5613_v56 = vpop.f32.mrb[50].mxu1  ;;  %v4125_v53 = vunpack.i.h.bf16 %v5524_v57 }
 0x2dd   : > { %1517 = vmatprep.mubr.bf16.mxu1 %v4873_v0  ;;  %6960 = vst [vmem:[#allocation44_spill] sm:$0xff] %v5613_v56 }
 0x2df   : > { %v5529_v60 = vpop.trf.xlu0 }
 0x2e0   : > { %v4127_v62 = vunpack.i.l.bf16 %v5529_v60 }
 0x2e2   : > { %3741 = vmatmul.mubr.msk.bf16.gmra.mrb[80].mxu0 %vm1116_vm0, %v1083_v61  ;;  %v1091_v63 = vpack.c.bf16 %v4127_v62, %v4122_v59  ;;  %v5618_v59 = vpop.f32.mrb[51].mxu1  ;;  %v4130_v61 = vunpack.i.h.bf16 %v5529_v60 }
 0x2e3   : > { %1584 = vmatprep.mubr.bf16.mxu0 %v4873_v0  ;;  %6961 = vst [vmem:[#allocation45_spill] sm:$0xff] %v5618_v59  ;;  %v5625_v62 = vpop.f32.mrb[52].mxu1 }
 0x2e4   : > { %3749 = vmatmul.mubr.msk.bf16.gmra.mrb[88].mxu1 %vm1116_vm0, %v1091_v63  ;;  %6962 = vst [vmem:[#allocation46_spill] sm:$0xff] %v5625_v62  ;;  %v1099_v63 = vpack.c.bf16 %v4130_v61, %v4125_v53  ;;  %v5627_v1 = vpop.f32.mrb[53].mxu1 }
 0x2e5   : > { %2545 = vmatprep.mubr.bf16.mxu1 %v2434_v12  ;;  %6963 = vst [vmem:[#allocation47_spill] sm:$0xff] %v5627_v1  ;;  %v5629_v2 = vpop.f32.mrb[54].mxu1 }
 0x2e6   : > { %6964 = vst [vmem:[#allocation48_spill] sm:$0xff] %v5629_v2 }
 0x2ea   : > { %3750 = vmatmul.mubr.msk.bf16.vlgmr.msra.gmra.mrb[84].mxu0 %vm1116_vm0, %v1092_v3 }
 0x2eb   : > { %1594 = vmatprep.mubr.bf16.mxu0 %v4873_v0 }
 0x2f2   : > { %3751 = vmatmul.mubr.msk.bf16.gmra.mrb[88].mxu0 %vm1116_vm0, %v1093_v9 }
 0x2f3   : > { %1604 = vmatprep.mubr.bf16.mxu0 %v4873_v0 }
 0x2fa   : > { %3752 = vmatmul.mubr.msk.bf16.gmra.mrb[92].mxu0 %vm1116_vm0, %v1094_v16 }
 0x2fb   : > { %1614 = vmatprep.mubr.bf16.mxu0 %v4873_v0 }
 0x302   : > { %3753 = vmatmul.mubr.msk.bf16.gmra.mrb[96].mxu0 %vm1116_vm0, %v1095_v25 }
 0x303   : > { %1624 = vmatprep.mubr.bf16.mxu0 %v4873_v0 }
 0x30a   : > { %3754 = vmatmul.mubr.msk.bf16.gmra.mrb[100].mxu0 %vm1116_vm0, %v1096_v34 }
 0x30b   : > { %1634 = vmatprep.mubr.bf16.mxu0 %v4873_v0 }
 0x312   : > { %3755 = vmatmul.mubr.msk.bf16.gmra.mrb[104].mxu0 %vm1116_vm0, %v1097_v45 }
 0x313   : > { %1644 = vmatprep.mubr.bf16.mxu0 %v4873_v0 }
 0x31a   : > { %3756 = vmatmul.mubr.msk.bf16.gmra.mrb[108].mxu0 %vm1116_vm0, %v1098_v54 }
 0x31b   : > { %1654 = vmatprep.mubr.bf16.mxu0 %v4873_v0  ;;  %v5634_v0 = vpop.f32.mrb[55].mxu1 }
 0x31c   : > { %6965 = vst [vmem:[#allocation49_spill] sm:$0xff] %v5634_v0  ;;  %v5638_v4 = vpop.f32.mrb[56].mxu1 }
 0x31d   : > { %6966 = vst [vmem:[#allocation50_spill] sm:$0xff] %v5638_v4  ;;  %v5640_v60 = vpop.f32.mrb[57].mxu1 }
 0x31e   : > { %6967 = vst [vmem:[#allocation51_spill] sm:$0xff] %v5640_v60  ;;  %v5642_v5 = vpop.f32.mrb[58].mxu1 }
 0x31f   : > { %6968 = vst [vmem:[#allocation52_spill] sm:$0xff] %v5642_v5  ;;  %v5646_v10 = vpop.f32.mrb[59].mxu1 }
 0x320   : > { %6969 = vst [vmem:[#allocation53_spill] sm:$0xff] %v5646_v10 }
 0x322   : > { %3757 = vmatmul.mubr.msk.bf16.gmra.mrb[112].mxu0 %vm1116_vm0, %v1099_v63 }
 0x323   : > { %2594 = vmatprep.mubr.bf16.mxu0 %v2438_v32 }
 0x33d   : > { %v5650_v12 = vpop.f32.mrb[20].mxu0 }
 0x33e   : > { %v5652_v14 = vpop.f32.mrb[21].mxu0 }
 0x33f   : > { %v5654_v13 = vpop.f32.mrb[22].mxu0  ;;  %v1665_v16 = vmax.f32 %v5650_v12, %v5652_v14 }
 0x340   : > { %v5658_v22 = vpop.f32.mrb[23].mxu0 }
 0x341   : > { %1666 = vmax.xlane.f32.xlu1 %v1665_v16  ;;  %v1668_v23 = vmax.f32 %v5654_v13, %v5658_v22 }
 0x343   : > { %1669 = vmax.xlane.f32.xlu0 %v1668_v23 }
 0x345   : > { %v5662_v25 = vpop.f32.mrb[24].mxu0 }
 0x346   : > { %v5664_v26 = vpop.f32.mrb[25].mxu0 }
 0x347   : > { %v5666_v30 = vpop.f32.mrb[26].mxu0  ;;  %v1671_v32 = vmax.f32 %v5662_v25, %v5664_v26 }
 0x348   : > { %v5670_v33 = vpop.f32.mrb[27].mxu0 }
 0x349   : > { %1672 = vmax.xlane.f32.xlu1 %v1671_v32  ;;  %v1674_v28 = vmax.f32 %v5666_v30, %v5670_v33 }
 0x34d   : > { %1675 = vmax.xlane.f32.xlu1 %v1674_v28  ;;  %v5674_v34 = vpop.f32.mrb[28].mxu0 }
 0x34e   : > { %v5676_v38 = vpop.f32.mrb[29].mxu0 }
 0x34f   : > { %v5678_v41 = vpop.f32.mrb[30].mxu0  ;;  %v1677_v45 = vmax.f32 %v5674_v34, %v5676_v38 }
 0x350   : > { %v5682_v48 = vpop.f32.mrb[31].mxu0 }
 0x351   : > { %1678 = vmax.xlane.f32.xlu1 %v1677_v45  ;;  %v1680_v51 = vmax.f32 %v5678_v41, %v5682_v48 }
 0x355   : > { %1681 = vmax.xlane.f32.xlu1 %v1680_v51  ;;  %v5686_v54 = vpop.f32.mrb[32].mxu0 }
 0x356   : > { %v5688_v53 = vpop.f32.mrb[33].mxu0 }
 0x357   : > { %v5690_v61 = vpop.f32.mrb[34].mxu0  ;;  %v1683_v63 = vmax.f32 %v5686_v54, %v5688_v53 }
 0x358   : > { %v5694_v16 = vpop.f32.mrb[35].mxu0 }
 0x359   : > { %1684 = vmax.xlane.f32.xlu1 %v1683_v63  ;;  %v1686_v23 = vmax.f32 %v5690_v61, %v5694_v16 }
 0x35d   : > { %1687 = vmax.xlane.f32.xlu1 %v1686_v23  ;;  %v5698_v32 = vpop.f32.mrb[36].mxu0 }
 0x35e   : > { %v5700_v28 = vpop.f32.mrb[37].mxu0 }
 0x35f   : > { %v5702_v45 = vpop.f32.mrb[38].mxu0  ;;  %v1689_v51 = vmax.f32 %v5698_v32, %v5700_v28 }
 0x360   : > { %v5706_v9 = vpop.f32.mrb[39].mxu0 }
 0x361   : > { %1690 = vmax.xlane.f32.xlu1 %v1689_v51  ;;  %v1692_v8 = vmax.f32 %v5702_v45, %v5706_v9 }
 0x365   : > { %1693 = vmax.xlane.f32.xlu1 %v1692_v8  ;;  %v5710_v63 = vpop.f32.mrb[40].mxu0 }
 0x366   : > { %6970 = vst [vmem:[#allocation54_spill] sm:$0xff] %v5710_v63  ;;  %v5712_v3 = vpop.f32.mrb[41].mxu0 }
 0x367   : > { %6971 = vst [vmem:[#allocation55_spill] sm:$0xff] %v5712_v3  ;;  %v5714_v23 = vpop.f32.mrb[42].mxu0 }
 0x368   : > { %v5718_v50 = vpop.f32.mrb[43].mxu0 }
 0x369   : > { %v1698_v47 = vmax.f32 %v5714_v23, %v5718_v50 }
 0x36b   : > { %1699 = vmax.xlane.f32.xlu0 %v1698_v47 }
 0x36d   : > { %v5722_v51 = vpop.f32.mrb[44].mxu0 }
 0x36e   : > { %6972 = vst [vmem:[#allocation56_spill] sm:$0xff] %v5722_v51  ;;  %v5724_v57 = vpop.f32.mrb[45].mxu0 }
 0x36f   : > { %6973 = vst [vmem:[#allocation57_spill] sm:$0xff] %v5724_v57  ;;  %v5726_v8 = vpop.f32.mrb[46].mxu0 }
 0x370   : > { %6974 = vst [vmem:[#allocation58_spill] sm:$0xff] %v5726_v8  ;;  %v5730_v35 = vpop.f32.mrb[47].mxu0 }
 0x371   : > { %6975 = vst [vmem:[#allocation59_spill] sm:$0xff] %v5730_v35 }
 0x375   : > { %v5734_v44 = vpop.f32.mrb[48].mxu0 }
 0x376   : > { %6976 = vst [vmem:[#allocation60_spill] sm:$0xff] %v5734_v44  ;;  %v5736_v19 = vpop.f32.mrb[49].mxu0 }
 0x377   : > { %6977 = vst [vmem:[#allocation61_spill] sm:$0xff] %v5736_v19  ;;  %v5738_v21 = vpop.f32.mrb[50].mxu0 }
 0x378   : > { %6978 = vst [vmem:[#allocation62_spill] sm:$0xff] %v5738_v21  ;;  %v5742_v6 = vpop.f32.mrb[51].mxu0 }
 0x379   : > { %6979 = vst [vmem:[#allocation63_spill] sm:$0xff] %v5742_v6 }
 0x37d   : > { %v5746_v39 = vpop.f32.mrb[52].mxu0 }
 0x37e   : > { %v5748_v4 = vpop.f32.mrb[53].mxu0 }
 0x37f   : > { %v5750_v5 = vpop.f32.mrb[54].mxu0  ;;  %v1713_v29 = vmax.f32 %v5746_v39, %v5748_v4  ;;  %v5754_v60 = vpop.f32.mrb[60].mxu1 }
 0x380   : > { %v5756_v10 = vpop.f32.mrb[55].mxu0  ;;  %v5758_v62 = vpop.f32.mrb[61].mxu1 }
 0x381   : > { %6980 = vst [vmem:[#allocation64_spill] sm:$0xff] %v5756_v10  ;;  %1714 = vmax.xlane.f32.xlu1 %v1713_v29  ;;  %v1716_v47 = vmax.f32 %v5750_v5, %v5756_v10  ;;  %v5762_v58 = vpop.f32.mrb[62].mxu1 }
 0x382   : > { %6981 = vst [vmem:[#allocation65_spill] sm:$0xff] %v5762_v58  ;;  %v5766_v52 = vpop.f32.mrb[63].mxu1 }
 0x383   : > { %6982 = vst [vmem:[#allocation66_spill] sm:$0xff] %v5766_v52 }
 0x385   : > { %1717 = vmax.xlane.f32.xlu1 %v1716_v47  ;;  %v5770_v55 = vpop.f32.mrb[56].mxu0 }
 0x386   : > { %6983 = vst [vmem:[#allocation67_spill] sm:$0xff] %v5770_v55  ;;  %v5772_v59 = vpop.f32.mrb[57].mxu0 }
 0x387   : > { %6984 = vst [vmem:[#allocation68_spill] sm:$0xff] %v5772_v59  ;;  %v5774_v42 = vpop.f32.mrb[58].mxu0  ;;  %v1719_v29 = vmax.f32 %v5770_v55, %v5772_v59  ;;  %v5778_v46 = vpop.f32.mrb[64].mxu1 }
 0x388   : > { %6985 = vst [vmem:[#allocation69_spill] sm:$0xff] %v5774_v42  ;;  %v5780_v1 = vpop.f32.mrb[59].mxu0  ;;  %v5782_v2 = vpop.f32.mrb[65].mxu1 }
 0x389   : > { %6986 = vst [vmem:[#allocation70_spill] sm:$0xff] %v5780_v1  ;;  %6987 = vst [vmem:[#allocation71_spill] sm:$0xff] %v5782_v2  ;;  %1720 = vmax.xlane.f32.xlu1 %v1719_v29  ;;  %v1722_v56 = vmax.f32 %v5774_v42, %v5780_v1  ;;  %v5786_v47 = vpop.f32.mrb[66].mxu1  ;;  %v7007_v42 = vmax.f32 %v5710_v63, %v5712_v3 }
 0x38a   : > { %v5790_v31 = vpop.f32.mrb[67].mxu1 }
 0x38b   : > { %6988 = vst [vmem:[#allocation72_spill] sm:$0xff] %v5790_v31 }
 0x38d   : > { %1723 = vmax.xlane.f32.xlu1 %v1722_v56  ;;  %v5794_v36 = vpop.f32.mrb[60].mxu0 }
 0x38e   : > { %6989 = vst [vmem:[#allocation73_spill] sm:$0xff] %v5794_v36  ;;  %v5796_v40 = vpop.f32.mrb[61].mxu0 }
 0x38f   : > { %6990 = vst [vmem:[#allocation74_spill] sm:$0xff] %v5796_v40  ;;  %v5798_v24 = vpop.f32.mrb[62].mxu0  ;;  %v1725_v29 = vmax.f32 %v5794_v36, %v5796_v40  ;;  %v5802_v27 = vpop.f32.mrb[68].mxu1 }
 0x390   : > { %6991 = vst [vmem:[#allocation75_spill] sm:$0xff] %v5798_v24  ;;  %6992 = vst [vmem:[#allocation76_spill] sm:$0xff] %v5802_v27  ;;  %v5804_v43 = vpop.f32.mrb[63].mxu0  ;;  %v5806_v0 = vpop.f32.mrb[69].mxu1 }
 0x391   : > { %6993 = vst [vmem:[#allocation77_spill] sm:$0xff] %v5804_v43  ;;  %6994 = vst [vmem:[#allocation78_spill] sm:$0xff] %v5806_v0  ;;  %1726 = vmax.xlane.f32.xlu1 %v1725_v29  ;;  %v1728_v37 = vmax.f32 %v5798_v24, %v5804_v43  ;;  %v5810_v56 = vpop.f32.mrb[70].mxu1 }
 0x392   : > { %6995 = vst [vmem:[#allocation79_spill] sm:$0xff] %v5810_v56  ;;  %v5814_v15 = vpop.f32.mrb[71].mxu1 }
 0x393   : > { %6996 = vst [vmem:[#allocation80_spill] sm:$0xff] %v5814_v15 }
 0x395   : > { %1729 = vmax.xlane.f32.xlu1 %v1728_v37  ;;  %v5818_v17 = vpop.f32.mrb[64].mxu0 }
 0x396   : > { %6997 = vst [vmem:[#allocation81_spill] sm:$0xff] %v5818_v17  ;;  %v5820_v20 = vpop.f32.mrb[65].mxu0 }
 0x397   : > { %6998 = vst [vmem:[#allocation82_spill] sm:$0xff] %v5820_v20  ;;  %v5822_v7 = vpop.f32.mrb[66].mxu0  ;;  %v1731_v29 = vmax.f32 %v5818_v17, %v5820_v20  ;;  %v5826_v11 = vpop.f32.mrb[72].mxu1 }
 0x398   : > { %6999 = vst [vmem:[#allocation83_spill] sm:$0xff] %v5822_v7  ;;  %v5828_v43 = vpop.f32.mrb[67].mxu0  ;;  %v5830_v49 = vpop.f32.mrb[73].mxu1 }
 0x399   : > { %7000 = vst [vmem:[#allocation84_spill] sm:$0xff] %v5828_v43  ;;  %1732 = vmax.xlane.f32.xlu1 %v1731_v29  ;;  %v1734_v18 = vmax.f32 %v5822_v7, %v5828_v43  ;;  %v5834_v37 = vpop.f32.mrb[74].mxu1 }
 0x39a   : > { %v5838_v40 = vpop.f32.mrb[75].mxu1 }
 0x39b   : > { %7001 = vst [vmem:[#allocation85_spill] sm:$0xff] %v5838_v40 }
 0x39d   : > { %1735 = vmax.xlane.f32.xlu1 %v1734_v18  ;;  %v5842_v17 = vpop.f32.mrb[68].mxu0 }
 0x39e   : > { %7002 = vst [vmem:[#allocation86_spill] sm:$0xff] %v5842_v17  ;;  %v5844_v36 = vpop.f32.mrb[69].mxu0 }
 0x39f   : > { %7003 = vst [vmem:[#allocation87_spill] sm:$0xff] %v5844_v36  ;;  %v5846_v1 = vpop.f32.mrb[70].mxu0  ;;  %v1737_v29 = vmax.f32 %v5842_v17, %v5844_v36  ;;  %v5850_v43 = vpop.f32.mrb[76].mxu1 }
 0x3a0   : > { %7004 = vst [vmem:[#allocation88_spill] sm:$0xff] %v5846_v1  ;;  %v5852_v7 = vpop.f32.mrb[71].mxu0  ;;  %v5854_v24 = vpop.f32.mrb[77].mxu1 }
 0x3a1   : > { %7005 = vst [vmem:[#allocation89_spill] sm:$0xff] %v5852_v7  ;;  %7006 = vst [vmem:[#allocation90_spill] sm:$0xff] %v5854_v24  ;;  %1696 = vmax.xlane.f32.xlu1 %v7007_v42  ;;  %v1740_v18 = vmax.f32 %v5846_v1, %v5852_v7  ;;  %v5861_v20 = vpop.f32.mrb[78].mxu1  ;;  %v7010_v42 = vmax.f32 %v5726_v8, %v5730_v35 }
 0x3a2   : > { %v5865_v55 = vpop.f32.mrb[79].mxu1 }
 0x3a3   : > { %1741 = vmax.xlane.f32.xlu0 %v1740_v18 }
 0x3a5   : > { %1738 = vmax.xlane.f32.xlu1 %v1737_v29  ;;  %v5869_v17 = vpop.f32.mrb[72].mxu0  ;;  %v7014_v29 = vmax.f32 %v5722_v51, %v5724_v57 }
 0x3a6   : > { %7008 = vst [vmem:[#allocation91_spill] sm:$0xff] %v5869_v17  ;;  %v5871_v10 = vpop.f32.mrb[73].mxu0 }
 0x3a7   : > { %7009 = vst [vmem:[#allocation92_spill] sm:$0xff] %v5871_v10  ;;  %1705 = vmax.xlane.f32.xlu0 %v7010_v42  ;;  %v5876_v7 = vpop.f32.mrb[74].mxu0  ;;  %v1743_v59 = vmax.f32 %v5869_v17, %v5871_v10  ;;  %v5880_v1 = vpop.f32.mrb[80].mxu1 }
 0x3a8   : > { %7011 = vst [vmem:[#allocation93_spill] sm:$0xff] %v5876_v7  ;;  %v5882_v18 = vpop.f32.mrb[75].mxu0  ;;  %v5884_v3 = vpop.f32.mrb[81].mxu1 }
 0x3a9   : > { %7012 = vst [vmem:[#allocation94_spill] sm:$0xff] %v5882_v18  ;;  %7013 = vst [vmem:[#allocation95_spill] sm:$0xff] %v5884_v3  ;;  %1702 = vmax.xlane.f32.xlu1 %v7014_v29  ;;  %v1746_v36 = vmax.f32 %v5876_v7, %v5882_v18  ;;  %v5893_v35 = vpop.f32.mrb[82].mxu1  ;;  %v7017_v29 = vmax.f32 %v5738_v21, %v5742_v6 }
 0x3aa   : > { %v5895_v8 = vpop.f32.mrb[83].mxu1 }
 0x3ab   : > { %1747 = vmax.xlane.f32.xlu0 %v1746_v36 }
 0x3ad   : > { %1744 = vmax.xlane.f32.xlu1 %v1743_v59  ;;  %v5899_v17 = vpop.f32.mrb[76].mxu0  ;;  %v7020_v59 = vmax.f32 %v5734_v44, %v5736_v19 }
 0x3ae   : > { %7015 = vst [vmem:[#allocation96_spill] sm:$0xff] %v5899_v17  ;;  %v5901_v63 = vpop.f32.mrb[77].mxu0 }
 0x3af   : > { %7016 = vst [vmem:[#allocation97_spill] sm:$0xff] %v5901_v63  ;;  %1711 = vmax.xlane.f32.xlu0 %v7017_v29  ;;  %v5906_v18 = vpop.f32.mrb[78].mxu0  ;;  %v1749_v42 = vmax.f32 %v5899_v17, %v5901_v63  ;;  %v5910_v7 = vpop.f32.mrb[84].mxu1 }
 0x3b0   : > { %7018 = vst [vmem:[#allocation98_spill] sm:$0xff] %v5906_v18  ;;  %v5912_v36 = vpop.f32.mrb[79].mxu0  ;;  %v5914_v57 = vpop.f32.mrb[85].mxu1 }
 0x3b1   : > { %7019 = vst [vmem:[#allocation99_spill] sm:$0xff] %v5912_v36  ;;  %1708 = vmax.xlane.f32.xlu1 %v7020_v59  ;;  %v1752_v10 = vmax.f32 %v5906_v18, %v5912_v36  ;;  %v5923_v6 = vpop.f32.mrb[86].mxu1  ;;  %v7023_v59 = vmax.f32 %v5762_v58, %v5766_v52 }
 0x3b2   : > { %v5925_v21 = vpop.f32.mrb[87].mxu1 }
 0x3b3   : > { %1753 = vmax.xlane.f32.xlu0 %v1752_v10 }
 0x3b5   : > { %1750 = vmax.xlane.f32.xlu1 %v1749_v42  ;;  %v5929_v17 = vpop.f32.mrb[80].mxu0  ;;  %v7026_v42 = vmax.f32 %v5754_v60, %v5758_v62 }
 0x3b6   : > { %7021 = vst [vmem:[#allocation100_spill] sm:$0xff] %v5929_v17  ;;  %v5931_v51 = vpop.f32.mrb[81].mxu0 }
 0x3b7   : > { %7022 = vst [vmem:[#allocation101_spill] sm:$0xff] %v5931_v51  ;;  %1765 = vmax.xlane.f32.xlu0 %v7023_v59  ;;  %v5936_v36 = vpop.f32.mrb[82].mxu0  ;;  %v1755_v29 = vmax.f32 %v5929_v17, %v5931_v51  ;;  %v5940_v18 = vpop.f32.mrb[88].mxu1 }
 0x3b8   : > { %7024 = vst [vmem:[#allocation102_spill] sm:$0xff] %v5936_v36  ;;  %v5942_v10 = vpop.f32.mrb[83].mxu0  ;;  %v5944_v19 = vpop.f32.mrb[89].mxu1 }
 0x3b9   : > { %7025 = vst [vmem:[#allocation103_spill] sm:$0xff] %v5942_v10  ;;  %1762 = vmax.xlane.f32.xlu1 %v7026_v42  ;;  %v1758_v63 = vmax.f32 %v5936_v36, %v5942_v10  ;;  %v5953_v52 = vpop.f32.mrb[90].mxu1  ;;  %v7029_v42 = vmax.f32 %v5786_v47, %v5790_v31 }
 0x3ba   : > { %v5955_v58 = vpop.f32.mrb[91].mxu1 }
 0x3bb   : > { %1759 = vmax.xlane.f32.xlu0 %v1758_v63  ;;  %v7030_v63 = vmax.f32 %v5778_v46, %v5782_v2 }
 0x3bd   : > { %1756 = vmax.xlane.f32.xlu1 %v1755_v29  ;;  %v5959_v17 = vpop.f32.mrb[84].mxu0 }
 0x3be   : > { %7027 = vst [vmem:[#allocation104_spill] sm:$0xff] %v5959_v17  ;;  %v5961_v44 = vpop.f32.mrb[85].mxu0 }
 0x3bf   : > { %7028 = vst [vmem:[#allocation105_spill] sm:$0xff] %v5961_v44  ;;  %1771 = vmax.xlane.f32.xlu0 %v7029_v42  ;;  %v5966_v10 = vpop.f32.mrb[86].mxu0  ;;  %v1809_v59 = vmax.f32 %v5959_v17, %v5961_v44  ;;  %v7033_v42 = vmax.f32 %v5810_v56, %v5814_v15 }
 0x3c0   : > { %v5970_v36 = vpop.f32.mrb[87].mxu0 }
 0x3c1   : > { %1768 = vmax.xlane.f32.xlu1 %v7030_v63  ;;  %v1812_v29 = vmax.f32 %v5966_v10, %v5970_v36  ;;  %v7036_v63 = vmax.f32 %v5802_v27, %v5806_v0 }
 0x3c3   : > { %1813 = vmax.xlane.f32.xlu0 %v1812_v29 }
 0x3c5   : > { %1810 = vmax.xlane.f32.xlu1 %v1809_v59  ;;  %v5977_v51 = vpop.f32.mrb[88].mxu0 }
 0x3c6   : > { %7031 = vst [vmem:[#allocation106_spill] sm:$0xff] %v5977_v51  ;;  %v5979_v31 = vpop.f32.mrb[89].mxu0 }
 0x3c7   : > { %7032 = vst [vmem:[#allocation107_spill] sm:$0xff] %v5979_v31  ;;  %1777 = vmax.xlane.f32.xlu0 %v7033_v42  ;;  %v5984_v44 = vpop.f32.mrb[90].mxu0  ;;  %v1815_v17 = vmax.f32 %v5977_v51, %v5979_v31  ;;  %v7037_v51 = vmax.f32 %v5834_v37, %v5838_v40 }
 0x3c8   : > { %7034 = vst [vmem:[#allocation108_spill] sm:$0xff] %v5984_v44  ;;  %v5988_v2 = vpop.f32.mrb[91].mxu0 }
 0x3c9   : > { %7035 = vst [vmem:[#allocation109_spill] sm:$0xff] %v5988_v2  ;;  %1774 = vmax.xlane.f32.xlu1 %v7036_v63  ;;  %v1818_v59 = vmax.f32 %v5984_v44, %v5988_v2 }
 0x3cb   : > { %1819 = vmax.xlane.f32.xlu0 %v1818_v59 }
 0x3cd   : > { %1816 = vmax.xlane.f32.xlu1 %v1815_v17  ;;  %v5995_v29 = vpop.f32.mrb[92].mxu0 }
 0x3ce   : > { %v1667_v15 = vpop.xlane.xlu1 %1666  ;;  %v5997_v42 = vpop.f32.mrb[93].mxu0 }
 0x3cf   : > { %v1857_v56 = vsub.f32 %v5650_v12, %v1667_v15  ;;  %v1858_v31 = vsub.f32 %v5652_v14, %v1667_v15  ;;  %1783 = vmax.xlane.f32.xlu0 %v7037_v51  ;;  %v6004_v0 = vpop.f32.mrb[94].mxu0  ;;  %v1821_v63 = vmax.f32 %v5995_v29, %v5997_v42  ;;  %v7038_v15 = vmax.f32 %v5826_v11, %v5830_v49 }
 0x3d0   : > { %v1670_v59 = vpop.xlane.xlu0 %1669  ;;  %v6008_v17 = vpop.f32.mrb[95].mxu0 }
 0x3d1   : > { %v1985_v2 = vmul.f32 1.442695, %v1857_v56  ;;  %v1987_v44 = vmul.f32 1.442695, %v1858_v31  ;;  %v1859_v27 = vsub.f32 %v5654_v13, %v1670_v59  ;;  %v1860_v12 = vsub.f32 %v5658_v22, %v1670_v59  ;;  %1780 = vmax.xlane.f32.xlu1 %v7038_v15 }
 0x3d2   : > { %v1824_v14 = vmax.f32 %v6004_v0, %v6008_v17 }
 0x3d3   : > { %4165 = vpow2.f32 %v1985_v2  ;;  %v1989_v51 = vmul.f32 1.442695, %v1859_v27  ;;  %v1991_v40 = vmul.f32 1.442695, %v1860_v12  ;;  %v7042_v12 = vmax.f32 %v5850_v43, %v5854_v24 }
 0x3d4   : > { %4167 = vpow2.f32 %v1987_v44  ;;  %1825 = vmax.xlane.f32.xlu0 %v1824_v14  ;;  %v7041_v44 = vmax.f32 %v5861_v20, %v5865_v55 }
 0x3d5   : > { %4169 = vpow2.f32 %v1989_v51  ;;  %1822 = vmax.xlane.f32.xlu1 %v1821_v63  ;;  %v6017_v56 = vpop.f32.mrb[96].mxu0 }
 0x3d6   : > { %7039 = vst [vmem:[#allocation110_spill] sm:$0xff] %v6017_v56  ;;  %4171 = vpow2.f32 %v1991_v40  ;;  %v1673_v31 = vpop.xlane.xlu1 %1672  ;;  %v6019_v13 = vpop.f32.mrb[97].mxu0 }
 0x3d7   : > { %7040 = vst [vmem:[#allocation111_spill] sm:$0xff] %v6019_v13  ;;  %v1861_v22 = vsub.f32 %v5662_v25, %v1673_v31  ;;  %v1862_v59 = vsub.f32 %v5664_v26, %v1673_v31  ;;  %v6023_v15 = vpop.f32.mrb[98].mxu0  ;;  %v1827_v27 = vmax.f32 %v6017_v56, %v6019_v13 }
 0x3d8   : > { %1789 = vmax.xlane.f32.xlu0 %v7041_v44  ;;  %v6030_v2 = vpop.f32.mrb[99].mxu0 }
 0x3d9   : > { %v1993_v63 = vmul.f32 1.442695, %v1861_v22  ;;  %v1995_v40 = vmul.f32 1.442695, %v1862_v59  ;;  %1786 = vmax.xlane.f32.xlu1 %v7042_v12  ;;  %v1830_v25 = vmax.f32 %v6023_v15, %v6030_v2 }
 0x3da   : > { %v1676_v26 = vpop.xlane.xlu1 %1675 }
 0x3db   : > { %4173 = vpow2.f32 %v1993_v63  ;;  %v1863_v14 = vsub.f32 %v5666_v30, %v1676_v26  ;;  %v1864_v51 = vsub.f32 %v5670_v33, %v1676_v26 }
 0x3dc   : > { %4175 = vpow2.f32 %v1995_v40  ;;  %1831 = vmax.xlane.f32.xlu0 %v1830_v25 }
 0x3dd   : > { %v4166_v31 = vpop.eup %4165  ;;  %v1997_v44 = vmul.f32 1.442695, %v1863_v14  ;;  %v1999_v13 = vmul.f32 1.442695, %v1864_v51  ;;  %1828 = vmax.xlane.f32.xlu1 %v1827_v27  ;;  %v6039_v22 = vpop.f32.mrb[100].mxu0  ;;  %v7046_v27 = vmax.f32 %v5893_v35, %v5895_v8 }
 0x3de   : > { %7043 = vst [vmem:[#allocation112_spill] sm:$0xff] %v6039_v22  ;;  %v4168_v59 = vpop.eup %4167  ;;  %v1679_v56 = vpop.xlane.xlu1 %1678 }
 0x3df   : > { %v6041_v12 = vpop.f32.mrb[101].mxu0  ;;  %v4170_v24 = vpop.eup %4169  ;;  %4177 = vpow2.f32 %v1997_v44  ;;  %v1865_v63 = vsub.f32 %v5674_v34, %v1679_v56  ;;  %v1866_v30 = vsub.f32 %v5676_v38, %v1679_v56  ;;  %v6054_v51 = vadd.f32 %v4168_v59, %v4166_v31 }
 0x3e0   : > { %7044 = vst [vmem:[#allocation113_spill] sm:$0xff] %v6041_v12  ;;  %v1833_v33 = vmax.f32 %v6039_v22, %v6041_v12  ;;  %v6047_v40 = vpop.f32.mrb[102].mxu0  ;;  %v4172_v25 = vpop.eup %4171  ;;  %4179 = vpow2.f32 %v1999_v13  ;;  %1795 = vmax.xlane.f32.xlu0 %v7046_v27  ;;  %v2449_v14 = vpack.c.bf16 %v4170_v24, %v4166_v31  ;;  %v7048_v56 = vmax.f32 %v5880_v1, %v5884_v3 }
 0x3e1   : > { %7045 = vst [vmem:[#allocation114_spill] sm:$0xff] %v6047_v40  ;;  %v6052_v26 = vpop.f32.mrb[103].mxu0  ;;  %v2001_v44 = vmul.f32 1.442695, %v1865_v63  ;;  %v2003_v34 = vmul.f32 1.442695, %v1866_v30  ;;  %v2450_v12 = vpack.c.bf16 %v4172_v25, %v4168_v59  ;;  %v6061_v22 = vadd.f32 %v4172_v25, %v4170_v24 }
 0x3e2   : > { %7047 = vst [vmem:[#allocation115_spill] sm:$0xff] %v6052_v26  ;;  %v1836_v38 = vmax.f32 %v6047_v40, %v6052_v26  ;;  %1792 = vmax.xlane.f32.xlu1 %v7048_v56  ;;  %v1682_v13 = vpop.xlane.xlu1 %1681 }
 0x3e3   : > { %4181 = vpow2.f32 %v2001_v44  ;;  %2513 = vmatprep.subr.bf16.mxu1 %v2450_v12  ;;  %v1867_v27 = vsub.f32 %v5678_v41, %v1682_v13  ;;  %v1868_v31 = vsub.f32 %v5682_v48, %v1682_v13 }
 0x3e4   : > { %4183 = vpow2.f32 %v2003_v34  ;;  %2514 = vmatpush1.bf16.xpose.msra.mxu1 %v2449_v14  ;;  %1837 = vmax.xlane.f32.xlu0 %v1836_v38 }
 0x3e5   : > { %v4174_v63 = vpop.eup %4173  ;;  %v2005_v30 = vmul.f32 1.442695, %v1867_v27  ;;  %v2007_v26 = vmul.f32 1.442695, %v1868_v31  ;;  %v6065_v40 = vpop.f32.mrb[104].mxu0 }
 0x3e6   : > { %1834 = vmax.xlane.f32.xlu1 %v1833_v33  ;;  %7049 = vst [vmem:[#allocation116_spill] sm:$0xff] %v6065_v40  ;;  %v4176_v56 = vpop.eup %4175  ;;  %v1685_v59 = vpop.xlane.xlu1 %1684  ;;  %v7051_v33 = vmax.f32 %v5923_v6, %v5925_v21 }
 0x3e7   : > { %v6067_v3 = vpop.f32.mrb[105].mxu0  ;;  %4185 = vpow2.f32 %v2005_v30  ;;  %v1869_v24 = vsub.f32 %v5686_v54, %v1685_v59  ;;  %v1870_v41 = vsub.f32 %v5688_v53, %v1685_v59  ;;  %v6080_v14 = vadd.f32 %v4176_v56, %v4174_v63 }
 0x3e8   : > { %7050 = vst [vmem:[#allocation117_spill] sm:$0xff] %v6067_v3  ;;  %v1839_v48 = vmax.f32 %v6065_v40, %v6067_v3  ;;  %v6073_v12 = vpop.f32.mrb[106].mxu0  ;;  %4187 = vpow2.f32 %v2007_v26  ;;  %1801 = vmax.xlane.f32.xlu0 %v7051_v33  ;;  %v7052_v53 = vmax.f32 %v5910_v7, %v5914_v57 }
 0x3e9   : > { %v6078_v25 = vpop.f32.mrb[107].mxu0  ;;  %v4178_v44 = vpop.eup %4177  ;;  %v2009_v34 = vmul.f32 1.442695, %v1869_v24  ;;  %v2011_v38 = vmul.f32 1.442695, %v1870_v41 }
 0x3ea   : > { %v1842_v54 = vmax.f32 %v6073_v12, %v6078_v25  ;;  %1798 = vmax.xlane.f32.xlu1 %v7052_v53  ;;  %v4180_v13 = vpop.eup %4179  ;;  %v1688_v26 = vpop.xlane.xlu1 %1687  ;;  %v2451_v27 = vpack.c.bf16 %v4178_v44, %v4174_v63 }
 0x3eb   : > { %4189 = vpow2.f32 %v2009_v34  ;;  %v1871_v31 = vsub.f32 %v5690_v61, %v1688_v26  ;;  %v1872_v30 = vsub.f32 %v5694_v16, %v1688_v26  ;;  %v2452_v59 = vpack.c.bf16 %v4180_v13, %v4176_v56 }
 0x3ec   : > { %4191 = vpow2.f32 %v2011_v38  ;;  %1843 = vmax.xlane.f32.xlu0 %v1842_v54  ;;  %v6089_v24 = vadd.f32 %v4180_v13, %v4178_v44 }
 0x3ed   : > { %v4182_v41 = vpop.eup %4181  ;;  %v2013_v33 = vmul.f32 1.442695, %v1871_v31  ;;  %v2015_v3 = vmul.f32 1.442695, %v1872_v30  ;;  %2515 = vmatprep.subr.bf16.mxu1 %v2452_v59  ;;  %v6091_v40 = vpop.f32.mrb[108].mxu0 }
 0x3ee   : > { %1840 = vmax.xlane.f32.xlu1 %v1839_v48  ;;  %7053 = vst [vmem:[#allocation118_spill] sm:$0xff] %v6091_v40  ;;  %v4184_v53 = vpop.eup %4183  ;;  %2516 = vmatpush1.bf16.xpose.msra.mxu1 %v2451_v27  ;;  %v1691_v63 = vpop.xlane.xlu1 %1690  ;;  %v7055_v48 = vmax.f32 %v5953_v52, %v5955_v58 }
 0x3ef   : > { %v6093_v34 = vpop.f32.mrb[109].mxu0  ;;  %4193 = vpow2.f32 %v2013_v33  ;;  %v1873_v61 = vsub.f32 %v5698_v32, %v1691_v63  ;;  %v1874_v16 = vsub.f32 %v5700_v28, %v1691_v63  ;;  %v2253_v54 = vadd.f32 %v4184_v53, %v4182_v41 }
 0x3f0   : > { %7054 = vst [vmem:[#allocation119_spill] sm:$0xff] %v6093_v34  ;;  %v1845_v56 = vmax.f32 %v6091_v40, %v6093_v34  ;;  %v6099_v44 = vpop.f32.mrb[110].mxu0  ;;  %4195 = vpow2.f32 %v2015_v3  ;;  %1807 = vmax.xlane.f32.xlu0 %v7055_v48  ;;  %v7057_v28 = vmax.f32 %v5940_v18, %v5944_v19 }
 0x3f1   : > { %v6104_v38 = vpop.f32.mrb[111].mxu0  ;;  %v4186_v13 = vpop.eup %4185  ;;  %v2017_v26 = vmul.f32 1.442695, %v1873_v61  ;;  %v2019_v27 = vmul.f32 1.442695, %v1874_v16 }
 0x3f2   : > { %7056 = vst [vmem:[#allocation120_spill] sm:$0xff] %v6104_v38  ;;  %v1848_v32 = vmax.f32 %v6099_v44, %v6104_v38  ;;  %1804 = vmax.xlane.f32.xlu1 %v7057_v28  ;;  %v4188_v31 = vpop.eup %4187  ;;  %v1694_v30 = vpop.xlane.xlu1 %1693  ;;  %v2453_v3 = vpack.c.bf16 %v4186_v13, %v4182_v41 }
 0x3f3   : > { %4197 = vpow2.f32 %v2017_v26  ;;  %v1875_v59 = vsub.f32 %v5702_v45, %v1694_v30  ;;  %v1876_v33 = vsub.f32 %v5706_v9, %v1694_v30  ;;  %v2454_v63 = vpack.c.bf16 %v4188_v31, %v4184_v53 }
 0x3f4   : > { %4199 = vpow2.f32 %v2019_v27  ;;  %1849 = vmax.xlane.f32.xlu0 %v1848_v32  ;;  %v2256_v61 = vadd.f32 %v4188_v31, %v4186_v13 }
 0x3f5   : > { %v4190_v16 = vpop.eup %4189  ;;  %v2021_v48 = vmul.f32 1.442695, %v1875_v59  ;;  %v2023_v34 = vmul.f32 1.442695, %v1876_v33  ;;  %2517 = vmatprep.subr.bf16.mxu1 %v2454_v63  ;;  %v6113_v40 = vpop.f32.mrb[112].mxu0 }
 0x3f6   : > { %1846 = vmax.xlane.f32.xlu1 %v1845_v56  ;;  %7058 = vst [vmem:[#allocation121_spill] sm:$0xff] %v6113_v40  ;;  %v4192_v28 = vpop.eup %4191  ;;  %2518 = vmatpush1.bf16.xpose.msra.mxu1 %v2453_v3  ;;  %v6115_v38 = vpop.f32.mrb[113].mxu0 }
 0x3f7   : > { %7059 = vst [vmem:[#allocation122_spill] sm:$0xff] %v6115_v38  ;;  %4201 = vpow2.f32 %v2021_v48  ;;  %v1851_v45 = vmax.f32 %v6113_v40, %v6115_v38  ;;  %v6119_v9 = vpop.f32.mrb[114].mxu0  ;;  %v2259_v41 = vadd.f32 %v4192_v28, %v4190_v16 }
 0x3f8   : > { %7060 = vst [vmem:[#allocation123_spill] sm:$0xff] %v6119_v9  ;;  %4203 = vpow2.f32 %v2023_v34  ;;  %v1700_v53 = vpop.xlane.xlu0 %1699  ;;  %v6121_v13 = vpop.f32.mrb[115].mxu0 }
 0x3f9   : > { %7061 = vst [vmem:[#allocation124_spill] sm:$0xff] %v6121_v13  ;;  %v4194_v26 = vpop.eup %4193  ;;  %v1879_v56 = vsub.f32 %v5714_v23, %v1700_v53  ;;  %v1880_v27 = vsub.f32 %v5718_v50, %v1700_v53  ;;  %v1854_v32 = vmax.f32 %v6119_v9, %v6121_v13 }
 0x3fa   : > { %1852 = vmax.xlane.f32.xlu1 %v1851_v45  ;;  %v4196_v31 = vpop.eup %4195  ;;  %v2455_v30 = vpack.c.bf16 %v4194_v26, %v4190_v16 }
 0x3fb   : > { %v2029_v3 = vmul.f32 1.442695, %v1879_v56  ;;  %v2031_v59 = vmul.f32 1.442695, %v1880_v27  ;;  %1855 = vmax.xlane.f32.xlu0 %v1854_v32  ;;  %v2456_v33 = vpack.c.bf16 %v4196_v31, %v4192_v28  ;;  %v2262_v63 = vadd.f32 %v4196_v31, %v4194_v26 }
 0x3fd   : > { %v4198_v34 = vpop.eup %4197  ;;  %4205 = vpow2.f32 %v2029_v3  ;;  %2519 = vmatprep.subr.bf16.mxu1 %v2456_v33  ;;  %v7063_v33 = vld [vmem:[#allocation67_spill] sm:$0xff] }
 0x3fe   : > { %2242 = vadd.xlane.f32.xlu1 %v6054_v51  ;;  %v4200_v48 = vpop.eup %4199  ;;  %4207 = vpow2.f32 %v2031_v59  ;;  %2520 = vmatpush1.bf16.xpose.msra.mxu1 %v2455_v30 }
 0x3ff   : > { %2245 = vadd.xlane.f32.xlu0 %v6061_v22  ;;  %v6129_v50 = vadd.f32 %v4200_v48, %v4198_v34 }
 0x401   : > { %v4202_v23 = vpop.eup %4201 }
 0x402   : > { %2248 = vadd.xlane.f32.xlu1 %v6080_v14  ;;  %v4204_v16 = vpop.eup %4203  ;;  %v2457_v45 = vpack.c.bf16 %v4202_v23, %v4198_v34  ;;  %v7064_v34 = vld [vmem:[#allocation68_spill] sm:$0xff] }
 0x403   : > { %2251 = vadd.xlane.f32.xlu0 %v6089_v24  ;;  %v2458_v28 = vpack.c.bf16 %v4204_v16, %v4200_v48  ;;  %v6133_v53 = vadd.f32 %v4204_v16, %v4202_v23  ;;  %v7065_v16 = vld [vmem:[#allocation69_spill] sm:$0xff] }
 0x405   : > { %2521 = vmatprep.subr.bf16.mxu1 %v2458_v28  ;;  %v7066_v28 = vld [vmem:[#allocation70_spill] sm:$0xff] }
 0x406   : > { %2254 = vadd.xlane.f32.xlu1 %v2253_v54  ;;  %2522 = vmatpush1.bf16.xpose.msra.mxu1 %v2457_v45 }
 0x407   : > { %v6135_v51 = vpop.eup %4205  ;;  %2257 = vadd.xlane.f32.xlu0 %v2256_v61  ;;  %v7062_v61 = vld [vmem:[#allocation64_spill] sm:$0xff] }
 0x408   : > { %v6137_v26 = vpop.eup %4207 }
 0x409   : > { %v6141_v22 = vadd.f32 %v6137_v26, %v6135_v51 }
 0x40a   : > { %2260 = vadd.xlane.f32.xlu1 %v2259_v41 }
 0x40b   : > { %2263 = vadd.xlane.f32.xlu0 %v2262_v63 }
 0x40e   : > { %v1715_v14 = vpop.xlane.xlu1 %1714 }
 0x40f   : > { %v1889_v24 = vsub.f32 %v5746_v39, %v1715_v14  ;;  %v1890_v56 = vsub.f32 %v5748_v4, %v1715_v14 }
 0x411   : > { %v2049_v27 = vmul.f32 1.442695, %v1889_v24  ;;  %v2051_v32 = vmul.f32 1.442695, %v1890_v56 }
 0x412   : > { %v1718_v54 = vpop.xlane.xlu1 %1717 }
 0x413   : > { %4209 = vpow2.f32 %v2049_v27  ;;  %v1891_v31 = vsub.f32 %v5750_v5, %v1718_v54  ;;  %v1892_v30 = vsub.f32 %v7062_v61, %v1718_v54  ;;  %v7067_v54 = vld [vmem:[#allocation73_spill] sm:$0xff]  ;;  %v7068_v61 = vld [vmem:[#allocation74_spill] sm:$0xff] }
 0x414   : > { %4211 = vpow2.f32 %v2051_v32 }
 0x415   : > { %v2053_v41 = vmul.f32 1.442695, %v1891_v31  ;;  %v2055_v3 = vmul.f32 1.442695, %v1892_v30 }
 0x416   : > { %v1721_v59 = vpop.xlane.xlu1 %1720 }
 0x417   : > { %4213 = vpow2.f32 %v2053_v41  ;;  %v1893_v63 = vsub.f32 %v7063_v33, %v1721_v59  ;;  %v1894_v48 = vsub.f32 %v7064_v34, %v1721_v59 }
 0x418   : > { %4215 = vpow2.f32 %v2055_v3 }
 0x419   : > { %v2057_v39 = vmul.f32 1.442695, %v1893_v63  ;;  %v2059_v4 = vmul.f32 1.442695, %v1894_v48 }
 0x41a   : > { %v1724_v23 = vpop.xlane.xlu1 %1723 }
 0x41b   : > { %4217 = vpow2.f32 %v2057_v39  ;;  %v1895_v45 = vsub.f32 %v7065_v16, %v1724_v23  ;;  %v1896_v5 = vsub.f32 %v7066_v28, %v1724_v23  ;;  %v7070_v39 = vld [vmem:[#allocation75_spill] sm:$0xff]  ;;  %v7071_v23 = vld [vmem:[#allocation77_spill] sm:$0xff] }
 0x41c   : > { %4219 = vpow2.f32 %v2059_v4 }
 0x41d   : > { %v4210_v14 = vpop.eup %4209  ;;  %v2061_v24 = vmul.f32 1.442695, %v1895_v45  ;;  %v2063_v56 = vmul.f32 1.442695, %v1896_v5 }
 0x41e   : > { %v4212_v27 = vpop.eup %4211  ;;  %v1727_v32 = vpop.xlane.xlu1 %1726 }
 0x41f   : > { %4221 = vpow2.f32 %v2061_v24  ;;  %v1897_v31 = vsub.f32 %v7067_v54, %v1727_v32  ;;  %v1898_v30 = vsub.f32 %v7068_v61, %v1727_v32  ;;  %v6153_v41 = vadd.f32 %v4212_v27, %v4210_v14 }
 0x420   : > { %4223 = vpow2.f32 %v2063_v56 }
 0x421   : > { %7069 = vst [vmem:[#allocation64_spill] sm:$0xff] %v6153_v41  ;;  %v4214_v3 = vpop.eup %4213  ;;  %v2065_v59 = vmul.f32 1.442695, %v1897_v31  ;;  %v2067_v33 = vmul.f32 1.442695, %v1898_v30  ;;  %v7072_v31 = vld [vmem:[#allocation81_spill] sm:$0xff] }
 0x422   : > { %v4216_v63 = vpop.eup %4215  ;;  %v1730_v34 = vpop.xlane.xlu1 %1729  ;;  %v2465_v48 = vpack.c.bf16 %v4214_v3, %v4210_v14  ;;  %v7073_v14 = vld [vmem:[#allocation82_spill] sm:$0xff] }
 0x423   : > { %4225 = vpow2.f32 %v2065_v59  ;;  %v1899_v4 = vsub.f32 %v7070_v39, %v1730_v34  ;;  %v1900_v16 = vsub.f32 %v7071_v23, %v1730_v34  ;;  %v2466_v45 = vpack.c.bf16 %v4216_v63, %v4212_v27 }
 0x424   : > { %4227 = vpow2.f32 %v2067_v33  ;;  %v6157_v28 = vadd.f32 %v4216_v63, %v4214_v3 }
 0x425   : > { %v4218_v5 = vpop.eup %4217  ;;  %v2069_v24 = vmul.f32 1.442695, %v1899_v4  ;;  %v2071_v32 = vmul.f32 1.442695, %v1900_v16  ;;  %2562 = vmatprep.subr.bf16.mxu0 %v2466_v45  ;;  %v7074_v4 = vld [vmem:[#allocation83_spill] sm:$0xff]  ;;  %v7075_v16 = vld [vmem:[#allocation84_spill] sm:$0xff] }
 0x426   : > { %v4220_v56 = vpop.eup %4219  ;;  %2563 = vmatpush1.bf16.xpose.msra.mxu0 %v2465_v48  ;;  %v1733_v54 = vpop.xlane.xlu1 %1732 }
 0x427   : > { %4229 = vpow2.f32 %v2069_v24  ;;  %v1901_v61 = vsub.f32 %v7072_v31, %v1733_v54  ;;  %v1902_v30 = vsub.f32 %v7073_v14, %v1733_v54  ;;  %v6161_v59 = vadd.f32 %v4220_v56, %v4218_v5 }
 0x428   : > { %4231 = vpow2.f32 %v2071_v32 }
 0x429   : > { %v4222_v34 = vpop.eup %4221  ;;  %v2073_v27 = vmul.f32 1.442695, %v1901_v61  ;;  %v2075_v33 = vmul.f32 1.442695, %v1902_v30  ;;  %v7077_v30 = vld [vmem:[#allocation54_spill] sm:$0xff] }
 0x42a   : > { %v4224_v3 = vpop.eup %4223  ;;  %v1736_v63 = vpop.xlane.xlu1 %1735  ;;  %v2467_v39 = vpack.c.bf16 %v4222_v34, %v4218_v5  ;;  %v7078_v5 = vld [vmem:[#allocation55_spill] sm:$0xff] }
 0x42b   : > { %4233 = vpow2.f32 %v2073_v27  ;;  %v1903_v23 = vsub.f32 %v7074_v4, %v1736_v63  ;;  %v1904_v48 = vsub.f32 %v7075_v16, %v1736_v63  ;;  %v2468_v45 = vpack.c.bf16 %v4224_v3, %v4220_v56 }
 0x42c   : > { %4235 = vpow2.f32 %v2075_v33  ;;  %v6165_v24 = vadd.f32 %v4224_v3, %v4222_v34  ;;  %v7080_v3 = vld [vmem:[#allocation88_spill] sm:$0xff] }
 0x42d   : > { %v4226_v31 = vpop.eup %4225  ;;  %v2077_v54 = vmul.f32 1.442695, %v1903_v23  ;;  %v2079_v14 = vmul.f32 1.442695, %v1904_v48  ;;  %2564 = vmatprep.subr.bf16.mxu0 %v2468_v45  ;;  %v7081_v23 = vld [vmem:[#allocation89_spill] sm:$0xff] }
 0x42e   : > { %7076 = vst [vmem:[#allocation67_spill] sm:$0xff] %v6165_v24  ;;  %v4228_v32 = vpop.eup %4227  ;;  %2565 = vmatpush1.bf16.xpose.msra.mxu0 %v2467_v39  ;;  %v1697_v61 = vpop.xlane.xlu1 %1696 }
 0x42f   : > { %4237 = vpow2.f32 %v2077_v54  ;;  %v1877_v41 = vsub.f32 %v7077_v30, %v1697_v61  ;;  %v1878_v27 = vsub.f32 %v7078_v5, %v1697_v61  ;;  %v6169_v13 = vadd.f32 %v4228_v32, %v4226_v31  ;;  %v7082_v30 = vld [vmem:[#allocation86_spill] sm:$0xff]  ;;  %v7083_v61 = vld [vmem:[#allocation87_spill] sm:$0xff] }
 0x430   : > { %4239 = vpow2.f32 %v2079_v14  ;;  %v1742_v63 = vpop.xlane.xlu0 %1741 }
 0x431   : > { %7079 = vst [vmem:[#allocation68_spill] sm:$0xff] %v6169_v13  ;;  %v4230_v56 = vpop.eup %4229  ;;  %v2025_v33 = vmul.f32 1.442695, %v1877_v41  ;;  %v2027_v34 = vmul.f32 1.442695, %v1878_v27  ;;  %v1907_v4 = vsub.f32 %v7080_v3, %v1742_v63  ;;  %v1908_v16 = vsub.f32 %v7081_v23, %v1742_v63  ;;  %v7085_v3 = vld [vmem:[#allocation58_spill] sm:$0xff] }
 0x432   : > { %v4232_v48 = vpop.eup %4231  ;;  %v1739_v45 = vpop.xlane.xlu1 %1738  ;;  %v2469_v39 = vpack.c.bf16 %v4230_v56, %v4226_v31  ;;  %v7086_v23 = vld [vmem:[#allocation59_spill] sm:$0xff] }
 0x433   : > { %4241 = vpow2.f32 %v2025_v33  ;;  %v2085_v54 = vmul.f32 1.442695, %v1907_v4  ;;  %v2087_v24 = vmul.f32 1.442695, %v1908_v16  ;;  %v1905_v9 = vsub.f32 %v7082_v30, %v1739_v45 }
 0x434   : > { %4243 = vpow2.f32 %v2027_v34  ;;  %v1906_v5 = vsub.f32 %v7083_v61, %v1739_v45  ;;  %v2470_v14 = vpack.c.bf16 %v4232_v48, %v4228_v32  ;;  %v1706_v13 = vpop.xlane.xlu0 %1705  ;;  %v6175_v38 = vadd.f32 %v4232_v48, %v4230_v56  ;;  %v7087_v32 = vld [vmem:[#allocation56_spill] sm:$0xff]  ;;  %v7088_v56 = vld [vmem:[#allocation57_spill] sm:$0xff] }
 0x435   : > { %v4234_v41 = vpop.eup %4233  ;;  %4245 = vpow2.f32 %v2085_v54  ;;  %v2081_v27 = vmul.f32 1.442695, %v1905_v9  ;;  %v1883_v63 = vsub.f32 %v7085_v3, %v1706_v13  ;;  %v1884_v40 = vsub.f32 %v7086_v23, %v1706_v13  ;;  %v7090_v61 = vld [vmem:[#allocation93_spill] sm:$0xff] }
 0x436   : > { %7084 = vst [vmem:[#allocation69_spill] sm:$0xff] %v6175_v38  ;;  %v4236_v31 = vpop.eup %4235  ;;  %4247 = vpow2.f32 %v2087_v24  ;;  %v2083_v33 = vmul.f32 1.442695, %v1906_v5  ;;  %2566 = vmatprep.subr.bf16.mxu0 %v2470_v14  ;;  %v1703_v4 = vpop.xlane.xlu1 %1702  ;;  %v7091_v5 = vld [vmem:[#allocation94_spill] sm:$0xff] }
 0x437   : > { %4249 = vpow2.f32 %v2081_v27  ;;  %v2037_v34 = vmul.f32 1.442695, %v1883_v63  ;;  %v2039_v16 = vmul.f32 1.442695, %v1884_v40  ;;  %2567 = vmatpush1.bf16.xpose.msra.mxu0 %v2469_v39  ;;  %v1881_v45 = vsub.f32 %v7087_v32, %v1703_v4  ;;  %v7093_v32 = vld [vmem:[#allocation92_spill] sm:$0xff] }
 0x438   : > { %4251 = vpow2.f32 %v2083_v33  ;;  %v1882_v48 = vsub.f32 %v7088_v56, %v1703_v4  ;;  %v1748_v54 = vpop.xlane.xlu0 %1747  ;;  %v6181_v9 = vadd.f32 %v4236_v31, %v4234_v41  ;;  %v7092_v33 = vld [vmem:[#allocation91_spill] sm:$0xff] }
 0x439   : > { %v4238_v30 = vpop.eup %4237  ;;  %4253 = vpow2.f32 %v2037_v34  ;;  %v2033_v13 = vmul.f32 1.442695, %v1881_v45  ;;  %v1911_v24 = vsub.f32 %v7090_v61, %v1748_v54  ;;  %v1912_v14 = vsub.f32 %v7091_v5, %v1748_v54  ;;  %v7095_v5 = vld [vmem:[#allocation62_spill] sm:$0xff] }
 0x43a   : > { %7089 = vst [vmem:[#allocation70_spill] sm:$0xff] %v6181_v9  ;;  %v4240_v3 = vpop.eup %4239  ;;  %4255 = vpow2.f32 %v2039_v16  ;;  %v2035_v27 = vmul.f32 1.442695, %v1882_v48  ;;  %v1745_v40 = vpop.xlane.xlu1 %1744  ;;  %v2471_v39 = vpack.c.bf16 %v4238_v30, %v4234_v41  ;;  %v7096_v48 = vld [vmem:[#allocation63_spill] sm:$0xff] }
 0x43b   : > { %4257 = vpow2.f32 %v2033_v13  ;;  %v2093_v63 = vmul.f32 1.442695, %v1911_v24  ;;  %v2095_v23 = vmul.f32 1.442695, %v1912_v14  ;;  %v1909_v4 = vsub.f32 %v7092_v33, %v1745_v40  ;;  %v7098_v33 = vld [vmem:[#allocation61_spill] sm:$0xff] }
 0x43c   : > { %4259 = vpow2.f32 %v2035_v27  ;;  %v1910_v56 = vsub.f32 %v7093_v32, %v1745_v40  ;;  %v2472_v9 = vpack.c.bf16 %v4240_v3, %v4236_v31  ;;  %v1712_v34 = vpop.xlane.xlu0 %1711  ;;  %v6187_v45 = vadd.f32 %v4240_v3, %v4238_v30  ;;  %v7097_v30 = vld [vmem:[#allocation60_spill] sm:$0xff] }
 0x43d   : > { %v4242_v61 = vpop.eup %4241  ;;  %4261 = vpow2.f32 %v2093_v63  ;;  %v2089_v54 = vmul.f32 1.442695, %v1909_v4  ;;  %v1887_v16 = vsub.f32 %v7095_v5, %v1712_v34  ;;  %v1888_v38 = vsub.f32 %v7096_v48, %v1712_v34 }
 0x43e   : > { %7094 = vst [vmem:[#allocation73_spill] sm:$0xff] %v6187_v45  ;;  %v4244_v41 = vpop.eup %4243  ;;  %4263 = vpow2.f32 %v2095_v23  ;;  %v2091_v13 = vmul.f32 1.442695, %v1910_v56  ;;  %2568 = vmatprep.subr.bf16.mxu0 %v2472_v9  ;;  %v1709_v24 = vpop.xlane.xlu1 %1708  ;;  %v2459_v14 = vpack.c.bf16 %v6135_v51, %v4242_v61  ;;  %v7099_v51 = vld [vmem:[#allocation98_spill] sm:$0xff] }
 0x43f   : > { %v4246_v27 = vpop.eup %4245  ;;  %4265 = vpow2.f32 %v2089_v54  ;;  %v2045_v31 = vmul.f32 1.442695, %v1887_v16  ;;  %v2047_v40 = vmul.f32 1.442695, %v1888_v38  ;;  %2569 = vmatpush1.bf16.xpose.msra.mxu0 %v2471_v39  ;;  %v1885_v3 = vsub.f32 %v7097_v30, %v1709_v24  ;;  %v7100_v54 = vld [vmem:[#allocation99_spill] sm:$0xff]  ;;  %v7106_v45 = vld [vmem:[#allocation66_spill] sm:$0xff] }
 0x440   : > { %v4248_v63 = vpop.eup %4247  ;;  %4267 = vpow2.f32 %v2091_v13  ;;  %v1886_v4 = vsub.f32 %v7098_v33, %v1709_v24  ;;  %v2460_v32 = vpack.c.bf16 %v6137_v26, %v4244_v41  ;;  %v1754_v34 = vpop.xlane.xlu0 %1753  ;;  %v6195_v23 = vadd.f32 %v4244_v41, %v4242_v61  ;;  %v7102_v41 = vld [vmem:[#allocation96_spill] sm:$0xff]  ;;  %v7103_v33 = vld [vmem:[#allocation97_spill] sm:$0xff] }
 0x441   : > { %v4250_v9 = vpop.eup %4249  ;;  %4269 = vpow2.f32 %v2045_v31  ;;  %v2041_v56 = vmul.f32 1.442695, %v1885_v3  ;;  %v1915_v5 = vsub.f32 %v7099_v51, %v1754_v34  ;;  %v1916_v16 = vsub.f32 %v7100_v54, %v1754_v34 }
 0x442   : > { %v4252_v38 = vpop.eup %4251  ;;  %4271 = vpow2.f32 %v2047_v40  ;;  %v2043_v39 = vmul.f32 1.442695, %v1886_v4  ;;  %2523 = vmatprep.subr.bf16.mxu1 %v2460_v32  ;;  %v1751_v48 = vpop.xlane.xlu1 %1750  ;;  %v2473_v13 = vpack.c.bf16 %v4246_v27, %v4250_v9  ;;  %v6199_v30 = vadd.f32 %v4248_v63, %v4246_v27  ;;  %v7105_v27 = vld [vmem:[#allocation65_spill] sm:$0xff] }
 0x443   : > { %v4254_v24 = vpop.eup %4253  ;;  %4273 = vpow2.f32 %v2041_v56  ;;  %v2101_v26 = vmul.f32 1.442695, %v1915_v5  ;;  %v2103_v61 = vmul.f32 1.442695, %v1916_v16  ;;  %2524 = vmatpush1.bf16.xpose.msra.mxu1 %v2459_v14  ;;  %v1913_v31 = vsub.f32 %v7102_v41, %v1751_v48 }
 0x444   : > { %7101 = vst [vmem:[#allocation74_spill] sm:$0xff] %v6199_v30  ;;  %v4256_v3 = vpop.eup %4255  ;;  %4275 = vpow2.f32 %v2043_v39  ;;  %v1914_v51 = vsub.f32 %v7103_v33, %v1751_v48  ;;  %v2474_v34 = vpack.c.bf16 %v4248_v63, %v4252_v38  ;;  %v1766_v54 = vpop.xlane.xlu0 %1765  ;;  %v6203_v40 = vadd.f32 %v4252_v38, %v4250_v9 }
 0x445   : > { %v4258_v4 = vpop.eup %4257  ;;  %4277 = vpow2.f32 %v2101_v26  ;;  %v2097_v32 = vmul.f32 1.442695, %v1913_v31  ;;  %v1923_v30 = vsub.f32 %v7105_v27, %v1766_v54  ;;  %v1924_v56 = vsub.f32 %v7106_v45, %v1766_v54  ;;  %v7108_v27 = vld [vmem:[#allocation103_spill] sm:$0xff] }
 0x446   : > { %7104 = vst [vmem:[#allocation75_spill] sm:$0xff] %v6203_v40  ;;  %v4260_v5 = vpop.eup %4259  ;;  %4279 = vpow2.f32 %v2103_v61  ;;  %v2099_v14 = vmul.f32 1.442695, %v1914_v51  ;;  %2570 = vmatprep.subr.bf16.mxu0 %v2474_v34  ;;  %v1763_v16 = vpop.xlane.xlu1 %1762  ;;  %v2461_v41 = vpack.c.bf16 %v4254_v24, %v4258_v4  ;;  %v6207_v39 = vadd.f32 %v4256_v3, %v4254_v24  ;;  %v7107_v24 = vld [vmem:[#allocation102_spill] sm:$0xff] }
 0x447   : > { %v4262_v48 = vpop.eup %4261  ;;  %4281 = vpow2.f32 %v2097_v32  ;;  %v2117_v63 = vmul.f32 1.442695, %v1923_v30  ;;  %v2119_v9 = vmul.f32 1.442695, %v1924_v56  ;;  %2571 = vmatpush1.bf16.xpose.msra.mxu0 %v2473_v13  ;;  %v1921_v38 = vsub.f32 %v5754_v60, %v1763_v16 }
 0x448   : > { %v4264_v26 = vpop.eup %4263  ;;  %4283 = vpow2.f32 %v2099_v14  ;;  %v1922_v31 = vsub.f32 %v5758_v62, %v1763_v16  ;;  %v2462_v45 = vpack.c.bf16 %v4256_v3, %v4260_v5  ;;  %v1760_v33 = vpop.xlane.xlu0 %1759  ;;  %v6211_v61 = vadd.f32 %v4260_v5, %v4258_v4  ;;  %v7110_v5 = vld [vmem:[#allocation100_spill] sm:$0xff] }
 0x449   : > { %v4266_v51 = vpop.eup %4265  ;;  %4285 = vpow2.f32 %v2117_v63  ;;  %v2113_v34 = vmul.f32 1.442695, %v1921_v38  ;;  %v1919_v54 = vsub.f32 %v7107_v24, %v1760_v33  ;;  %v1920_v32 = vsub.f32 %v7108_v27, %v1760_v33  ;;  %v7111_v38 = vld [vmem:[#allocation101_spill] sm:$0xff] }
 0x44a   : > { %v4268_v30 = vpop.eup %4267  ;;  %4287 = vpow2.f32 %v2119_v9  ;;  %v2115_v13 = vmul.f32 1.442695, %v1922_v31  ;;  %2525 = vmatprep.subr.bf16.mxu1 %v2462_v45  ;;  %v1757_v60 = vpop.xlane.xlu1 %1756  ;;  %v2475_v56 = vpack.c.bf16 %v4262_v48, %v4266_v51  ;;  %v6215_v14 = vadd.f32 %v4264_v26, %v4262_v48 }
 0x44b   : > { %v4270_v62 = vpop.eup %4269  ;;  %4289 = vpow2.f32 %v2113_v34  ;;  %v2109_v3 = vmul.f32 1.442695, %v1919_v54  ;;  %v2111_v4 = vmul.f32 1.442695, %v1920_v32  ;;  %2526 = vmatpush1.bf16.xpose.msra.mxu1 %v2461_v41  ;;  %v1917_v16 = vsub.f32 %v7110_v5, %v1757_v60 }
 0x44c   : > { %7109 = vst [vmem:[#allocation77_spill] sm:$0xff] %v6215_v14  ;;  %v4272_v63 = vpop.eup %4271  ;;  %4291 = vpow2.f32 %v2115_v13  ;;  %v1918_v24 = vsub.f32 %v7111_v38, %v1757_v60  ;;  %v2476_v33 = vpack.c.bf16 %v4264_v26, %v4268_v30  ;;  %v1772_v27 = vpop.xlane.xlu0 %1771  ;;  %v6219_v9 = vadd.f32 %v4268_v30, %v4266_v51  ;;  %v7113_v14 = vld [vmem:[#allocation72_spill] sm:$0xff] }
 0x44d   : > { %v4274_v31 = vpop.eup %4273  ;;  %4293 = vpow2.f32 %v2109_v3  ;;  %v2105_v45 = vmul.f32 1.442695, %v1917_v16  ;;  %v1927_v48 = vsub.f32 %v5786_v47, %v1772_v27  ;;  %v1928_v34 = vsub.f32 %v7113_v14, %v1772_v27  ;;  %v7114_v47 = vld [vmem:[#allocation71_spill] sm:$0xff] }
 0x44e   : > { %7112 = vst [vmem:[#allocation81_spill] sm:$0xff] %v6219_v9  ;;  %v4276_v54 = vpop.eup %4275  ;;  %4295 = vpow2.f32 %v2111_v4  ;;  %v2107_v41 = vmul.f32 1.442695, %v1918_v24  ;;  %2572 = vmatprep.subr.bf16.mxu0 %v2476_v33  ;;  %v1769_v32 = vpop.xlane.xlu1 %1768  ;;  %v2463_v5 = vpack.c.bf16 %v4270_v62, %v4274_v31  ;;  %v6223_v13 = vadd.f32 %v4272_v63, %v4270_v62 }
 0x44f   : > { %v4278_v60 = vpop.eup %4277  ;;  %4297 = vpow2.f32 %v2105_v45  ;;  %v2125_v26 = vmul.f32 1.442695, %v1927_v48  ;;  %v2127_v51 = vmul.f32 1.442695, %v1928_v34  ;;  %2573 = vmatpush1.bf16.xpose.msra.mxu0 %v2475_v56  ;;  %v1925_v30 = vsub.f32 %v5778_v46, %v1769_v32 }
 0x450   : > { %v4280_v3 = vpop.eup %4279  ;;  %4299 = vpow2.f32 %v2107_v41  ;;  %v1926_v16 = vsub.f32 %v7114_v47, %v1769_v32  ;;  %v2464_v14 = vpack.c.bf16 %v4272_v63, %v4276_v54  ;;  %v1814_v38 = vpop.xlane.xlu0 %1813  ;;  %v6227_v4 = vadd.f32 %v4276_v54, %v4274_v31  ;;  %v7116_v54 = vld [vmem:[#allocation104_spill] sm:$0xff] }
 0x451   : > { %v4282_v24 = vpop.eup %4281  ;;  %4301 = vpow2.f32 %v2125_v26  ;;  %v2121_v33 = vmul.f32 1.442695, %v1925_v30  ;;  %v1955_v62 = vsub.f32 %v5966_v10, %v1814_v38  ;;  %v1956_v27 = vsub.f32 %v5970_v36, %v1814_v38  ;;  %v7117_v10 = vld [vmem:[#allocation105_spill] sm:$0xff] }
 0x452   : > { %v4284_v45 = vpop.eup %4283  ;;  %4303 = vpow2.f32 %v2127_v51  ;;  %v2123_v56 = vmul.f32 1.442695, %v1926_v16  ;;  %2527 = vmatprep.subr.bf16.mxu1 %v2464_v14  ;;  %v1811_v46 = vpop.xlane.xlu1 %1810  ;;  %v2477_v48 = vpack.c.bf16 %v4278_v60, %v4282_v24  ;;  %v6231_v34 = vadd.f32 %v4280_v3, %v4278_v60  ;;  %v7119_v60 = vld [vmem:[#allocation79_spill] sm:$0xff] }
 0x453   : > { %v4286_v41 = vpop.eup %4285  ;;  %4305 = vpow2.f32 %v2121_v33  ;;  %v2181_v63 = vmul.f32 1.442695, %v1955_v62  ;;  %v2183_v31 = vmul.f32 1.442695, %v1956_v27  ;;  %2528 = vmatpush1.bf16.xpose.msra.mxu1 %v2463_v5  ;;  %v1953_v32 = vsub.f32 %v7116_v54, %v1811_v46 }
 0x454   : > { %7115 = vst [vmem:[#allocation82_spill] sm:$0xff] %v6231_v34  ;;  %v4288_v26 = vpop.eup %4287  ;;  %4307 = vpow2.f32 %v2123_v56  ;;  %v1954_v30 = vsub.f32 %v7117_v10, %v1811_v46  ;;  %v2478_v36 = vpack.c.bf16 %v4280_v3, %v4284_v45  ;;  %v1778_v47 = vpop.xlane.xlu0 %1777  ;;  %v6235_v51 = vadd.f32 %v4284_v45, %v4282_v24  ;;  %v7120_v34 = vld [vmem:[#allocation80_spill] sm:$0xff] }
 0x455   : > { %v4290_v16 = vpop.eup %4289  ;;  %4309 = vpow2.f32 %v2181_v63  ;;  %v2177_v14 = vmul.f32 1.442695, %v1953_v32  ;;  %v1931_v38 = vsub.f32 %v7119_v60, %v1778_v47  ;;  %v1932_v33 = vsub.f32 %v7120_v34, %v1778_v47  ;;  %v7121_v24 = vld [vmem:[#allocation76_spill] sm:$0xff]  ;;  %v7122_v32 = vld [vmem:[#allocation78_spill] sm:$0xff] }
 0x456   : > { %7118 = vst [vmem:[#allocation83_spill] sm:$0xff] %v6235_v51  ;;  %v4292_v62 = vpop.eup %4291  ;;  %4311 = vpow2.f32 %v2183_v31  ;;  %v2179_v5 = vmul.f32 1.442695, %v1954_v30  ;;  %2574 = vmatprep.subr.bf16.mxu0 %v2478_v36  ;;  %v1775_v27 = vpop.xlane.xlu1 %1774  ;;  %v2340_v54 = vadd.f32 %v4288_v26, %v4286_v41  ;;  %v2481_v56 = vpack.c.bf16 %v4286_v41, %v4290_v16  ;;  %v7123_v60 = vld [vmem:[#allocation108_spill] sm:$0xff]  ;;  %v7124_v51 = vld [vmem:[#allocation109_spill] sm:$0xff] }
 0x457   : > { %v4294_v9 = vpop.eup %4293  ;;  %4313 = vpow2.f32 %v2177_v14  ;;  %v2133_v3 = vmul.f32 1.442695, %v1931_v38  ;;  %v2135_v46 = vmul.f32 1.442695, %v1932_v33  ;;  %2575 = vmatpush1.bf16.xpose.msra.mxu0 %v2477_v48  ;;  %v1929_v45 = vsub.f32 %v7121_v24, %v1775_v27  ;;  %v7125_v33 = vld [vmem:[#allocation27_spill] sm:$0xff]  ;;  %v7126_v24 = vld [vmem:[#allocation26_spill] sm:$0xff] }
 0x458   : > { %v4296_v63 = vpop.eup %4295  ;;  %4315 = vpow2.f32 %v2179_v5  ;;  %v1930_v10 = vsub.f32 %v7122_v32, %v1775_v27  ;;  %2341 = vadd.xlane.f32.xlu0 %v2340_v54  ;;  %v2482_v34 = vpack.c.bf16 %v4288_v26, %v4292_v62  ;;  %v1820_v47 = vpop.xlane.xlu0 %1819  ;;  %v2337_v31 = vadd.f32 %v4292_v62, %v4290_v16 }
 0x459   : > { %v4298_v30 = vpop.eup %4297  ;;  %4317 = vpow2.f32 %v2133_v3  ;;  %v2129_v36 = vmul.f32 1.442695, %v1929_v45  ;;  %v1959_v41 = vsub.f32 %v7123_v60, %v1820_v47  ;;  %v1960_v14 = vsub.f32 %v7124_v51, %v1820_v47  ;;  %v7128_v3 = vld [vmem:[#allocation31_spill] sm:$0xff]  ;;  %v7129_v45 = vld [vmem:[#allocation29_spill] sm:$0xff] }
 0x45a   : > { %v4300_v38 = vpop.eup %4299  ;;  %4319 = vpow2.f32 %v2135_v46  ;;  %v2131_v48 = vmul.f32 1.442695, %v1930_v10  ;;  %v7127_v40 = vpack.c.bf16 %v7125_v33, %v7126_v24  ;;  %2611 = vmatprep.subr.bf16.mxu1 %v2482_v34  ;;  %v1817_v5 = vpop.xlane.xlu1 %1816  ;;  %v2479_v27 = vpack.c.bf16 %v4294_v9, %v4298_v30  ;;  %2338 = vadd.xlane.f32.xlu1 %v2337_v31  ;;  %v7131_v46 = vld [vmem:[#allocation106_spill] sm:$0xff] }
 0x45b   : > { %v6246_v26 = vadd.f32 %v4296_v63, %v4294_v9  ;;  %v4302_v16 = vpop.eup %4301  ;;  %4321 = vpow2.f32 %v2129_v36  ;;  %v2189_v62 = vmul.f32 1.442695, %v1959_v41  ;;  %v2191_v54 = vmul.f32 1.442695, %v1960_v14  ;;  %v7133_v41 = vld [vmem:[#allocation85_spill] sm:$0xff] }
 0x45c   : > { %2546 = vmatmul.mubr.bf16.vlgmr.msra.gmra.mrb[92].mxu1 %v7127_v40  ;;  %v7130_v51 = vpack.c.bf16 %v7128_v3, %v7129_v45  ;;  %v1957_v32 = vsub.f32 %v7131_v46, %v1817_v5  ;;  %v4304_v10 = vpop.eup %4303  ;;  %4323 = vpow2.f32 %v2131_v48  ;;  %v7132_v40 = vld [vmem:[#allocation107_spill] sm:$0xff]  ;;  %v2480_v47 = vpack.c.bf16 %v4296_v63, %v4300_v38  ;;  %v1784_v60 = vpop.xlane.xlu0 %1783 }
 0x45d   : > { %2612 = vmatpush1.bf16.xpose.msra.mxu1 %v2481_v56  ;;  %v1958_v34 = vsub.f32 %v7132_v40, %v1817_v5  ;;  %v6253_v9 = vadd.f32 %v4300_v38, %v4298_v30  ;;  %v4306_v33 = vpop.eup %4305  ;;  %4325 = vpow2.f32 %v2189_v62  ;;  %v1935_v31 = vsub.f32 %v5834_v37, %v1784_v60 }
 0x45e   : > { %2553 = vmatprep.mubr.bf16.mxu1 %v7130_v51  ;;  %v2185_v36 = vmul.f32 1.442695, %v1957_v32  ;;  %v1936_v14 = vsub.f32 %v7133_v41, %v1784_v60  ;;  %v4308_v24 = vpop.eup %4307  ;;  %4327 = vpow2.f32 %v2191_v54  ;;  %2576 = vmatprep.subr.bf16.mxu0 %v2480_v47  ;;  %v1781_v45 = vpop.xlane.xlu1 %1780  ;;  %v2483_v48 = vpack.c.bf16 %v4302_v16, %v4306_v33 }
 0x45f   : > { %v2187_v3 = vmul.f32 1.442695, %v1958_v34  ;;  %v2346_v56 = vadd.f32 %v4304_v10, %v4302_v16  ;;  %v6257_v51 = vpop.eup %4309  ;;  %v2141_v63 = vmul.f32 1.442695, %v1935_v31  ;;  %2266 = vadd.xlane.f32.xlu1 %v6129_v50  ;;  %2577 = vmatpush1.bf16.xpose.msra.mxu0 %v2479_v27  ;;  %v1933_v38 = vsub.f32 %v5826_v11, %v1781_v45  ;;  %v7134_v50 = vld [vmem:[#allocation30_spill] sm:$0xff]  ;;  %v7135_v27 = vld [vmem:[#allocation28_spill] sm:$0xff] }
 0x460   : > { %4329 = vpow2.f32 %v2185_v36  ;;  %v2143_v30 = vmul.f32 1.442695, %v1936_v14  ;;  %v4312_v37 = vpop.eup %4311  ;;  %v1934_v5 = vsub.f32 %v5830_v49, %v1781_v45  ;;  %v2484_v62 = vpack.c.bf16 %v4304_v10, %v4308_v24  ;;  %v7138_v45 = vld [vmem:[#allocation39_spill] sm:$0xff] }
 0x461   : > { %4331 = vpow2.f32 %v2187_v3  ;;  %v2343_v54 = vadd.f32 %v4308_v24, %v4306_v33  ;;  %v4314_v46 = vpop.eup %4313  ;;  %v2137_v32 = vmul.f32 1.442695, %v1933_v38  ;;  %v1826_v16 = vpop.xlane.xlu0 %1825  ;;  %v6263_v40 = vadd.f32 %v4312_v37, %v6257_v51 }
 0x462   : > { %4333 = vpow2.f32 %v2141_v63  ;;  %v4316_v34 = vpop.eup %4315  ;;  %v2139_v47 = vmul.f32 1.442695, %v1934_v5  ;;  %v7136_v60 = vpack.c.bf16 %v7134_v50, %v7135_v27  ;;  %2613 = vmatprep.subr.bf16.mxu1 %v2484_v62  ;;  %v1963_v11 = vsub.f32 %v6004_v0, %v1826_v16  ;;  %v1823_v10 = vpop.xlane.xlu1 %1822  ;;  %v7137_v0 = vld [vmem:[#allocation41_spill] sm:$0xff] }
 0x463   : > { %4335 = vpow2.f32 %v2143_v30  ;;  %v1964_v49 = vsub.f32 %v6008_v17, %v1826_v16  ;;  %v6270_v33 = vpop.eup %4317  ;;  %2272 = vadd.xlane.f32.xlu1 %v6195_v23  ;;  %2344 = vadd.xlane.f32.xlu0 %v2343_v54  ;;  %v1961_v36 = vsub.f32 %v5995_v29, %v1823_v10  ;;  %v1962_v31 = vsub.f32 %v5997_v42, %v1823_v10  ;;  %v7140_v62 = vld [vmem:[#allocation33_spill] sm:$0xff] }
 0x464   : > { %2554 = vmatmul.mubr.bf16.gmra.mrb[96].mxu1 %v7136_v60  ;;  %4337 = vpow2.f32 %v2137_v32  ;;  %v2498_v41 = vpack.c.bf16 %v4312_v37, %v4316_v34  ;;  %v4320_v14 = vpop.eup %4319  ;;  %v2197_v24 = vmul.f32 1.442695, %v1963_v11  ;;  %v7139_v17 = vpack.c.bf16 %v7137_v0, %v7138_v45  ;;  %v7144_v10 = vld [vmem:[#allocation37_spill] sm:$0xff] }
 0x465   : > { %4339 = vpow2.f32 %v2139_v47  ;;  %v2199_v3 = vmul.f32 1.442695, %v1964_v49  ;;  %2614 = vmatpush1.bf16.xpose.msra.mxu1 %v2483_v48  ;;  %v2497_v63 = vpack.c.bf16 %v6257_v51, %v4314_v46  ;;  %v4322_v30 = vpop.eup %4321  ;;  %v2193_v38 = vmul.f32 1.442695, %v1961_v36  ;;  %v1790_v5 = vpop.xlane.xlu0 %1789  ;;  %v7141_v48 = vld [vmem:[#allocation32_spill] sm:$0xff] }
 0x466   : > { %2643 = vmatprep.mubr.bf16.mxu1 %v7139_v17  ;;  %v2195_v23 = vmul.f32 1.442695, %v1962_v31  ;;  %2660 = vmatprep.subr.bf16.mxu0 %v2498_v41  ;;  %v6280_v29 = vadd.f32 %v4320_v14, %v6270_v33  ;;  %v6282_v42 = vadd.f32 %v4316_v34, %v4314_v46  ;;  %v4324_v37 = vpop.eup %4323  ;;  %4341 = vpow2.f32 %v2197_v24  ;;  %v1787_v16 = vpop.xlane.xlu1 %1786  ;;  %v7143_v34 = vld [vmem:[#allocation90_spill] sm:$0xff] }
 0x467   : > { %v7142_v54 = vpack.c.bf16 %v7140_v62, %v7141_v48  ;;  %v1939_v32 = vsub.f32 %v5861_v20, %v1790_v5  ;;  %v1940_v51 = vsub.f32 %v5865_v55, %v1790_v5  ;;  %v2485_v47 = vpack.c.bf16 %v6270_v33, %v4322_v30  ;;  %v6290_v50 = vpop.eup %4325  ;;  %2275 = vadd.xlane.f32.xlu1 %v6141_v22  ;;  %v7145_v55 = vld [vmem:[#allocation35_spill] sm:$0xff] }
 0x468   : > { %4343 = vpow2.f32 %v2199_v3  ;;  %2347 = vadd.xlane.f32.xlu0 %v2346_v56  ;;  %v1937_v46 = vsub.f32 %v5850_v43, %v1787_v16  ;;  %v1938_v27 = vsub.f32 %v7143_v34, %v1787_v16  ;;  %v2486_v60 = vpack.c.bf16 %v4320_v14, %v4324_v37  ;;  %v4328_v11 = vpop.eup %4327 }
 0x469   : > { %2595 = vmatmul.mubr.bf16.vlgmr.msra.gmra.mrb[116].mxu0 %v7142_v54  ;;  %4345 = vpow2.f32 %v2193_v38  ;;  %v2149_v49 = vmul.f32 1.442695, %v1939_v32  ;;  %v2151_v20 = vmul.f32 1.442695, %v1940_v51  ;;  %v7146_v36 = vpack.c.bf16 %v7144_v10, %v7145_v55  ;;  %v1832_v56 = vpop.xlane.xlu0 %1831  ;;  %v7148_v38 = vld [vmem:[#allocation111_spill] sm:$0xff] }
 0x46a   : > { %2661 = vmatpush1.bf16.xpose.msra.mxu0 %v2497_v63  ;;  %v2349_v33 = vadd.f32 %v4324_v37, %v4322_v30  ;;  %v4330_v31 = vpop.eup %4329  ;;  %4347 = vpow2.f32 %v2195_v23  ;;  %v2145_v41 = vmul.f32 1.442695, %v1937_v46  ;;  %v2147_v22 = vmul.f32 1.442695, %v1938_v27  ;;  %2615 = vmatprep.subr.bf16.mxu1 %v2486_v60  ;;  %v1829_v0 = vpop.xlane.xlu1 %1828  ;;  %v7147_v63 = vld [vmem:[#allocation110_spill] sm:$0xff] }
 0x46b   : > { %2602 = vmatprep.mubr.bf16.mxu0 %v7146_v36  ;;  %v6299_v43 = vadd.f32 %v4328_v11, %v6290_v50  ;;  %v4332_v14 = vpop.eup %4331  ;;  %4349 = vpow2.f32 %v2149_v49  ;;  %v1967_v24 = vsub.f32 %v6023_v15, %v1832_v56  ;;  %v1968_v3 = vsub.f32 %v6030_v2, %v1832_v56  ;;  %2278 = vadd.xlane.f32.xlu1 %v6211_v61  ;;  %v7150_v46 = vld [vmem:[#allocation34_spill] sm:$0xff]  ;;  %v7152_v49 = vld [vmem:[#allocation49_spill] sm:$0xff]  ;;  %v7155_v36 = vld [vmem:[#allocation95_spill] sm:$0xff] }
 0x46c   : > { %v2499_v45 = vpack.c.bf16 %v6290_v50, %v4330_v31  ;;  %v4334_v17 = vpop.eup %4333  ;;  %4351 = vpow2.f32 %v2151_v20  ;;  %2350 = vadd.xlane.f32.xlu0 %v2349_v33  ;;  %v1965_v30 = vsub.f32 %v7147_v63, %v1829_v0  ;;  %v1966_v23 = vsub.f32 %v7148_v38, %v1829_v0  ;;  %v7149_v50 = vld [vmem:[#allocation36_spill] sm:$0xff]  ;;  %v7153_v20 = vld [vmem:[#allocation47_spill] sm:$0xff]  ;;  %v7156_v0 = vld [vmem:[#allocation114_spill] sm:$0xff] }
 0x46d   : > { %v2500_v5 = vpack.c.bf16 %v4328_v11, %v4332_v14  ;;  %v4336_v37 = vpop.eup %4335  ;;  %4353 = vpow2.f32 %v2145_v41  ;;  %v2205_v62 = vmul.f32 1.442695, %v1967_v24  ;;  %v2207_v48 = vmul.f32 1.442695, %v1968_v3  ;;  %2616 = vmatpush1.bf16.xpose.msra.mxu1 %v2485_v47  ;;  %v1796_v51 = vpop.xlane.xlu0 %1795 }
 0x46e   : > { %v6307_v15 = vadd.f32 %v4332_v14, %v4330_v31  ;;  %v4338_v2 = vpop.eup %4337  ;;  %4355 = vpow2.f32 %v2147_v22  ;;  %v2201_v54 = vmul.f32 1.442695, %v1965_v30  ;;  %v2203_v32 = vmul.f32 1.442695, %v1966_v23 }
 0x46f   : > { %2662 = vmatprep.subr.bf16.mxu0 %v2500_v5  ;;  %v6309_v61 = vadd.f32 %v4336_v37, %v4334_v17  ;;  %v4340_v16 = vpop.eup %4339  ;;  %4357 = vpow2.f32 %v2205_v62  ;;  %v7151_v34 = vpack.c.bf16 %v7149_v50, %v7150_v46  ;;  %v1943_v27 = vsub.f32 %v5893_v35, %v1796_v51  ;;  %v1793_v60 = vpop.xlane.xlu1 %1792 }
 0x470   : > { %v1944_v47 = vsub.f32 %v5895_v8, %v1796_v51  ;;  %v2487_v11 = vpack.c.bf16 %v4334_v17, %v4338_v2  ;;  %4359 = vpow2.f32 %v2207_v48  ;;  %2269 = vadd.xlane.f32.xlu0 %v6133_v53  ;;  %v7154_v10 = vpack.c.bf16 %v7152_v49, %v7153_v20  ;;  %v4342_v41 = vpop.eup %4341 }
 0x471   : > { %2603 = vmatmul.mubr.bf16.gmra.mrb[120].mxu0 %v7151_v34  ;;  %v1941_v55 = vsub.f32 %v5880_v1, %v1793_v60  ;;  %v1942_v33 = vsub.f32 %v7155_v36, %v1793_v60  ;;  %v2488_v31 = vpack.c.bf16 %v4336_v37, %v4340_v16  ;;  %4361 = vpow2.f32 %v2201_v54  ;;  %v1838_v53 = vpop.xlane.xlu0 %1837  ;;  %v7157_v1 = vld [vmem:[#allocation115_spill] sm:$0xff]  ;;  %v7159_v37 = vld [vmem:[#allocation113_spill] sm:$0xff] }
 0x472   : > { %2692 = vmatprep.mubr.bf16.mxu0 %v7154_v10  ;;  %v2157_v22 = vmul.f32 1.442695, %v1943_v27  ;;  %v2159_v35 = vmul.f32 1.442695, %v1944_v47  ;;  %2663 = vmatpush1.bf16.xpose.msra.mxu0 %v2499_v45  ;;  %v2355_v8 = vadd.f32 %v4340_v16, %v4338_v2  ;;  %v4344_v56 = vpop.eup %4343  ;;  %4363 = vpow2.f32 %v2203_v32  ;;  %v7158_v45 = vld [vmem:[#allocation112_spill] sm:$0xff] }
 0x473   : > { %v2153_v14 = vmul.f32 1.442695, %v1941_v55  ;;  %v2155_v24 = vmul.f32 1.442695, %v1942_v33  ;;  %2617 = vmatprep.subr.bf16.mxu1 %v2488_v31  ;;  %v4346_v3 = vpop.eup %4345  ;;  %v1971_v17 = vsub.f32 %v7156_v0, %v1838_v53  ;;  %v1972_v63 = vsub.f32 %v7157_v1, %v1838_v53  ;;  %v1835_v30 = vpop.xlane.xlu1 %1834  ;;  %v7160_v0 = vld [vmem:[#allocation116_spill] sm:$0xff]  ;;  %v7161_v1 = vld [vmem:[#allocation117_spill] sm:$0xff] }
 0x474   : > { %4365 = vpow2.f32 %v2157_v22  ;;  %v6324_v38 = vadd.f32 %v4344_v56, %v4342_v41  ;;  %v4348_v23 = vpop.eup %4347  ;;  %2353 = vadd.xlane.f32.xlu0 %v6280_v29  ;;  %v1969_v5 = vsub.f32 %v7158_v45, %v1835_v30  ;;  %v1970_v62 = vsub.f32 %v7159_v37, %v1835_v30 }
 0x475   : > { %4367 = vpow2.f32 %v2159_v35  ;;  %v2501_v48 = vpack.c.bf16 %v4342_v41, %v4346_v3  ;;  %v4350_v2 = vpop.eup %4349  ;;  %v2213_v54 = vmul.f32 1.442695, %v1971_v17  ;;  %v2215_v32 = vmul.f32 1.442695, %v1972_v63  ;;  %2618 = vmatpush1.bf16.xpose.msra.mxu1 %v2487_v11  ;;  %v1802_v34 = vpop.xlane.xlu0 %1801 }
 0x476   : > { %4369 = vpow2.f32 %v2153_v14  ;;  %v2502_v51 = vpack.c.bf16 %v4344_v56, %v4348_v23  ;;  %v4352_v16 = vpop.eup %4351  ;;  %v2209_v50 = vmul.f32 1.442695, %v1969_v5  ;;  %v2211_v46 = vmul.f32 1.442695, %v1970_v62 }
 0x477   : > { %4371 = vpow2.f32 %v2155_v24  ;;  %v6329_v27 = vadd.f32 %v4348_v23, %v4346_v3  ;;  %v4354_v47 = vpop.eup %4353  ;;  %v1947_v29 = vsub.f32 %v5923_v6, %v1802_v34  ;;  %v1948_v60 = vsub.f32 %v5925_v21, %v1802_v34  ;;  %v1799_v49 = vpop.xlane.xlu1 %1798 }
 0x478   : > { %4373 = vpow2.f32 %v2213_v54  ;;  %2664 = vmatprep.subr.bf16.mxu0 %v2502_v51  ;;  %v2364_v20 = vadd.f32 %v4352_v16, %v4350_v2  ;;  %v4356_v10 = vpop.eup %4355  ;;  %2356 = vadd.xlane.f32.xlu0 %v2355_v8  ;;  %v1945_v11 = vsub.f32 %v5910_v7, %v1799_v49  ;;  %v1946_v55 = vsub.f32 %v5914_v57, %v1799_v49 }
 0x479   : > { %4375 = vpow2.f32 %v2215_v32  ;;  %v2489_v36 = vpack.c.bf16 %v4350_v2, %v4354_v47  ;;  %v4358_v33 = vpop.eup %4357  ;;  %v2165_v31 = vmul.f32 1.442695, %v1947_v29  ;;  %v2167_v41 = vmul.f32 1.442695, %v1948_v60  ;;  %v1844_v56 = vpop.xlane.xlu0 %1843 }
 0x47a   : > { %4377 = vpow2.f32 %v2209_v50  ;;  %2665 = vmatpush1.bf16.xpose.msra.mxu0 %v2501_v48  ;;  %v2490_v22 = vpack.c.bf16 %v4352_v16, %v4356_v10  ;;  %v4360_v35 = vpop.eup %4359  ;;  %v2161_v6 = vmul.f32 1.442695, %v1945_v11  ;;  %v2163_v21 = vmul.f32 1.442695, %v1946_v55 }
 0x47b   : > { %4379 = vpow2.f32 %v2211_v46  ;;  %v2361_v14 = vadd.f32 %v4356_v10, %v4354_v47  ;;  %v4362_v24 = vpop.eup %4361  ;;  %v1975_v7 = vsub.f32 %v6073_v12, %v1844_v56  ;;  %v1976_v57 = vsub.f32 %v6078_v25, %v1844_v56  ;;  %v1841_v8 = vpop.xlane.xlu1 %1840 }
 0x47c   : > { %4381 = vpow2.f32 %v2165_v31  ;;  %2619 = vmatprep.subr.bf16.mxu1 %v2490_v22  ;;  %v6337_v53 = vadd.f32 %v4360_v35, %v4358_v33  ;;  %v4364_v3 = vpop.eup %4363  ;;  %2359 = vadd.xlane.f32.xlu0 %v6309_v61  ;;  %v1973_v17 = vsub.f32 %v7160_v0, %v1841_v8  ;;  %v1974_v63 = vsub.f32 %v7161_v1, %v1841_v8  ;;  %v7163_v22 = vld [vmem:[#allocation118_spill] sm:$0xff] }
 0x47d   : > { %4383 = vpow2.f32 %v2167_v41  ;;  %2362 = vadd.xlane.f32.xlu1 %v2361_v14  ;;  %v2503_v30 = vpack.c.bf16 %v4358_v33, %v4362_v24  ;;  %v2221_v45 = vmul.f32 1.442695, %v1975_v7  ;;  %v2223_v5 = vmul.f32 1.442695, %v1976_v57  ;;  %2620 = vmatpush1.bf16.xpose.msra.mxu1 %v2489_v36  ;;  %v1808_v48 = vpop.xlane.xlu0 %1807 }
 0x47e   : > { %v4366_v23 = vpop.eup %4365  ;;  %4385 = vpow2.f32 %v2161_v6  ;;  %v2504_v12 = vpack.c.bf16 %v4360_v35, %v4364_v3  ;;  %v2217_v37 = vmul.f32 1.442695, %v1973_v17  ;;  %v2219_v62 = vmul.f32 1.442695, %v1974_v63  ;;  %v7164_v6 = vld [vmem:[#allocation119_spill] sm:$0xff]  ;;  %v7165_v63 = vld [vmem:[#allocation121_spill] sm:$0xff] }
 0x47f   : > { %v4368_v25 = vpop.eup %4367  ;;  %4387 = vpow2.f32 %v2163_v21  ;;  %v6342_v2 = vadd.f32 %v4364_v3, %v4362_v24  ;;  %v1951_v61 = vsub.f32 %v5953_v52, %v1808_v48  ;;  %v1952_v32 = vsub.f32 %v5955_v58, %v1808_v48  ;;  %v1805_v51 = vpop.xlane.xlu1 %1804 }
 0x480   : > { %v4370_v54 = vpop.eup %4369  ;;  %4389 = vpow2.f32 %v2221_v45  ;;  %2666 = vmatprep.subr.bf16.mxu0 %v2504_v12  ;;  %v6346_v16 = vadd.f32 %v4368_v25, %v4366_v23  ;;  %2365 = vadd.xlane.f32.xlu0 %v2364_v20  ;;  %v1949_v46 = vsub.f32 %v5940_v18, %v1805_v51  ;;  %v1950_v34 = vsub.f32 %v5944_v19, %v1805_v51 }
 0x481   : > { %v4372_v50 = vpop.eup %4371  ;;  %4391 = vpow2.f32 %v2223_v5  ;;  %2281 = vadd.xlane.f32.xlu1 %v6207_v39  ;;  %v2491_v47 = vpack.c.bf16 %v4366_v23, %v4370_v54  ;;  %v2173_v60 = vmul.f32 1.442695, %v1951_v61  ;;  %v2175_v49 = vmul.f32 1.442695, %v1952_v32  ;;  %v1850_v55 = vpop.xlane.xlu0 %1849  ;;  %v7162_v39 = vld [vmem:[#allocation120_spill] sm:$0xff]  ;;  %v7166_v23 = vld [vmem:[#allocation122_spill] sm:$0xff] }
 0x482   : > { %v4374_v29 = vpop.eup %4373  ;;  %4393 = vpow2.f32 %v2217_v37  ;;  %2667 = vmatpush1.bf16.xpose.msra.mxu0 %v2503_v30  ;;  %v2492_v52 = vpack.c.bf16 %v4368_v25, %v4372_v50  ;;  %v2169_v10 = vmul.f32 1.442695, %v1949_v46  ;;  %v2171_v11 = vmul.f32 1.442695, %v1950_v34  ;;  %v7167_v32 = vld [vmem:[#allocation123_spill] sm:$0xff] }
 0x483   : > { %v4376_v58 = vpop.eup %4375  ;;  %4395 = vpow2.f32 %v2219_v62  ;;  %v2367_v36 = vadd.f32 %v4372_v50, %v4370_v54  ;;  %v1979_v18 = vsub.f32 %v6099_v44, %v1850_v55  ;;  %v1980_v19 = vsub.f32 %v7162_v39, %v1850_v55  ;;  %v1847_v20 = vpop.xlane.xlu1 %1846 }
 0x484   : > { %v4378_v33 = vpop.eup %4377  ;;  %4397 = vpow2.f32 %v2173_v60  ;;  %2621 = vmatprep.subr.bf16.mxu1 %v2492_v52  ;;  %v6353_v31 = vadd.f32 %v4376_v58, %v4374_v29  ;;  %2293 = vadd.xlane.f32.xlu0 %v6157_v28  ;;  %v1977_v35 = vsub.f32 %v7163_v22, %v1847_v20  ;;  %v1978_v21 = vsub.f32 %v7164_v6, %v1847_v20 }
 0x485   : > { %v4380_v41 = vpop.eup %4379  ;;  %4399 = vpow2.f32 %v2175_v49  ;;  %2284 = vadd.xlane.f32.xlu1 %v6227_v4  ;;  %v2505_v56 = vpack.c.bf16 %v4374_v29, %v4378_v33  ;;  %v2229_v24 = vmul.f32 1.442695, %v1979_v18  ;;  %v2231_v44 = vmul.f32 1.442695, %v1980_v19  ;;  %2622 = vmatpush1.bf16.xpose.msra.mxu1 %v2491_v47  ;;  %v7169_v29 = vld [vmem:[#allocation67_spill] sm:$0xff] }
 0x486   : > { %v4382_v14 = vpop.eup %4381  ;;  %4401 = vpow2.f32 %v2169_v10  ;;  %v2506_v7 = vpack.c.bf16 %v4376_v58, %v4380_v41  ;;  %v2225_v8 = vmul.f32 1.442695, %v1977_v35  ;;  %v2227_v3 = vmul.f32 1.442695, %v1978_v21 }
 0x487   : > { %v4384_v57 = vpop.eup %4383  ;;  %4403 = vpow2.f32 %v2171_v11  ;;  %v6359_v0 = vadd.f32 %v4380_v41, %v4378_v33  ;;  %v1853_v28 = vpop.xlane.xlu1 %1852 }
 0x488   : > { %v4386_v4 = vpop.eup %4385  ;;  %4405 = vpow2.f32 %v2229_v24  ;;  %2668 = vmatprep.subr.bf16.mxu0 %v2506_v7  ;;  %v6361_v17 = vadd.f32 %v4384_v57, %v4382_v14  ;;  %2296 = vadd.xlane.f32.xlu0 %v6161_v59  ;;  %v1981_v30 = vsub.f32 %v7165_v63, %v1853_v28  ;;  %v1982_v45 = vsub.f32 %v7166_v23, %v1853_v28  ;;  %v1856_v37 = vpop.xlane.xlu0 %1855  ;;  %v7168_v59 = vld [vmem:[#allocation124_spill] sm:$0xff] }
 0x489   : > { %v4388_v1 = vpop.eup %4387  ;;  %4407 = vpow2.f32 %v2231_v44  ;;  %2368 = vadd.xlane.f32.xlu1 %v2367_v36  ;;  %v2493_v5 = vpack.c.bf16 %v4382_v14, %v4386_v4  ;;  %v1983_v51 = vsub.f32 %v7167_v32, %v1856_v37  ;;  %v1984_v46 = vsub.f32 %v7168_v59, %v1856_v37  ;;  %v7172_v14 = vld [vmem:[#allocation69_spill] sm:$0xff]  ;;  %v7174_v23 = vld [vmem:[#allocation40_spill] sm:$0xff]  ;;  %v7179_v37 = vld [vmem:[#allocation43_spill] sm:$0xff] }
 0x48a   : > { %v4390_v12 = vpop.eup %4389  ;;  %4409 = vpow2.f32 %v2225_v8  ;;  %2669 = vmatpush1.bf16.xpose.msra.mxu0 %v2505_v56  ;;  %v2494_v25 = vpack.c.bf16 %v4384_v57, %v4388_v1  ;;  %v2373_v62 = vadd.f32 %v4388_v1, %v4386_v4  ;;  %v2233_v54 = vmul.f32 1.442695, %v1981_v30  ;;  %v7171_v56 = vld [vmem:[#allocation64_spill] sm:$0xff] }
 0x48b   : > { %v4392_v48 = vpop.eup %4391  ;;  %4411 = vpow2.f32 %v2227_v3  ;;  %v2235_v61 = vmul.f32 1.442695, %v1982_v45  ;;  %v2237_v60 = vmul.f32 1.442695, %v1983_v51  ;;  %v2239_v58 = vmul.f32 1.442695, %v1984_v46 }
 0x48c   : > { %v4394_v50 = vpop.eup %4393  ;;  %2623 = vmatprep.subr.bf16.mxu1 %v2494_v25  ;;  %v6368_v34 = vadd.f32 %v4392_v48, %v4390_v12  ;;  %4413 = vpow2.f32 %v2233_v54  ;;  %2299 = vadd.xlane.f32.xlu0 %v7169_v29  ;;  %v7173_v3 = vld [vmem:[#allocation70_spill] sm:$0xff]  ;;  %v7178_v25 = vld [vmem:[#allocation45_spill] sm:$0xff]  ;;  %v7182_v54 = vld [vmem:[#allocation44_spill] sm:$0xff] }
 0x48d   : > { %v4396_v47 = vpop.eup %4395  ;;  %2287 = vadd.xlane.f32.xlu1 %v6223_v13  ;;  %v2507_v49 = vpack.c.bf16 %v4390_v12, %v4394_v50  ;;  %4415 = vpow2.f32 %v2235_v61  ;;  %2624 = vmatpush1.bf16.xpose.msra.mxu1 %v2493_v5  ;;  %v7170_v13 = vld [vmem:[#allocation68_spill] sm:$0xff]  ;;  %v7175_v45 = vld [vmem:[#allocation38_spill] sm:$0xff]  ;;  %v7177_v12 = vld [vmem:[#allocation73_spill] sm:$0xff] }
 0x48e   : > { %v4398_v52 = vpop.eup %4397  ;;  %v2508_v10 = vpack.c.bf16 %v4392_v48, %v4396_v47  ;;  %v6372_v11 = vadd.f32 %v4396_v47, %v4394_v50  ;;  %4417 = vpow2.f32 %v2237_v60  ;;  %v7176_v5 = vpack.c.bf16 %v7174_v23, %v7175_v45  ;;  %v7183_v61 = vld [vmem:[#allocation42_spill] sm:$0xff]  ;;  %v7185_v51 = vld [vmem:[#allocation75_spill] sm:$0xff]  ;;  %v7189_v46 = vld [vmem:[#allocation53_spill] sm:$0xff] }
 0x48f   : > { %v4400_v55 = vpop.eup %4399  ;;  %4419 = vpow2.f32 %v2239_v58  ;;  %v7180_v48 = vpack.c.bf16 %v7178_v25, %v7179_v37  ;;  %v7184_v32 = vpack.c.bf16 %v7182_v54, %v7183_v61  ;;  %v7187_v50 = vld [vmem:[#allocation46_spill] sm:$0xff]  ;;  %v7190_v47 = vld [vmem:[#allocation51_spill] sm:$0xff]  ;;  %v7192_v60 = vld [vmem:[#allocation81_spill] sm:$0xff] }
 0x490   : > { %v4402_v36 = vpop.eup %4401  ;;  %2670 = vmatprep.subr.bf16.mxu0 %v2508_v10  ;;  %v2382_v33 = vadd.f32 %v4400_v55, %v4398_v52  ;;  %2302 = vadd.xlane.f32.xlu0 %v7170_v13  ;;  %v7191_v29 = vpack.c.bf16 %v7189_v46, %v7190_v47  ;;  %v7197_v10 = vld [vmem:[#allocation83_spill] sm:$0xff] }
 0x491   : > { %v4404_v18 = vpop.eup %4403  ;;  %2371 = vadd.xlane.f32.xlu1 %v6346_v16  ;;  %v2495_v39 = vpack.c.bf16 %v4398_v52, %v4402_v36  ;;  %v7194_v52 = vld [vmem:[#allocation52_spill] sm:$0xff] }
 0x492   : > { %v4406_v19 = vpop.eup %4405  ;;  %2671 = vmatpush1.bf16.xpose.msra.mxu0 %v2507_v49  ;;  %v2496_v20 = vpack.c.bf16 %v4400_v55, %v4404_v18  ;;  %v2379_v41 = vadd.f32 %v4404_v18, %v4402_v36  ;;  %v7193_v49 = vld [vmem:[#allocation77_spill] sm:$0xff] }
 0x493   : > { %v4408_v22 = vpop.eup %4407 }
 0x494   : > { %v4410_v35 = vpop.eup %4409  ;;  %2625 = vmatprep.subr.bf16.mxu1 %v2496_v20  ;;  %v2424_v6 = vadd.f32 %v4408_v22, %v4406_v19  ;;  %2305 = vadd.xlane.f32.xlu0 %v7172_v14 }
 0x495   : > { %v4412_v21 = vpop.eup %4411  ;;  %2290 = vadd.xlane.f32.xlu1 %v7171_v56  ;;  %v2509_v24 = vpack.c.bf16 %v4406_v19, %v4410_v35  ;;  %2626 = vmatpush1.bf16.xpose.msra.mxu1 %v2495_v39 }
 0x496   : > { %v2510_v44 = vpack.c.bf16 %v4408_v22, %v4412_v21  ;;  %v2421_v16 = vadd.f32 %v4412_v21, %v4410_v35  ;;  %v4414_v7 = vpop.eup %4413 }
 0x497   : > { %v4416_v57 = vpop.eup %4415 }
 0x498   : > { %2672 = vmatprep.subr.bf16.mxu0 %v2510_v44  ;;  %v4418_v8 = vpop.eup %4417  ;;  %2308 = vadd.xlane.f32.xlu0 %v7173_v3  ;;  %v2427_v4 = vadd.f32 %v4416_v57, %v4414_v7 }
 0x499   : > { %2374 = vadd.xlane.f32.xlu1 %v2373_v62  ;;  %v4420_v28 = vpop.eup %4419  ;;  %v2511_v1 = vpack.c.bf16 %v4418_v8, %v4414_v7  ;;  %v7181_v62 = vld [vmem:[#allocation74_spill] sm:$0xff] }
 0x49a   : > { %2673 = vmatpush1.bf16.xpose.msra.mxu0 %v2509_v24  ;;  %v2512_v63 = vpack.c.bf16 %v4420_v28, %v4416_v57  ;;  %v2430_v30 = vadd.f32 %v4420_v28, %v4418_v8 }
 0x49c   : > { %2644 = vmatmul.mubr.bf16.vlgmr.msra.gmra.mrb[100].mxu1 %v7176_v5  ;;  %2311 = vadd.xlane.f32.xlu0 %v7177_v12 }
 0x49d   : > { %2377 = vadd.xlane.f32.xlu1 %v6361_v17  ;;  %2651 = vmatprep.mubr.bf16.mxu1 %v7180_v48  ;;  %v7186_v17 = vld [vmem:[#allocation48_spill] sm:$0xff] }
 0x49e   : > { %2674 = vmatprep.subr.bf16.mxu0 %v2512_v63  ;;  %v7188_v59 = vpack.c.bf16 %v7186_v17, %v7187_v50 }
 0x4a0   : > { %2317 = vadd.xlane.f32.xlu0 %v7181_v62 }
 0x4a1   : > { %2380 = vadd.xlane.f32.xlu1 %v2379_v41 }
 0x4a2   : > { %2675 = vmatpush1.bf16.xpose.msra.mxu0 %v2511_v1 }
 0x4a4   : > { %2652 = vmatmul.mubr.bf16.gmra.mrb[104].mxu1 %v7184_v32  ;;  %2389 = vadd.xlane.f32.xlu0 %v6263_v40  ;;  %v7195_v40 = vld [vmem:[#allocation50_spill] sm:$0xff] }
 0x4a5   : > { %2383 = vadd.xlane.f32.xlu1 %v2382_v33  ;;  %v7196_v58 = vpack.c.bf16 %v7194_v52, %v7195_v40 }
 0x4a8   : > { %2392 = vadd.xlane.f32.xlu0 %v6307_v15  ;;  %v7198_v15 = vld [vmem:[#allocation82_spill] sm:$0xff] }
 0x4a9   : > { %2314 = vadd.xlane.f32.xlu1 %v7185_v51  ;;  %2693 = vmatmul.mubr.bf16.vlgmr.msra.gmra.mrb[124].mxu0 %v7188_v59  ;;  %v4157_v59 = vld [vmem:[#allocation10] sm:$0xff]  }
 0x4aa   : > { %2700 = vmatprep.mubr.bf16.mxu0 %v7191_v29  ;;  %3852 = vmatprep.mubr.bf16.mxu1 %v4157_v59 }
 0x4ac   : > { %2395 = vadd.xlane.f32.xlu0 %v6299_v43  ;;  %v2246_v43 = vpop.xlane.xlu0 %2245 }
 0x4ad   : > { %2320 = vadd.xlane.f32.xlu1 %v7192_v60 }
 0x4b0   : > { %2398 = vadd.xlane.f32.xlu0 %v6329_v27 }
 0x4b1   : > { %2323 = vadd.xlane.f32.xlu1 %v7193_v49  ;;  %2701 = vmatmul.mubr.bf16.gmra.mrb[128].mxu0 %v7196_v58 }
 0x4b4   : > { %2401 = vadd.xlane.f32.xlu0 %v6324_v38  ;;  %v2243_v38 = vpop.xlane.xlu1 %2242 }
 0x4b5   : > { %2326 = vadd.xlane.f32.xlu1 %v7197_v10 }
 0x4b8   : > { %2404 = vadd.xlane.f32.xlu0 %v6342_v2  ;;  %v2249_v27 = vpop.xlane.xlu1 %2248 }
 0x4b9   : > { %2329 = vadd.xlane.f32.xlu1 %v7198_v15 }
 0x4bc   : > { %2407 = vadd.xlane.f32.xlu0 %v6337_v53 }
 0x4bd   : > { %2332 = vadd.xlane.f32.xlu1 %v6253_v9  ;;  %v2252_v9 = vpop.xlane.xlu0 %2251 }
 0x4c0   : > { %2413 = vadd.xlane.f32.xlu0 %v6353_v31 }
 0x4c1   : > { %2335 = vadd.xlane.f32.xlu1 %v6246_v26  ;;  %v2258_v53 = vpop.xlane.xlu0 %2257  ;;  %v2255_v26 = vpop.xlane.xlu1 %2254 }
 0x4c4   : > { %2419 = vadd.xlane.f32.xlu0 %v6368_v34  ;;  %v2837_v34 = vlaneseq }
 0x4c5   : > { %2386 = vadd.xlane.f32.xlu1 %v6282_v42  ;;  %v6419_v2 = vpop.xlane.xlu0 %2263  ;;  %v6421_v31 = vpop.xlane.xlu1 %2260 }
 0x4c6   : > { %v6423_v55 = vand.u32 127, %v2837_v34 }
 0x4c8   : > { %2425 = vadd.xlane.f32.xlu0 %v2424_v6  ;;  %v2843_v36 = vadd.s32 4294967288, %v6423_v55  ;;  %v2850_v21 = vadd.s32 4294967280, %v6423_v55  ;;  %v2857_v44 = vadd.s32 4294967272, %v6423_v55  ;;  %v2871_v48 = vadd.s32 4294967256, %v6423_v55 }
 0x4c9   : > { %2410 = vadd.xlane.f32.xlu1 %v6359_v0  ;;  %v2878_v29 = vadd.s32 4294967248, %v6423_v55  ;;  %v2892_v15 = vadd.s32 4294967232, %v6423_v55 }
 0x4cc   : > { %2431 = vadd.xlane.f32.xlu0 %v2430_v30 }
 0x4cd   : > { %2416 = vadd.xlane.f32.xlu1 %v6372_v11  ;;  %v6425_v11 = vshrl.u32 %v2837_v34, 7 }
 0x4cf   : > { %v6430_v13 = vsub.s32 %v6423_v55, %v6425_v11  ;;  %v6433_v39 = vsub.s32 %v2843_v36, %v6425_v11  ;;  %v6444_v24 = vsub.s32 %v2850_v21, %v6425_v11  ;;  %v6453_v3 = vsub.s32 %v2857_v44, %v6425_v11 }
 0x4d0   : > { %v6468_v50 = vsub.s32 %v2871_v48, %v6425_v11 }
 0x4d1   : > { %2422 = vadd.xlane.f32.xlu1 %v2421_v16 }
 0x4d5   : > { %2428 = vadd.xlane.f32.xlu1 %v2427_v4  ;;  %v2864_v4 = vadd.s32 4294967264, %v6423_v55 }
 0x4d7   : > { %v6459_v23 = vsub.s32 %v2864_v4, %v6425_v11 }
 0x4e5   : > { %v2342_v42 = vpop.xlane.xlu0 %2341 }
 0x4e6   : > { %4421 = vrcp.f32 %v2342_v42 }
 0x4e7   : > { %v2339_v0 = vpop.xlane.xlu1 %2338 }
 0x4e8   : > { %4423 = vrcp.f32 %v2339_v0 }
 0x4ec   : > { %v6435_v19 = vpop.xlane.xlu1 %2266 }
 0x4f0   : > { %v2345_v33 = vpop.xlane.xlu0 %2344  ;;  %v4422_v18 = vpop.eup %4421 }
 0x4f1   : > { %4425 = vrcp.f32 %v2345_v33  ;;  %v3034_v41 = vrot.slane %v4422_v18, %v6433_v39  ;;  %v6441_v56 = vpop.xlane.xlu1 %2272  ;;  %v6490_v33 = vsub.s32 %v2892_v15, %v6425_v11  ;;  %v2927_v15 = vadd.s32 4294967192, %v6423_v55 }
 0x4f2   : > { %v4424_v20 = vpop.eup %4423 }
 0x4f3   : > { %v3030_v22 = vrot.slane %v4424_v20, %v6430_v13 }
 0x4f5   : > { %v2348_v35 = vpop.xlane.xlu0 %2347  ;;  %v3035_v6 = vsel %vm2848_vm1, %v3034_v41, %v3030_v22  ;;  %v6450_v8 = vpop.xlane.xlu1 %2275 }
 0x4f6   : > { %4427 = vrcp.f32 %v2348_v35 }
 0x4f9   : > { %v2351_v14 = vpop.xlane.xlu0 %2350  ;;  %v6462_v12 = vpop.xlane.xlu1 %2278 }
 0x4fa   : > { %4429 = vrcp.f32 %v2351_v14 }
 0x4fb   : > { %v4426_v16 = vpop.eup %4425  ;;  %4431 = vrcp.f32 %v2246_v43 }
 0x4fc   : > { %v3039_v57 = vrot.slane %v4426_v16, %v6444_v24  ;;  %4433 = vrcp.f32 %v2243_v38 }
 0x4fd   : > { %v6447_v7 = vpop.xlane.xlu0 %2269  ;;  %4435 = vrcp.f32 %v2249_v27  ;;  %v2885_v27 = vadd.s32 4294967240, %v6423_v55 }
 0x4fe   : > { %v3040_v28 = vsel %vm2855_vm2, %v3039_v57, %v3035_v6  ;;  %v2899_v57 = vadd.s32 4294967224, %v6423_v55 }
 0x4ff   : > { %v6495_v20 = vsub.s32 %v2885_v27, %v6425_v11  ;;  %v2934_v27 = vadd.s32 4294967184, %v6423_v55 }
 0x500   : > { %v4428_v1 = vpop.eup %4427 }
 0x501   : > { %v2354_v63 = vpop.xlane.xlu0 %2353  ;;  %v3044_v30 = vrot.slane %v4428_v1, %v6453_v3 }
 0x502   : > { %4437 = vrcp.f32 %v2354_v63 }
 0x503   : > { %v3045_v45 = vsel %vm2862_vm3, %v3044_v30, %v3040_v28  ;;  %4439 = vrcp.f32 %v2252_v9 }
 0x504   : > { %v4430_v5 = vpop.eup %4429 }
 0x505   : > { %v2357_v25 = vpop.xlane.xlu0 %2356  ;;  %v3049_v37 = vrot.slane %v4430_v5, %v6459_v23  ;;  %v4432_v54 = vpop.eup %4431 }
 0x506   : > { %4441 = vrcp.f32 %v2357_v25  ;;  %v4434_v51 = vpop.eup %4433  ;;  %v2847_v47 = vrot.slane %v4432_v54, %v6433_v39 }
 0x507   : > { %4443 = vrcp.f32 %v2255_v26  ;;  %v3050_v62 = vsel %vm2869_vm4, %v3049_v37, %v3045_v45  ;;  %v4436_v17 = vpop.eup %4435  ;;  %v2842_v40 = vrot.slane %v4434_v51, %v6430_v13  ;;  %v2906_v37 = vadd.s32 4294967216, %v6423_v55 }
 0x508   : > { %4445 = vrcp.f32 %v2258_v53  ;;  %v2854_v10 = vrot.slane %v4436_v17, %v6444_v24  ;;  %v6482_v53 = vsub.s32 %v2878_v29, %v6425_v11  ;;  %v3259_v17 = vld [vmem:[#allocation11] sm:$0xff]  ;;  %v2913_v29 = vadd.s32 4294967208, %v6423_v55 }
 0x509   : > { %v2360_v32 = vpop.xlane.xlu0 %2359  ;;  %v2849_v9 = vsel %vm2848_vm1, %v2847_v47, %v2842_v40  ;;  %3277 = vperm.xlu1 %4131, %v3259_v17  }
 0x50a   : > { %v2363_v61 = vpop.xlane.xlu1 %2362  ;;  %v2856_v36 = vsel %vm2855_vm2, %v2854_v10, %v2849_v9  ;;  %v2920_v9 = vadd.s32 4294967200, %v6423_v55 }
 0x50b   : > { %4447 = vrcp.f32 %v2363_v61 }
 0x50c   : > { %4449 = vrcp.f32 %v2360_v32  ;;  %v4438_v46 = vpop.eup %4437 }
 0x50d   : > { %v3054_v60 = vrot.slane %v4438_v46, %v6468_v50  ;;  %v2366_v52 = vpop.xlane.xlu0 %2365  ;;  %4451 = vrcp.f32 %v6421_v31  ;;  %v4440_v58 = vpop.eup %4439  ;;  %v6527_v46 = vsub.s32 %v2906_v37, %v6425_v11 }
 0x50e   : > { %v2282_v49 = vpop.xlane.xlu1 %2281  ;;  %4453 = vrcp.f32 %v6419_v2  ;;  %v2861_v34 = vrot.slane %v4440_v58, %v6453_v3 }
 0x50f   : > { %v3055_v43 = vsel %vm2876_vm5, %v3054_v60, %v3050_v62  ;;  %4455 = vrcp.f32 %v2366_v52  ;;  %v6518_v62 = vsub.s32 %v2899_v57, %v6425_v11 }
 0x510   : > { %v4442_v38 = vpop.eup %4441  ;;  %4457 = vrcp.f32 %v6435_v19  ;;  %v2863_v21 = vsel %vm2862_vm3, %v2861_v34, %v2856_v36  ;;  %v6542_v34 = vsub.s32 %v2913_v29, %v6425_v11  ;;  %v2941_v36 = vadd.s32 4294967176, %v6423_v55 }
 0x511   : > { %v6484_v31 = vpop.xlane.xlu0 %2293  ;;  %v4444_v42 = vpop.eup %4443  ;;  %4459 = vrcp.f32 %v6447_v7  ;;  %v3059_v2 = vrot.slane %v4442_v38, %v6482_v53  ;;  %v6559_v55 = vsub.s32 %v2934_v27, %v6425_v11 }
 0x512   : > { %v2285_v26 = vpop.xlane.xlu1 %2284  ;;  %v4446_v0 = vpop.eup %4445  ;;  %v2868_v22 = vrot.slane %v4444_v42, %v6459_v23 }
 0x513   : > { %v3060_v44 = vsel %vm2883_vm6, %v3059_v2, %v3055_v43  ;;  %v2875_v7 = vrot.slane %v4446_v0, %v6468_v50 }
 0x514   : > { %v2870_v28 = vsel %vm2869_vm4, %v2868_v22, %v2863_v21  ;;  %v3261_v21 = vld [vmem:[#allocation11 + $0x10] sm:$0xff] }
 0x515   : > { %v4448_v18 = vpop.eup %4447  ;;  %v6499_v6 = vpop.xlane.xlu0 %2296  ;;  %v2877_v48 = vsel %vm2876_vm5, %v2875_v7, %v2870_v28  ;;  %3287 = vperm.xlu1 %4131, %v3261_v21   ;;  %v3262_v28 = vld [vmem:[#allocation11 + $0x18] sm:$0xff] }
 0x516   : > { %v4450_v41 = vpop.eup %4449  ;;  %v3069_v35 = vrot.slane %v4448_v18, %v6490_v33  ;;  %v2369_v19 = vpop.xlane.xlu1 %2368 }
 0x517   : > { %v3064_v14 = vrot.slane %v4450_v41, %v6495_v20  ;;  %4461 = vrcp.f32 %v2369_v19  ;;  %v4452_v16 = vpop.eup %4451  ;;  %v6552_v19 = vsub.s32 %v2927_v15, %v6425_v11 }
 0x518   : > { %4463 = vrcp.f32 %v6441_v56  ;;  %v4454_v45 = vpop.eup %4453  ;;  %v2882_v25 = vrot.slane %v4452_v16, %v6482_v53 }
 0x519   : > { %v3065_v4 = vsel %vm2890_vm7, %v3064_v14, %v3060_v44  ;;  %v6510_v30 = vpop.xlane.xlu0 %2299  ;;  %4465 = vrcp.f32 %v6450_v8  ;;  %v4456_v5 = vpop.eup %4455  ;;  %v2889_v8 = vrot.slane %v4454_v45, %v6495_v20  ;;  %v6555_v44 = vsub.s32 %v2920_v9, %v6425_v11  ;;  %3292 = vperm.xlu1 %4131, %v3262_v28  }
 0x51a   : > { %v3070_v1 = vsel %vm2897_vm8, %v3069_v35, %v3065_v4  ;;  %v2288_v63 = vpop.xlane.xlu1 %2287  ;;  %4467 = vrcp.f32 %v6462_v12  ;;  %v4458_v56 = vpop.eup %4457  ;;  %v3074_v51 = vrot.slane %v4456_v5, %v6518_v62  ;;  %v2884_v12 = vsel %vm2883_vm6, %v2882_v25, %v2877_v48  ;;  %v3260_v5 = vld [vmem:[#allocation11 + $0x8] sm:$0xff] }
 0x51b   : > { %4469 = vrcp.f32 %v2282_v49  ;;  %v4460_v54 = vpop.eup %4459  ;;  %v2896_v59 = vrot.slane %v4458_v56, %v6490_v33  ;;  %v2891_v10 = vsel %vm2890_vm7, %v2889_v8, %v2884_v12  ;;  %v6563_v4 = vsub.s32 %v2941_v36, %v6425_v11  ;;  %3282 = vperm.xlu0 %4132, %v3260_v5   ;;  %v3273_v36 = vld [vmem:[#allocation11 + $0x70] sm:$0xff] }
 0x51c   : > { %4471 = vrcp.f32 %v2285_v26  ;;  %v2903_v60 = vrot.slane %v4460_v54, %v6518_v62  ;;  %v3075_v43 = vsel %vm2904_vm9, %v3074_v51, %v3070_v1  ;;  %v3263_v51 = vld [vmem:[#allocation11 + $0x20] sm:$0xff] }
 0x51d   : > { %v6520_v32 = vpop.xlane.xlu0 %2302  ;;  %v2898_v38 = vsel %vm2897_vm8, %v2896_v59, %v2891_v10  ;;  %3297 = vperm.xlu1 %4131, %v3263_v51  }
 0x51e   : > { %v2372_v61 = vpop.xlane.xlu1 %2371  ;;  %v2905_v0 = vsel %vm2904_vm9, %v2903_v60, %v2898_v38 }
 0x51f   : > { %4473 = vrcp.f32 %v2372_v61  ;;  %v3269_v61 = vld [vmem:[#allocation11 + $0x50] sm:$0xff] }
 0x520   : > { %4475 = vrcp.f32 %v2288_v63  ;;  %3327 = vperm.xlu0 %4132, %v3269_v61  }
 0x521   : > { %v4462_v47 = vpop.eup %4461  ;;  %v6532_v40 = vpop.xlane.xlu0 %2305 }
 0x522   : > { %v3079_v49 = vrot.slane %v4462_v47, %v6527_v46  ;;  %v2291_v52 = vpop.xlane.xlu1 %2290  ;;  %v4464_v58 = vpop.eup %4463 }
 0x523   : > { %v4466_v42 = vpop.eup %4465  ;;  %v2910_v18 = vrot.slane %v4464_v58, %v6527_v46  ;;  %v3271_v58 = vld [vmem:[#allocation11 + $0x60] sm:$0xff]  ;;  %4477 = vrcp.f32 %v2291_v52 }
 0x524   : > { %v3080_v26 = vsel %vm2911_vm10, %v3079_v49, %v3075_v43  ;;  %v4468_v2 = vpop.eup %4467  ;;  %v2917_v57 = vrot.slane %v4466_v42, %v6542_v34  ;;  %v3264_v43 = vld [vmem:[#allocation11 + $0x28] sm:$0xff]  ;;  %4479 = vrcp.f32 %v6484_v31  ;;  %3337 = vperm.xlu0 %4132, %v3271_v58  }
 0x525   : > { %v6549_v22 = vpop.xlane.xlu0 %2308  ;;  %v4470_v35 = vpop.eup %4469  ;;  %v2912_v16 = vsel %vm2911_vm10, %v2910_v18, %v2905_v0  ;;  %v2924_v48 = vrot.slane %v4468_v2, %v6555_v44  ;;  %3302 = vperm.xlu1 %4131, %v3264_v43   ;;  %v3265_v2 = vld [vmem:[#allocation11 + $0x30] sm:$0xff]  ;;  %4481 = vrcp.f32 %v6499_v6 }
 0x526   : > { %v6547_v41 = vpop.xlane.xlu1 %2374  ;;  %v4472_v14 = vpop.eup %4471  ;;  %v2931_v25 = vrot.slane %v4470_v35, %v6552_v19  ;;  %v2919_v56 = vsel %vm2918_vm11, %v2917_v57, %v2912_v16  ;;  %4483 = vrcp.f32 %v6510_v30  ;;  %v3267_v30 = vld [vmem:[#allocation11 + $0x40] sm:$0xff] }
 0x527   : > { %v2938_v11 = vrot.slane %v4472_v14, %v6559_v55  ;;  %v2926_v12 = vsel %vm2925_vm12, %v2924_v48, %v2919_v56  ;;  %v3266_v14 = vld [vmem:[#allocation11 + $0x38] sm:$0xff]  ;;  %4485 = vrcp.f32 %v6520_v32 }
 0x528   : > { %v2933_v29 = vsel %vm2932_vm13, %v2931_v25, %v2926_v12  ;;  %3347 = vperm.xlu0 %4132, %v3273_v36   ;;  %4487 = vrcp.f32 %v6532_v40  ;;  %v3268_v12 = vld [vmem:[#allocation11 + $0x48] sm:$0xff] }
 0x529   : > { %v4474_v7 = vpop.eup %4473  ;;  %v6569_v37 = vpop.xlane.xlu0 %2311  ;;  %v2940_v60 = vsel %vm2939_vm14, %v2938_v11, %v2933_v29  ;;  %3307 = vperm.xlu1 %4131, %v3265_v2   ;;  %4489 = vrcp.f32 %v6549_v22 }
 0x52a   : > { %v4476_v1 = vpop.eup %4475  ;;  %v3084_v63 = vrot.slane %v4474_v7, %v6542_v34  ;;  %v6566_v45 = vpop.xlane.xlu1 %2377  ;;  %4491 = vrcp.f32 %v6569_v37  ;;  %v3270_v37 = vld [vmem:[#allocation11 + $0x58] sm:$0xff] }
 0x52b   : > { %v2945_v8 = vrot.slane %v4476_v1, %v6563_v4 }
 0x52c   : > { %v6575_v54 = vsel %vm2918_vm11, %v3084_v63, %v3080_v26 }
 0x52d   : > { %v6581_v59 = vpop.xlane.xlu0 %2317  ;;  %v2947_v10 = vsel %vm2946_vm15, %v2945_v8, %v2940_v60  ;;  %v4478_v1 = vpop.eup %4477  ;;  %3312 = vperm.xlu1 %4131, %v3266_v14  }
 0x52e   : > { %v6578_v17 = vpop.xlane.xlu1 %2380  ;;  %v4480_v56 = vpop.eup %4479  ;;  %v2951_v11 = vrot.slane %v4478_v1, %v6430_v13 }
 0x52f   : > { %v2547_v47 = vpop.f32.mrb[92].mxu1  ;;  %v4482_v51 = vpop.eup %4481  ;;  %v2955_v32 = vrot.slane %v4480_v56, %v6433_v39 }
 0x530   : > { %v2549_v49 = vpop.f32.mrb[93].mxu1  ;;  %v3219_v38 = vmul.f32 %v2947_v10, %v2547_v47  ;;  %v2960_v58 = vrot.slane %v4482_v51, %v6444_v24 }
 0x531   : > { %v2550_v15 = vpop.f32.mrb[94].mxu1  ;;  %v6589_v42 = vpop.xlane.xlu0 %2389  ;;  %3317 = vperm.xlu1 %4131, %v3267_v30   ;;  %v2956_v47 = vsel %vm2848_vm1, %v2955_v32, %v2951_v11 }
 0x532   : > { %v3220_v9 = vmul.f32 %v2947_v10, %v2550_v15  ;;  %v6586_v27 = vpop.xlane.xlu1 %2383  ;;  %v2552_v26 = vpop.f32.mrb[95].mxu1  ;;  %v2961_v15 = vsel %vm2855_vm2, %v2960_v58, %v2956_v47 }
 0x533   : > { %v4484_v49 = vpop.eup %4483 }
 0x534   : > { %v3251_v0 = vpack.c.bf16 %v3220_v9, %v3219_v38  ;;  %v4486_v43 = vpop.eup %4485  ;;  %v2965_v38 = vrot.slane %v4484_v49, %v6453_v3 }
 0x535   : > { %v6592_v18 = vpop.xlane.xlu0 %2392  ;;  %3322 = vperm.xlu1 %4131, %v3268_v12   ;;  %v4488_v2 = vpop.eup %4487 }
 0x536   : > { %v2315_v52 = vpop.xlane.xlu1 %2314  ;;  %3836 = vmatprep.subr.bf16.mxu1 %v3251_v0 }
 0x537   : > { %v2555_v35 = vpop.f32.mrb[96].mxu1  ;;  %3837 = vmatpush3.bf16.msra.mxu1 %v3251_v0  ;;  %4493 = vrcp.f32 %v2315_v52  ;;  %v2966_v0 = vsel %vm2862_vm3, %v2965_v38, %v2961_v15  ;;  %v2970_v52 = vrot.slane %v4486_v43, %v6459_v23 }
 0x538   : > { %v2557_v21 = vpop.f32.mrb[97].mxu1  ;;  %v3221_v16 = vmul.f32 %v2947_v10, %v2555_v35  ;;  %4495 = vrcp.f32 %v6581_v59  ;;  %v3272_v59 = vld [vmem:[#allocation11 + $0x68] sm:$0xff]  ;;  %v4490_v35 = vpop.eup %4489 }
 0x539   : > { %v2558_v31 = vpop.f32.mrb[98].mxu1  ;;  %v6598_v5 = vpop.xlane.xlu0 %2395  ;;  %3332 = vperm.xlu1 %4131, %v3270_v37   ;;  %v2971_v14 = vsel %vm2869_vm4, %v2970_v52, %v2966_v0 }
 0x53a   : > { %v3222_v7 = vmul.f32 %v2947_v10, %v2558_v31  ;;  %v2321_v57 = vpop.xlane.xlu1 %2320  ;;  %v2560_v28 = vpop.f32.mrb[99].mxu1 }
 0x53b   : > { %4497 = vrcp.f32 %v2321_v57  ;;  %v4492_v31 = vpop.eup %4491  ;;  %v2980_v57 = vrot.slane %v4490_v35, %v6482_v53  ;;  %v3274_v28 = vld [vmem:[#allocation11 + $0x78] sm:$0xff] }
 0x53c   : > { %v6595_v63 = vpop.f32.mrb[116].mxu0  ;;  %v3252_v6 = vpack.c.bf16 %v3222_v7, %v3221_v16  ;;  %v2975_v7 = vrot.slane %v4488_v2, %v6468_v50 }
 0x53d   : > { %v2598_v25 = vpop.f32.mrb[117].mxu0  ;;  %v2399_v29 = vpop.xlane.xlu0 %2398  ;;  %3342 = vperm.xlu1 %4131, %v3272_v59  }
 0x53e   : > { %v6600_v48 = vpop.f32.mrb[118].mxu0  ;;  %v2324_v61 = vpop.xlane.xlu1 %2323  ;;  %3838 = vmatprep.subr.bf16.mxu1 %v3252_v6  ;;  %v2976_v1 = vsel %vm2876_vm5, %v2975_v7, %v2971_v14 }
 0x53f   : > { %v2601_v8 = vpop.f32.mrb[119].mxu0  ;;  %3839 = vmatpush3.bf16.msra.mxu1 %v3252_v6  ;;  %4499 = vrcp.f32 %v2324_v61  ;;  %v2985_v6 = vrot.slane %v4492_v31, %v6495_v20  ;;  %v2981_v51 = vsel %vm2883_vm6, %v2980_v57, %v2976_v1 }
 0x541   : > { %v2402_v36 = vpop.xlane.xlu0 %2401  ;;  %v4494_v16 = vpop.eup %4493  ;;  %3352 = vperm.xlu1 %4131, %v3274_v28   ;;  %v2986_v12 = vsel %vm2890_vm7, %v2985_v6, %v2981_v51 }
 0x542   : > { %v2327_v60 = vpop.xlane.xlu1 %2326  ;;  %v4496_v30 = vpop.eup %4495  ;;  %v2990_v11 = vrot.slane %v4494_v16, %v6490_v33 }
 0x543   : > { %4501 = vrcp.f32 %v2327_v60 }
 0x544   : > { %v6609_v10 = vpop.f32.mrb[120].mxu0  ;;  %v2991_v49 = vsel %vm2897_vm8, %v2990_v11, %v2986_v12 }
 0x545   : > { %v2606_v40 = vpop.f32.mrb[121].mxu0  ;;  %v2405_v25 = vpop.xlane.xlu0 %2404 }
 0x546   : > { %v6613_v22 = vpop.f32.mrb[122].mxu0  ;;  %v2330_v9 = vpop.xlane.xlu1 %2329 }
 0x547   : > { %v2609_v26 = vpop.f32.mrb[123].mxu0  ;;  %4503 = vrcp.f32 %v2330_v9  ;;  %v4498_v61 = vpop.eup %4497 }
 0x548   : > { %v3000_v58 = vrot.slane %v4498_v61, %v6527_v46 }
 0x549   : > { %v4500_v8 = vpop.eup %4499  ;;  %v2408_v15 = vpop.xlane.xlu0 %2407 }
 0x54a   : > { %v2333_v21 = vpop.xlane.xlu1 %2332  ;;  %v3005_v40 = vrot.slane %v4500_v8, %v6542_v34 }
 0x54b   : > { %4505 = vrcp.f32 %v2333_v21 }
 0x54d   : > { %v4502_v32 = vpop.eup %4501  ;;  %v2414_v59 = vpop.xlane.xlu0 %2413 }
 0x54e   : > { %v2336_v56 = vpop.xlane.xlu1 %2335 }
 0x54f   : > { %4507 = vrcp.f32 %v2336_v56 }
 0x550   : > { %4509 = vrcp.f32 %v6589_v42  ;;  %v2995_v42 = vrot.slane %v4496_v30, %v6518_v62 }
 0x551   : > { %4511 = vrcp.f32 %v6592_v18  ;;  %v4504_v60 = vpop.eup %4503  ;;  %v3010_v18 = vrot.slane %v4502_v32, %v6555_v44  ;;  %v2420_v8 = vpop.xlane.xlu0 %2419 }
 0x552   : > { %4513 = vrcp.f32 %v6598_v5  ;;  %v2387_v47 = vpop.xlane.xlu1 %2386  ;;  %v2996_v43 = vsel %vm2904_vm9, %v2995_v42, %v2991_v49  ;;  %v3015_v5 = vrot.slane %v4504_v60, %v6552_v19 }
 0x553   : > { %4515 = vrcp.f32 %v2387_v47  ;;  %v3001_v9 = vsel %vm2911_vm10, %v3000_v58, %v2996_v43 }
 0x554   : > { %4517 = vrcp.f32 %v2399_v29  ;;  %v3006_v0 = vsel %vm2918_vm11, %v3005_v40, %v3001_v9 }
 0x555   : > { %v4506_v37 = vpop.eup %4505  ;;  %4519 = vrcp.f32 %v2402_v36  ;;  %v3011_v2 = vsel %vm2925_vm12, %v3010_v18, %v3006_v0 }
 0x556   : > { %4521 = vrcp.f32 %v2405_v25  ;;  %v2411_v38 = vpop.xlane.xlu1 %2410  ;;  %v3020_v26 = vrot.slane %v4506_v37, %v6559_v55  ;;  %v3016_v35 = vsel %vm2932_vm13, %v3015_v5, %v3011_v2 }
 0x557   : > { %4523 = vrcp.f32 %v6547_v41 }
 0x558   : > { %4525 = vrcp.f32 %v2408_v15  ;;  %v3021_v41 = vsel %vm2939_vm14, %v3020_v26, %v3016_v35 }
 0x559   : > { %v4508_v29 = vpop.eup %4507  ;;  %4527 = vrcp.f32 %v6566_v45 }
 0x55a   : > { %v4510_v52 = vpop.eup %4509  ;;  %v3025_v36 = vrot.slane %v4508_v29, %v6563_v4  ;;  %4529 = vrcp.f32 %v6578_v17  ;;  %v2417_v31 = vpop.xlane.xlu1 %2416 }
 0x55b   : > { %v4512_v21 = vpop.eup %4511  ;;  %4531 = vrcp.f32 %v2411_v38  ;;  %v3113_v17 = vrot.slane %v4510_v52, %v6433_v39 }
 0x55c   : > { %v4514_v14 = vpop.eup %4513  ;;  %v3026_v16 = vsel %vm2946_vm15, %v3025_v36, %v3021_v41  ;;  %4533 = vrcp.f32 %v6586_v27  ;;  %v3118_v30 = vrot.slane %v4512_v21, %v6444_v24 }
 0x55d   : > { %v4516_v7 = vpop.eup %4515  ;;  %v3223_v57 = vmul.f32 %v3026_v16, %v6595_v63  ;;  %v3224_v45 = vmul.f32 %v3026_v16, %v6600_v48  ;;  %v3225_v28 = vmul.f32 %v3026_v16, %v6609_v10  ;;  %v3226_v1 = vmul.f32 %v3026_v16, %v6613_v22 }
 0x55e   : > { %v4518_v6 = vpop.eup %4517  ;;  %v3109_v25 = vrot.slane %v4516_v7, %v6430_v13  ;;  %4535 = vrcp.f32 %v2414_v59  ;;  %v3123_v48 = vrot.slane %v4514_v14, %v6453_v3  ;;  %v2423_v39 = vpop.xlane.xlu1 %2422 }
 0x55f   : > { %v4520_v56 = vpop.eup %4519  ;;  %v3253_v11 = vpack.c.bf16 %v3224_v45, %v3223_v57  ;;  %v3254_v61 = vpack.c.bf16 %v3226_v1, %v3225_v28  ;;  %4537 = vrcp.f32 %v2417_v31  ;;  %v3128_v22 = vrot.slane %v4518_v6, %v6459_v23 }
 0x560   : > { %v4522_v63 = vpop.eup %4521  ;;  %v3114_v10 = vsel %vm2848_vm1, %v3113_v17, %v3109_v25  ;;  %v3133_v51 = vrot.slane %v4520_v56, %v6468_v50  ;;  %4539 = vrcp.f32 %v2420_v8  ;;  %v2426_v50 = vpop.xlane.xlu0 %2425 }
 0x561   : > { %v3119_v27 = vsel %vm2855_vm2, %v3118_v30, %v3114_v10  ;;  %3840 = vmatprep.subr.bf16.mxu1 %v3253_v11  ;;  %v4524_v13 = vpop.eup %4523  ;;  %v3138_v12 = vrot.slane %v4522_v63, %v6482_v53  ;;  %4541 = vrcp.f32 %v2423_v39 }
 0x562   : > { %v3124_v24 = vsel %vm2862_vm3, %v3123_v48, %v3119_v27  ;;  %3841 = vmatpush3.bf16.msra.mxu1 %v3253_v11  ;;  %v4526_v32 = vpop.eup %4525  ;;  %v2429_v40 = vpop.xlane.xlu1 %2428  ;;  %v3089_v18 = vrot.slane %v4524_v13, %v6555_v44 }
 0x563   : > { %v3129_v3 = vsel %vm2869_vm4, %v3128_v22, %v3124_v24  ;;  %3842 = vmatprep.subr.bf16.mxu1 %v3254_v61  ;;  %v4528_v47 = vpop.eup %4527  ;;  %v3143_v42 = vrot.slane %v4526_v32, %v6495_v20  ;;  %4543 = vrcp.f32 %v2429_v40  ;;  %v4159_v40 = vld [vmem:[#allocation10 + $0x10] sm:$0xff]  }
 0x564   : > { %v3134_v60 = vsel %vm2876_vm5, %v3133_v51, %v3129_v3  ;;  %v4530_v23 = vpop.eup %4529  ;;  %v3094_v38 = vrot.slane %v4528_v47, %v6552_v19  ;;  %4545 = vrcp.f32 %v2426_v50  ;;  %v2432_v0 = vpop.xlane.xlu0 %2431  ;;  %v3090_v52 = vsel %vm2925_vm12, %v3089_v18, %v6575_v54  ;;  %v4158_v50 = vld [vmem:[#allocation10 + $0x8] sm:$0xff]   ;;  %v4163_v18 = vld [vmem:[#allocation10 + $0x30] sm:$0xff]  }
 0x565   : > { %v3139_v49 = vsel %vm2883_vm6, %v3138_v12, %v3134_v60  ;;  %v4532_v58 = vpop.eup %4531  ;;  %v3099_v20 = vrot.slane %v4530_v23, %v6559_v55  ;;  %4547 = vrcp.f32 %v2432_v0 }
 0x566   : > { %3843 = vmatpush3.bf16.msra.mxu1 %v3254_v61  ;;  %v4534_v15 = vpop.eup %4533  ;;  %v3144_v53 = vsel %vm2890_vm7, %v3143_v42, %v3139_v49  ;;  %v3148_v43 = vrot.slane %v4532_v58, %v6490_v33  ;;  %v3095_v33 = vsel %vm2932_vm13, %v3094_v38, %v3090_v52 }
 0x567   : > { %v3104_v29 = vrot.slane %v4534_v15, %v6563_v4  ;;  %v3100_v35 = vsel %vm2939_vm14, %v3099_v20, %v3095_v33  ;;  %v4160_v15 = vld [vmem:[#allocation10 + $0x18] sm:$0xff]  }
 0x568   : > { %v4536_v37 = vpop.eup %4535  ;;  %v3149_v9 = vsel %vm2897_vm8, %v3148_v43, %v3144_v53  ;;  %v4161_v53 = vld [vmem:[#allocation10 + $0x20] sm:$0xff]   ;;  %v4164_v43 = vld [vmem:[#allocation10 + $0x38] sm:$0xff]  }
 0x569   : > { %v4538_v5 = vpop.eup %4537  ;;  %v3153_v26 = vrot.slane %v4536_v37, %v6518_v62  ;;  %v3105_v62 = vsel %vm2946_vm15, %v3104_v29, %v3100_v35  ;;  %v4162_v37 = vld [vmem:[#allocation10 + $0x28] sm:$0xff]  }
 0x56a   : > { %v3158_v2 = vrot.slane %v4538_v5, %v6527_v46  ;;  %v4540_v59 = vpop.eup %4539 }
 0x56b   : > { %v3154_v36 = vsel %vm2904_vm9, %v3153_v26, %v3149_v9  ;;  %v4542_v21 = vpop.eup %4541  ;;  %v3163_v46 = vrot.slane %v4540_v59, %v6542_v34 }
 0x56c   : > { %v3159_v16 = vsel %vm2911_vm10, %v3158_v2, %v3154_v36  ;;  %v3168_v54 = vrot.slane %v4542_v21, %v6555_v44 }
 0x56d   : > { %v4544_v28 = vpop.eup %4543  ;;  %v3164_v1 = vsel %vm2918_vm11, %v3163_v46, %v3159_v16 }
 0x56e   : > { %v4546_v6 = vpop.eup %4545  ;;  %v3169_v25 = vsel %vm2925_vm12, %v3168_v54, %v3164_v1  ;;  %v3178_v56 = vrot.slane %v4544_v28, %v6559_v55 }
 0x56f   : > { %v2645_v31 = vpop.f32.mrb[100].mxu1  ;;  %v3173_v30 = vrot.slane %v4546_v6, %v6552_v19  ;;  %v4548_v34 = vpop.eup %4547 }
 0x570   : > { %v3227_v41 = vmul.f32 %v3105_v62, %v2645_v31  ;;  %v2647_v14 = vpop.f32.mrb[101].mxu1  ;;  %v3183_v39 = vrot.slane %v4548_v34, %v6563_v4 }
 0x571   : > { %v2648_v7 = vpop.f32.mrb[102].mxu1  ;;  %v3174_v48 = vsel %vm2932_vm13, %v3173_v30, %v3169_v25 }
 0x572   : > { %v3228_v57 = vmul.f32 %v3105_v62, %v2648_v7  ;;  %v2650_v45 = vpop.f32.mrb[103].mxu1  ;;  %v3179_v22 = vsel %vm2939_vm14, %v3178_v56, %v3174_v48 }
 0x573   : > { %v3184_v55 = vsel %vm2946_vm15, %v3183_v39, %v3179_v22 }
 0x574   : > { %v3255_v17 = vpack.c.bf16 %v3228_v57, %v3227_v41 }
 0x576   : > { %3844 = vmatprep.subr.bf16.mxu1 %v3255_v17 }
 0x577   : > { %v2653_v11 = vpop.f32.mrb[104].mxu1  ;;  %3845 = vmatpush3.bf16.msra.mxu1 %v3255_v17 }
 0x578   : > { %v3229_v61 = vmul.f32 %v3105_v62, %v2653_v11  ;;  %v2655_v63 = vpop.f32.mrb[105].mxu1 }
 0x579   : > { %v2656_v44 = vpop.f32.mrb[106].mxu1 }
 0x57a   : > { %v3230_v10 = vmul.f32 %v3105_v62, %v2656_v44  ;;  %v2658_v8 = vpop.f32.mrb[107].mxu1 }
 0x57c   : > { %v2694_v27 = vpop.f32.mrb[124].mxu0  ;;  %v3256_v13 = vpack.c.bf16 %v3230_v10, %v3229_v61 }
 0x57d   : > { %v2696_v51 = vpop.f32.mrb[125].mxu0  ;;  %v3231_v24 = vmul.f32 %v3184_v55, %v2694_v27 }
 0x57e   : > { %v2697_v19 = vpop.f32.mrb[126].mxu0  ;;  %3846 = vmatprep.subr.bf16.mxu1 %v3256_v13 }
 0x57f   : > { %v3232_v32 = vmul.f32 %v3184_v55, %v2697_v19  ;;  %v2699_v12 = vpop.f32.mrb[127].mxu0  ;;  %3847 = vmatpush3.bf16.msra.mxu1 %v3256_v13 }
 0x581   : > { %v3257_v3 = vpack.c.bf16 %v3232_v32, %v3231_v24 }
 0x583   : > { %3848 = vmatprep.subr.bf16.mxu1 %v3257_v3 }
 0x584   : > { %v2702_v47 = vpop.f32.mrb[128].mxu0  ;;  %3849 = vmatpush3.bf16.msra.mxu1 %v3257_v3 }
 0x585   : > { %v2704_v60 = vpop.f32.mrb[129].mxu0  ;;  %v3233_v49 = vmul.f32 %v3184_v55, %v2702_v47 }
 0x586   : > { %v2705_v23 = vpop.f32.mrb[130].mxu0 }
 0x587   : > { %v3234_v58 = vmul.f32 %v3184_v55, %v2705_v23  ;;  %v2707_v42 = vpop.f32.mrb[131].mxu0 }
 0x588   : > { %v3278_v5 = vpop.permute.xlu1 %3277 }
 0x589   : > { %v3258_v4 = vpack.c.bf16 %v3234_v58, %v3233_v49 }
 0x58b   : > { %3850 = vmatprep.subr.bf16.mxu1 %v3258_v4 }
 0x58c   : > { %3851 = vmatpush3.bf16.msra.mxu1 %v3258_v4 }
 0x58f   : > { %3853 = vmatmul.mubr.bf16.vlgmr.msra.gmra.mrb[108].mxu1 %v4158_v50 }
 0x590   : > { %3856 = vmatprep.mubr.bf16.mxu1 %v4159_v40 }
 0x594   : > { %v3288_v38 = vpop.permute.xlu1 %3287 }
 0x597   : > { %3857 = vmatmul.mubr.bf16.gmra.mrb[112].mxu1 %v4160_v15 }
 0x598   : > { %3860 = vmatprep.mubr.bf16.mxu1 %v4161_v53  ;;  %v3293_v9 = vpop.permute.xlu1 %3292 }
 0x59a   : > { %v3283_v36 = vpop.permute.xlu0 %3282 }
 0x59c   : > { %v3298_v20 = vpop.permute.xlu1 %3297 }
 0x59f   : > { %3861 = vmatmul.mubr.bf16.gmra.mrb[116].mxu1 %v4162_v37  ;;  %v3328_v1 = vpop.permute.xlu0 %3327 }
 0x5a0   : > { %3864 = vmatprep.mubr.bf16.mxu1 %v4163_v18 }
 0x5a3   : > { %v3338_v11 = vpop.permute.xlu0 %3337 }
 0x5a4   : > { %v3303_v26 = vpop.permute.xlu1 %3302 }
 0x5a7   : > { %3865 = vmatmul.mubr.bf16.gmra.mrb[120].mxu1 %v4164_v43  ;;  %v3348_v8 = vpop.permute.xlu0 %3347 }
 0x5a8   : > { %v3308_v0 = vpop.permute.xlu1 %3307 }
 0x5ac   : > { %v3313_v29 = vpop.permute.xlu1 %3312 }
 0x5b0   : > { %v3318_v59 = vpop.permute.xlu1 %3317 }
 0x5b4   : > { %v3323_v14 = vpop.permute.xlu1 %3322 }
 0x5b8   : > { %v3333_v17 = vpop.permute.xlu1 %3332 }
 0x5bc   : > { %v3343_v48 = vpop.permute.xlu1 %3342 }
 0x5c0   : > { %v3353_v13 = vpop.permute.xlu1 %3352 }
 0x662   : > { %v3854_v2 = vpop.f32.mrb[108].mxu1 }
 0x663   : > { %v3446_v52 = vadd.f32 %v3854_v2, %v3288_v38  ;;  %v3437_v33 = vpop.f32.mrb[109].mxu1 }
 0x664   : > { %v3438_v35 = vadd.f32 %v3437_v33, %v3278_v5  ;;  %v3855_v21 = vpop.f32.mrb[110].mxu1 }
 0x665   : > { %3502 = vst [vmem:[%s6693_s8 + $0x10] sm:$0xff] %v3446_v52  ;;  %v3449_v31 = vadd.f32 %v3855_v21, %v3293_v9  ;;  %v3440_v62 = vpop.f32.mrb[111].mxu1 }
 0x666   : > { %3500 = vst [vmem:[%s6693_s8] sm:$0xff] %v3438_v35  ;;  %v3441_v41 = vadd.f32 %v3440_v62, %v3283_v36 }
 0x667   : > { %3503 = vst [vmem:[%s6693_s8 + $0x18] sm:$0xff] %v3449_v31 }
 0x668   : > { %3501 = vst [vmem:[%s6693_s8 + $0x8] sm:$0xff] %v3441_v41 }
 0x66a   : > { %v3858_v16 = vpop.f32.mrb[112].mxu1 }
 0x66b   : > { %v3462_v46 = vadd.f32 %v3858_v16, %v3308_v0  ;;  %v3453_v7 = vpop.f32.mrb[113].mxu1 }
 0x66c   : > { %v3454_v54 = vadd.f32 %v3453_v7, %v3298_v20  ;;  %v3859_v57 = vpop.f32.mrb[114].mxu1 }
 0x66d   : > { %3506 = vst [vmem:[%s6693_s8 + $0x30] sm:$0xff] %v3462_v46  ;;  %v3465_v45 = vadd.f32 %v3859_v57, %v3313_v29  ;;  %v3456_v28 = vpop.f32.mrb[115].mxu1 }
 0x66e   : > { %3504 = vst [vmem:[%s6693_s8 + $0x20] sm:$0xff] %v3454_v54  ;;  %v3457_v6 = vadd.f32 %v3456_v28, %v3303_v26 }
 0x66f   : > { %3507 = vst [vmem:[%s6693_s8 + $0x38] sm:$0xff] %v3465_v45 }
 0x670   : > { %3505 = vst [vmem:[%s6693_s8 + $0x28] sm:$0xff] %v3457_v6 }
 0x672   : > { %v3862_v25 = vpop.f32.mrb[116].mxu1 }
 0x673   : > { %v3478_v56 = vadd.f32 %v3862_v25, %v3328_v1  ;;  %v3469_v30 = vpop.f32.mrb[117].mxu1 }
 0x674   : > { %v3470_v34 = vadd.f32 %v3469_v30, %v3318_v59  ;;  %v3863_v61 = vpop.f32.mrb[118].mxu1 }
 0x675   : > { %3510 = vst [vmem:[%s6693_s8 + $0x50] sm:$0xff] %v3478_v56  ;;  %v3481_v63 = vadd.f32 %v3863_v61, %v3333_v17  ;;  %v3472_v44 = vpop.f32.mrb[119].mxu1 }
 0x676   : > { %3508 = vst [vmem:[%s6693_s8 + $0x40] sm:$0xff] %v3470_v34  ;;  %v3473_v10 = vadd.f32 %v3472_v44, %v3323_v14 }
 0x677   : > { %3511 = vst [vmem:[%s6693_s8 + $0x58] sm:$0xff] %v3481_v63 }
 0x678   : > { %3509 = vst [vmem:[%s6693_s8 + $0x48] sm:$0xff] %v3473_v10 }
 0x67a   : > { %v3866_v22 = vpop.f32.mrb[120].mxu1 }
 0x67b   : > { %v3494_v27 = vadd.f32 %v3866_v22, %v3348_v8  ;;  %v3485_v39 = vpop.f32.mrb[121].mxu1 }
 0x67c   : > { %v3486_v51 = vadd.f32 %v3485_v39, %v3338_v11  ;;  %v3867_v55 = vpop.f32.mrb[122].mxu1 }
 0x67d   : > { %3514 = vst [vmem:[%s6693_s8 + $0x70] sm:$0xff] %v3494_v27  ;;  %v3497_v19 = vadd.f32 %v3867_v55, %v3353_v13  ;;  %v3488_v24 = vpop.f32.mrb[123].mxu1 }
 0x67e   : > { %3512 = vst [vmem:[%s6693_s8 + $0x60] sm:$0xff] %v3486_v51  ;;  %v3489_v32 = vadd.f32 %v3488_v24, %v3343_v48 }
 0x67f   : > { %3515 = vst [vmem:[%s6693_s8 + $0x78] sm:$0xff] %v3497_v19 }
 0x680   : > { %3513 = vst [vmem:[%s6693_s8 + $0x68] sm:$0xff] %v3489_v32 }
 0x681   : > { %4734 = shalt.err (!%p4731_p3)
}
 0x682   : > { %s4735_s12 = scalar_lea.hbm %s6713_s16, 2048  ;;  %s4739_s6 = scalar_lea.hbm %s7201_s19, 8192 }
 0x683   : > { %p4736_p5 = scmp.ne.s32.totalorder %s6713_s16, %s4735_s12  ;;  %p4740_p11 = scmp.lt.u32.totalorder %s6713_s16, %s7201_s19 }
 0x684   : > { %p4741_p2 = scmp.lt.u32.totalorder %s4739_s6, %s4735_s12  ;;  %p4743_p13 = scmp.lt.u32.totalorder %s4735_s12, %s6713_s16 }
 0x685   : > { %p4737_p9 = pnand %p4736_p5, %p7202_p0 }
 0x686   : > { %p4742_p4 = por %p4741_p2, %p4740_p11 }
 0x687   : > { %p4738_p10 = pneg %p4737_p9 }
 0x688   : > { %p4744_p6 = por %p4743_p13, %p4742_p4 }
 0x68a   : > { %p4745_p1 = pnand %p4744_p6, %p4738_p10 }
 0x68c   : > { %4748 = shalt.err (!%p4745_p1)
}
 0x68d   : > { %s4875_s2 = smov 128   ;;  %s4876_s0 = smov 256  }
 0x68e   : > { %s4877_s15 = smov 8  }
 0x68f   : > { %3904 = dma.vmem_to_hbm [thread:$0]  (%p7202_p0), %s6716_s21, 2048, %s6713_s16, %s6723_s18, %s4875_s2, %s4876_s0, %s4877_s15  }
 0x690 PF: > { %s7203_s9 = sld [smem:[#allocation20_spill]]  ;;  %s7204_s11 = sld [smem:[#allocation24_spill]] }
 0x691   : > { %p3939_p8 = scmp.ge.s32.totalorder %s4859_s7, 2 }
 0x696   : > { %s3546_s8 = sand.u32 1, %s7203_s9   ;;  %p7205_p7 = scmp.ne.s32.totalorder %s7204_s11, 0 }
 0x697   : > { %s3547_s12 = scalar_lea.sflag [#allocation4], %s3546_s8 }
 0x698   : > { %p3927_p12 = pnand %p3939_p8, %p7205_p7 }
 0x69a   : > { %4814 = dma.done.wait (!%p3927_p12), %s3547_s12, 2048  }
 0x69b   : > { %4816 = vsyncadd (!%p3927_p12), %s3547_s12, 4294965248  ;;  %s27_s7 = sadd.s32 1, %s4859_s7   ;;  %s7206_s20 = smov %s7219_s27 }
 0x69c   : > { %p24_p3 = scmp.ge.s32.totalorder %s27_s7, 6   ;;  %s7207_s16 = smov %s7223_s28 }
 0x69d   : > { %s7208_s21 = smov %s4823_s22  ;;  %s7209_s22 = smov %s4827_s23 }
 0x69e   : > { %s7210_s23 = smov %s5197_s13  ;;  %s7211_s24 = smov %s4835_s25 }
 0x69f   : > { %s7212_s25 = smov %s4839_s26  ;;  %s7213_s26 = smov %s5143_s14 }
 0x6a0   : > { %s7214_s27 = smov %s4851_s29  ;;  %s7215_s28 = smov %s4855_s30 }
 0x6a1   : > { %s7216_s29 = smov %s7206_s20  ;;  %s7217_s30 = smov %s7207_s16 }
 0x6a2   :  { %26 = sbr.rel (!%p24_p3) target bundleno = 17 (0x11), region = 118 }
 0x6a9   :  { %3552 = vsyncpa [#allocation3], 1 }
 0x6aa   :  { %3554 = vsyncpa [#allocation3 + $0x1], 1 }
 0x6ab   :  { %3555 = vsyncpa [#allocation6], 1 }
 0x6ac   :  { %3557 = vsyncpa [#allocation6 + $0x1], 1 }
 0x6ad   :  { %3558 = vsyncpa [#allocation9], 1 }
 0x6ae   :  { %3559 = vsyncpa [#allocation12], 1 }
 0x6af   :  { %3560 = vsyncpa [#allocation4], 1 }
 0x6b0   :  { %3562 = vsyncpa [#allocation4 + $0x1], 1 }

</bundles_post_ra>
